<compile_context>
chip_gen: v6e
topology: v6e:2x2x1
jax: 0.10.0
libtpu: 0.0.40
codegen_flags: <defaults>
</compile_context>

<pallas_src>
import functools

import numpy as np

import jax
import jax.numpy as jnp
from jax import lax
from jax.experimental import pallas as pl
from jax.experimental.pallas import tpu as pltpu  # noqa: F401  (TPU backend)

D_MODEL = 32            # Gdecoder "channel" (original default 256, shrunk for test)
NHEAD = 8               # Decoder(channel, 8)
HEAD_DIM = D_MODEL // NHEAD
DIM_FF = 64             # original default 1024, shrunk for the small test
LN_EPS = 1e-5           # nn.LayerNorm default
EMB_MAX = 50            # nn.Embedding(50, channel // 2)
NEG_INF = -1e30


def _layer_norm(x, g, b):
    mean = jnp.mean(x, axis=-1, keepdims=True)
    xc = x - mean
    var = jnp.mean(xc * xc, axis=-1, keepdims=True)
    return xc * lax.rsqrt(var + LN_EPS) * g + b


# ----------------------------------------------------------------------------
# Single fused kernel: MHA1 + norm1 + MHA2 + norm2 + FFN + norm3.
# All sequence inputs are batch-flattened; parameters arrive in 3 packed slabs;
# all masks arrive precomputed (no iota work on the VALU path).
# ----------------------------------------------------------------------------
def _gdecoder_kernel(bsq, nk1, nk2,
                     seq_ref, kvin_ref,
                     pmat_ref, pkv_ref, pvec_ref,
                     m32_ref, m64_ref, gsum_ref,
                     out_ref):
    f32 = jnp.float32
    C, F = D_MODEL, DIM_FF
    C2 = 2 * C
    rows = bsq * NHEAD            # one row per (batch, query, head)

    # ---- data (two (bsq, C) slabs stacked on sublanes) ----
    q1_in = seq_ref[0:bsq, :]           # search + pos_dec1 (query of MHA1)
    tgt = seq_ref[bsq:2 * bsq, :]       # original search (residual source)

    # ---- packed weights (static slices at 8-sublane multiples: free) ----
    w_kv = pkv_ref[0:C2, 0:C2]          # blockdiag(wk, wv)          (2C, 2C)
    wq_p = pkv_ref[C2:3 * C, 0:C2]      # [wq*scale | 0]             (C, 2C)
    w1 = pkv_ref[3 * C:4 * C, 0:F]      # FFN linear1                (C, F)
    wo_p = pmat_ref[0:C2, :]            # [[0]; [wo]]                (2C, C)
    w2 = pmat_ref[C2:C2 + F, :]         # FFN linear2                (F, C)

    bq_p = pvec_ref[0:1, 0:C2]          # [bq*scale | 0]             (1, 2C)
    b_kv = pvec_ref[1:2, 0:C2]          # [bk | bv]                  (1, 2C)
    bo = pvec_ref[2:3, 0:C]
    b1 = pvec_ref[3:4, 0:F]
    b2 = pvec_ref[4:5, 0:C]
    g1 = pvec_ref[5:6, 0:C]
    be1 = pvec_ref[6:7, 0:C]
    g2 = pvec_ref[7:8, 0:C]
    be2 = pvec_ref[8:9, 0:C]
    g3 = pvec_ref[9:10, 0:C]
    be3 = pvec_ref[10:11, 0:C]

    # ---- precomputed masks ----
    g_rep = m32_ref[0:rows, 0:bsq]              # 0/1 query row-repeat   (rows, bsq)
    bias1 = m32_ref[rows:2 * rows, 0:nk1]       # 0 / -1e30 batch mask   (rows, nk1)
    bias2 = m32_ref[2 * rows:3 * rows, 0:nk2]   # 0 / -1e30 batch mask   (rows, nk2)
    hm_q = m64_ref[0:rows, :]                   # head-lane mask, Q half (rows, 2C)
    hm_v = m64_ref[rows:2 * rows, :]            # head-lane mask, V half (rows, 2C)
    g_sum = gsum_ref[...]                       # 0/1 head-row sum       (bsq, rows)

    # ---- shared K/V projection for BOTH attentions: one block-diag matmul ----
    # Lanes 0:C hold K, lanes C:2C hold V; rows 0:nk1 belong to MHA1 (saliency),
    # rows nk1:nk1+nk2 to MHA2 (template).
    kv = jnp.dot(kvin_ref[...], w_kv, preferred_element_type=f32) + b_kv
    kv1 = kv[0:nk1, :]
    kv2 = kv[nk1:nk1 + nk2, :]

    def mha(q_in, kv_blk, bias):
        # Q projection (pre-scaled), padded to 2C lanes so scores against the joint
        # [K|V] block only pick up the K half (V lanes of q are zero).
        q = jnp.dot(q_in, wq_p, preferred_element_type=f32) + bq_p        # (bsq, 2C)
        q_exp = jnp.dot(g_rep, q, preferred_element_type=f32) * hm_q      # (rows, 2C)
        s = lax.dot_general(q_exp, kv_blk, (((1,), (1,)), ((), ())),
                            preferred_element_type=f32) + bias            # (rows, nk)
        m = jnp.max(s, axis=-1, keepdims=True)
        p = jnp.exp(s - m)
        denom = jnp.sum(p, axis=-1, keepdims=True)
        r = pl.reciprocal(denom, approx=True)       # EUP seed ...
        r = r * (2.0 - denom * r)                   # ... + one Newton step (f32 acc)
        p = p * r
        # P @ [K|V]: the V half (lanes C:2C) is the per-(query, head) context; keep
        # only the row's own head lanes, then sum the 8 head-rows of every query.
        t = jnp.dot(p, kv_blk, preferred_element_type=f32) * hm_v         # (rows, 2C)
        ctx = jnp.dot(g_sum, t, preferred_element_type=f32)               # (bsq, 2C)
        # Output projection reads only the V half of ctx (wo_p rows 0:C are zero).
        return jnp.dot(ctx, wo_p, preferred_element_type=f32) + bo        # (bsq, C)

    # --- block 1: tgt2 = MHA(tgt+pos_dec1, saliency+pos_enc1, saliency); norm1(tgt+tgt2)
    x1 = _layer_norm(tgt + mha(q1_in, kv1, bias1), g1, be1)

    # --- block 2: tgt2 = MHA(x1, template+pos_enc2, template);
    #     residual uses the ORIGINAL tgt, exactly as in the pysot Decoder source.
    x2 = _layer_norm(tgt + mha(x1, kv2, bias2), g2, be2)

    # --- block 3: FFN + residual + norm3
    h = jnp.maximum(jnp.dot(x2, w1, preferred_element_type=f32) + b1, 0.0)
    y = jnp.dot(h, w2, preferred_element_type=f32) + b2
    out_ref[...] = _layer_norm(x2 + y, g3, be3)


# ----------------------------------------------------------------------------
# Host-side constant masks (numpy -> baked into the jit as constants).
# ----------------------------------------------------------------------------
def _build_masks(B, SQ, SK1, SK2, C):
    rows = B * SQ * NHEAD
    bsq = B * SQ
    nk1, nk2 = B * SK1, B * SK2
    r = np.arange(rows)

    # head-lane mask: row r keeps only head (r % NHEAD)'s HEAD_DIM channels
    hm = (np.arange(C)[None, :] // HEAD_DIM == (r % NHEAD)[:, None]).astype(np.float32)
    z = np.zeros_like(hm)
    masks64 = np.concatenate([np.concatenate([hm, z], axis=1),     # Q half
                              np.concatenate([z, hm], axis=1)],    # V half
                             axis=0)                               # (2*rows, 2C)

    # 0/1 query row-repeat (rows, bsq) and its transpose (head-row summation)
    g_rep = ((r // NHEAD)[:, None] == np.arange(bsq)[None, :]).astype(np.float32)
    g_sum = np.ascontiguousarray(g_rep.T)                          # (bsq, rows)

    # additive 0 / -1e30 cross-batch masks (block-diagonal softmax).
    # Every (query, head) row has at least one same-batch key, so NEG_INF is safe.
    def batch_bias(nk, sk):
        same = (r // (SQ * NHEAD))[:, None] == (np.arange(nk)[None, :] // sk)
        return np.where(same, 0.0, NEG_INF).astype(np.float32)

    w32 = max(bsq, nk1, nk2)

    def pad32(a):
        out = np.zeros((rows, w32), np.float32)
        out[:, :a.shape[1]] = a
        return out

    masks32 = np.concatenate([pad32(g_rep),
                              pad32(batch_bias(nk1, SK1)),
                              pad32(batch_bias(nk2, SK2))], axis=0)  # (3*rows, w32)
    return jnp.asarray(masks32), jnp.asarray(masks64), jnp.asarray(g_sum)


# ----------------------------------------------------------------------------
# Host-side one-time parameter packing (3 slabs -> 3 DMAs instead of ~18).
# ----------------------------------------------------------------------------
def pack_params(p):
    f32 = jnp.float32
    C, F = D_MODEL, DIM_FF
    C2 = 2 * C
    WW = max(C2, F)
    scale = 1.0 / (HEAD_DIM ** 0.5)
    zCC = jnp.zeros((C, C), f32)

    padw = lambda a: jnp.pad(a, ((0, 0), (0, WW - a.shape[1])))

    # wide (2C-lane) slab: blockdiag(wk, wv), padded pre-scaled wq, FFN w1
    w_kv = jnp.concatenate([jnp.concatenate([p['wk'], zCC], axis=1),
                            jnp.concatenate([zCC, p['wv']], axis=1)], axis=0)  # (2C, 2C)
    wq_p = jnp.concatenate([p['wq'] * scale, zCC], axis=1)                     # (C, 2C)
    pkv = jnp.concatenate([padw(w_kv), padw(wq_p), padw(p['w1'])], axis=0)     # (4C, WW)

    # narrow (C-lane) slab: zero-padded wo (reads only the V half of ctx), FFN w2
    wo_p = jnp.concatenate([zCC, p['wo']], axis=0)                             # (2C, C)
    pmat = jnp.concatenate([wo_p, p['w2']], axis=0)                            # (2C+F, C)

    # row-vector slab: biases + LayerNorm params
    bq_p = jnp.concatenate([p['bq'] * scale, jnp.zeros((1, C), f32)], axis=1)  # (1, 2C)
    b_kv = jnp.concatenate([p['bk'], p['bv']], axis=1)                         # (1, 2C)
    vec_rows = [bq_p, b_kv, p['bo'], p['b1'], p['b2'],
                p['g1'], p['be1'], p['g2'], p['be2'], p['g3'], p['be3']]
    pvec = jnp.concatenate([padw(r) for r in vec_rows], axis=0)                # (11, WW)

    return dict(pmat=pmat, pkv=pkv, pvec=pvec,
                row_embed=p['row_embed'], col_embed=p['col_embed'])


# ----------------------------------------------------------------------------
# Plain-JAX glue: positional embedding, layout conversion, parameter init.
# ----------------------------------------------------------------------------
def pos_embedding(h, w, col_embed, row_embed):
    # Gdecoder.pos_embedding: sequence index s = ih * w + iw,
    # pos[s] = concat([col_embed[iw], row_embed[ih]])  -> (h*w, C)
    half = col_embed.shape[1]
    x_emb = col_embed[:w]                       # (w, C//2)
    y_emb = row_embed[:h]                       # (h, C//2)
    pos = jnp.concatenate([
        jnp.broadcast_to(x_emb[None, :, :], (h, w, half)),
        jnp.broadcast_to(y_emb[:, None, :], (h, w, half)),
    ], axis=-1)
    return pos.reshape(h * w, 2 * half)


def init_params(key):
    C, F = D_MODEL, DIM_FF
    ks = jax.random.split(key, 20)
    n = lambda k, shape, s=0.05: (s * jax.random.normal(k, shape)).astype(jnp.float32)
    return dict(
        # attention weights in "x @ W" orientation, lane-dense (C, C) / (1, C)
        wq=n(ks[0], (C, C)), wk=n(ks[1], (C, C)), wv=n(ks[2], (C, C)), wo=n(ks[3], (C, C)),
        bq=n(ks[4], (1, C)), bk=n(ks[5], (1, C)), bv=n(ks[6], (1, C)), bo=n(ks[7], (1, C)),
        # FFN
        w1=n(ks[8], (C, F)), b1=n(ks[9], (1, F)),
        w2=n(ks[10], (F, C)), b2=n(ks[11], (1, C)),
        # LayerNorms
        g1=1.0 + n(ks[12], (1, C), 0.1), be1=n(ks[13], (1, C), 0.1),
        g2=1.0 + n(ks[14], (1, C), 0.1), be2=n(ks[15], (1, C), 0.1),
        g3=1.0 + n(ks[16], (1, C), 0.1), be3=n(ks[17], (1, C), 0.1),
        # position embedding tables
        row_embed=n(ks[18], (EMB_MAX, C // 2), 0.5),
        col_embed=n(ks[19], (EMB_MAX, C // 2), 0.5),
    )


def gdecoder_forward(packed, search, template, saliency):
    C = D_MODEL
    B, _, H, W = search.shape
    Ht, Wt = template.shape[-2:]
    Hs, Ws = saliency.shape[-2:]
    SQ, SK1, SK2 = H * W, Hs * Ws, Ht * Wt
    bsq, nk1, nk2 = B * SQ, B * SK1, B * SK2

    pos1 = pos_embedding(Hs, Ws, packed['col_embed'], packed['row_embed'])   # saliency pos
    pos2 = pos_embedding(H, W, packed['col_embed'], packed['row_embed'])     # search  pos
    pos3 = pos_embedding(Ht, Wt, packed['col_embed'], packed['row_embed'])   # template pos

    # NCHW -> (B, S, C); layout plumbing stays in plain JAX.
    to_seq = lambda x: x.reshape(x.shape[0], x.shape[1], -1).transpose(0, 2, 1)
    flat = lambda x: x.reshape(-1, C)                                        # (B*S, C)

    search_s = to_seq(search)
    template_s = to_seq(template)
    saliency_s = to_seq(saliency)

    # two query-side slabs stacked on sublanes: [search+pos ; search]
    seq = jnp.concatenate([flat(search_s + pos2[None]), flat(search_s)], axis=0)  # (2*bsq, C)
    # joint K/V input for BOTH attentions: [k_in | v_in] per row, MHA1 rows first
    kv_in = jnp.concatenate([
        jnp.concatenate([flat(saliency_s + pos1[None]), flat(saliency_s)], axis=1),
        jnp.concatenate([flat(template_s + pos3[None]), flat(template_s)], axis=1),
    ], axis=0)                                                                    # (nk1+nk2, 2C)

    masks32, masks64, g_sum = _build_masks(B, SQ, SK1, SK2, C)   # jit constants

    kernel = functools.partial(_gdecoder_kernel, bsq, nk1, nk2)
    out_flat = pl.pallas_call(
        kernel,
        out_shape=jax.ShapeDtypeStruct((bsq, C), jnp.float32),
        # single grid step, whole arrays resident in VMEM (total < 1 MiB at test size)
    )(seq, kv_in, packed['pmat'], packed['pkv'], packed['pvec'],
      masks32, masks64, g_sum)

    # (B*S, C) -> (B, C, H, W)
    return out_flat.reshape(B, SQ, C).transpose(0, 2, 1).reshape(B, C, H, W)


if __name__ == "__main__":
    key = jax.random.PRNGKey(0)
    kp, k1, k2, k3 = jax.random.split(key, 4)
    params = init_params(kp)
    packed = pack_params(params)          # one-time host-side packing (3 slabs)

    B = 2
    search = jax.random.normal(k1, (B, D_MODEL, 4, 4), jnp.float32)
    template = jax.random.normal(k2, (B, D_MODEL, 2, 2), jnp.float32)
    saliency = jax.random.normal(k3, (B, D_MODEL, 4, 4), jnp.float32)

    out = jax.jit(gdecoder_forward)(packed, search, template, saliency)
    jax.block_until_ready(out)
    assert out.shape == (B, D_MODEL, 4, 4)
    assert bool(jnp.all(jnp.isfinite(out)))
    print("KERNEL_OK")
</pallas_src>

<mosaic_0001>
module attributes {stable_mosaic.version = 11 : i64} {
  func.func @_gdecoder_kernel(%arg0: memref<64x32xf32, #tpu.memory_space<vmem>>, %arg1: memref<40x64xf32, #tpu.memory_space<vmem>>, %arg2: memref<128x32xf32, #tpu.memory_space<vmem>>, %arg3: memref<128x64xf32, #tpu.memory_space<vmem>>, %arg4: memref<11x64xf32, #tpu.memory_space<vmem>>, %arg5: memref<768x32xf32, #tpu.memory_space<vmem>>, %arg6: memref<512x64xf32, #tpu.memory_space<vmem>>, %arg7: memref<32x256xf32, #tpu.memory_space<vmem>>, %arg8: memref<32x32xf32, #tpu.memory_space<vmem>>) attributes {dimension_semantics = [], scalar_prefetch = 0 : i64, scratch_operands = 0 : i64, tpu.core_type = #tpu.core_type<tc>} {
    %c0 = arith.constant 0 : index
    %c0_0 = arith.constant 0 : index
    %0 = vector.load %arg0[%c0, %c0_0] : memref<64x32xf32, #tpu.memory_space<vmem>>, vector<32x32xf32>
    %c32 = arith.constant 32 : index
    %c0_1 = arith.constant 0 : index
    %1 = vector.load %arg0[%c32, %c0_1] : memref<64x32xf32, #tpu.memory_space<vmem>>, vector<32x32xf32>
    %c0_2 = arith.constant 0 : index
    %c0_3 = arith.constant 0 : index
    %2 = vector.load %arg3[%c0_2, %c0_3] : memref<128x64xf32, #tpu.memory_space<vmem>>, vector<64x64xf32>
    %c64 = arith.constant 64 : index
    %c0_4 = arith.constant 0 : index
    %3 = vector.load %arg3[%c64, %c0_4] : memref<128x64xf32, #tpu.memory_space<vmem>>, vector<32x64xf32>
    %c96 = arith.constant 96 : index
    %c0_5 = arith.constant 0 : index
    %4 = vector.load %arg3[%c96, %c0_5] : memref<128x64xf32, #tpu.memory_space<vmem>>, vector<32x64xf32>
    %c0_6 = arith.constant 0 : index
    %c0_7 = arith.constant 0 : index
    %5 = vector.load %arg2[%c0_6, %c0_7] : memref<128x32xf32, #tpu.memory_space<vmem>>, vector<64x32xf32>
    %c64_8 = arith.constant 64 : index
    %c0_9 = arith.constant 0 : index
    %6 = vector.load %arg2[%c64_8, %c0_9] : memref<128x32xf32, #tpu.memory_space<vmem>>, vector<64x32xf32>
    %c0_10 = arith.constant 0 : index
    %c0_11 = arith.constant 0 : index
    %7 = vector.load %arg4[%c0_10, %c0_11] : memref<11x64xf32, #tpu.memory_space<vmem>>, vector<1x64xf32>
    %c1 = arith.constant 1 : index
    %c0_12 = arith.constant 0 : index
    %8 = vector.load %arg4[%c1, %c0_12] : memref<11x64xf32, #tpu.memory_space<vmem>>, vector<1x64xf32>
    %c2 = arith.constant 2 : index
    %c0_13 = arith.constant 0 : index
    %9 = vector.load %arg4[%c2, %c0_13] : memref<11x64xf32, #tpu.memory_space<vmem>>, vector<1x32xf32>
    %c3 = arith.constant 3 : index
    %c0_14 = arith.constant 0 : index
    %10 = vector.load %arg4[%c3, %c0_14] : memref<11x64xf32, #tpu.memory_space<vmem>>, vector<1x64xf32>
    %c4 = arith.constant 4 : index
    %c0_15 = arith.constant 0 : index
    %11 = vector.load %arg4[%c4, %c0_15] : memref<11x64xf32, #tpu.memory_space<vmem>>, vector<1x32xf32>
    %c5 = arith.constant 5 : index
    %c0_16 = arith.constant 0 : index
    %12 = vector.load %arg4[%c5, %c0_16] : memref<11x64xf32, #tpu.memory_space<vmem>>, vector<1x32xf32>
    %c6 = arith.constant 6 : index
    %c0_17 = arith.constant 0 : index
    %13 = vector.load %arg4[%c6, %c0_17] : memref<11x64xf32, #tpu.memory_space<vmem>>, vector<1x32xf32>
    %c7 = arith.constant 7 : index
    %c0_18 = arith.constant 0 : index
    %14 = vector.load %arg4[%c7, %c0_18] : memref<11x64xf32, #tpu.memory_space<vmem>>, vector<1x32xf32>
    %c8 = arith.constant 8 : index
    %c0_19 = arith.constant 0 : index
    %15 = vector.load %arg4[%c8, %c0_19] : memref<11x64xf32, #tpu.memory_space<vmem>>, vector<1x32xf32>
    %c9 = arith.constant 9 : index
    %c0_20 = arith.constant 0 : index
    %16 = vector.load %arg4[%c9, %c0_20] : memref<11x64xf32, #tpu.memory_space<vmem>>, vector<1x32xf32>
    %c10 = arith.constant 10 : index
    %c0_21 = arith.constant 0 : index
    %17 = vector.load %arg4[%c10, %c0_21] : memref<11x64xf32, #tpu.memory_space<vmem>>, vector<1x32xf32>
    %c0_22 = arith.constant 0 : index
    %c0_23 = arith.constant 0 : index
    %18 = vector.load %arg5[%c0_22, %c0_23] : memref<768x32xf32, #tpu.memory_space<vmem>>, vector<256x32xf32>
    %c256 = arith.constant 256 : index
    %c0_24 = arith.constant 0 : index
    %19 = vector.load %arg5[%c256, %c0_24] : memref<768x32xf32, #tpu.memory_space<vmem>>, vector<256x32xf32>
    %c512 = arith.constant 512 : index
    %c0_25 = arith.constant 0 : index
    %20 = vector.load %arg5[%c512, %c0_25] : memref<768x32xf32, #tpu.memory_space<vmem>>, vector<256x8xf32>
    %c0_26 = arith.constant 0 : index
    %c0_27 = arith.constant 0 : index
    %21 = vector.load %arg6[%c0_26, %c0_27] : memref<512x64xf32, #tpu.memory_space<vmem>>, vector<256x64xf32>
    %c256_28 = arith.constant 256 : index
    %c0_29 = arith.constant 0 : index
    %22 = vector.load %arg6[%c256_28, %c0_29] : memref<512x64xf32, #tpu.memory_space<vmem>>, vector<256x64xf32>
    %c0_30 = arith.constant 0 : index
    %c0_31 = arith.constant 0 : index
    %23 = vector.load %arg7[%c0_30, %c0_31] : memref<32x256xf32, #tpu.memory_space<vmem>>, vector<32x256xf32>
    %c0_32 = arith.constant 0 : index
    %c0_33 = arith.constant 0 : index
    %24 = vector.load %arg1[%c0_32, %c0_33] : memref<40x64xf32, #tpu.memory_space<vmem>>, vector<40x64xf32>
    %cst = arith.constant dense<0.000000e+00> : vector<40x64xf32>
    %25 = tpu.matmul %24, %2, %cst {dimension_numbers = #tpu.dot_dimension_numbers<[1], [0], [0], [1], [0, 0, 1, 1], [], []>} : vector<40x64xf32>, vector<64x64xf32>, vector<40x64xf32> -> vector<40x64xf32>
    %26 = vector.broadcast %8 : vector<1x64xf32> to vector<40x64xf32>
    %27 = arith.addf %25, %26 : vector<40x64xf32>
    %28 = vector.extract_strided_slice %27 {offsets = [0, 0], sizes = [32, 64], strides = [1, 1]} : vector<40x64xf32> to vector<32x64xf32>
    %29 = vector.extract_strided_slice %27 {offsets = [32, 0], sizes = [8, 64], strides = [1, 1]} : vector<40x64xf32> to vector<8x64xf32>
    %cst_34 = arith.constant dense<0.000000e+00> : vector<32x64xf32>
    %30 = tpu.matmul %0, %3, %cst_34 {dimension_numbers = #tpu.dot_dimension_numbers<[1], [0], [0], [1], [0, 0, 1, 1], [], []>} : vector<32x32xf32>, vector<32x64xf32>, vector<32x64xf32> -> vector<32x64xf32>
    %31 = vector.broadcast %7 : vector<1x64xf32> to vector<32x64xf32>
    %32 = arith.addf %30, %31 : vector<32x64xf32>
    %cst_35 = arith.constant dense<0.000000e+00> : vector<256x64xf32>
    %33 = tpu.matmul %18, %32, %cst_35 {dimension_numbers = #tpu.dot_dimension_numbers<[1], [0], [0], [1], [0, 0, 1, 1], [], []>} : vector<256x32xf32>, vector<32x64xf32>, vector<256x64xf32> -> vector<256x64xf32>
    %34 = arith.mulf %33, %21 : vector<256x64xf32>
    %cst_36 = arith.constant dense<0.000000e+00> : vector<256x32xf32>
    %35 = tpu.matmul %34, %28, %cst_36 {dimension_numbers = #tpu.dot_dimension_numbers<[1], [1], [0], [0], [0, 0, 1, 0], [], []>} : vector<256x64xf32>, vector<32x64xf32>, vector<256x32xf32> -> vector<256x32xf32>
    %36 = arith.addf %35, %19 : vector<256x32xf32>
    %cst_37 = arith.constant dense<0xFF800000> : vector<256xf32>
    %37 = vector.multi_reduction <maximumf>, %36, %cst_37 [1] : vector<256x32xf32> to vector<256xf32>
    %38 = vector.shape_cast %37 : vector<256xf32> to vector<256x1xf32>
    %39 = vector.broadcast %38 : vector<256x1xf32> to vector<256x32xf32>
    %40 = arith.subf %36, %39 : vector<256x32xf32>
    %41 = math.exp %40 : vector<256x32xf32>
    %cst_38 = arith.constant dense<0.000000e+00> : vector<256xf32>
    %42 = vector.multi_reduction <add>, %41, %cst_38 [1] : vector<256x32xf32> to vector<256xf32>
    %43 = vector.shape_cast %42 : vector<256xf32> to vector<256x1xf32>
    %44 = tpu.reciprocal %43 {approx = true} : vector<256x1xf32> -> vector<256x1xf32>
    %45 = arith.mulf %43, %44 : vector<256x1xf32>
    %cst_39 = arith.constant 2.000000e+00 : f32
    %46 = vector.broadcast %cst_39 : f32 to vector<256x1xf32>
    %47 = arith.subf %46, %45 : vector<256x1xf32>
    %48 = arith.mulf %44, %47 : vector<256x1xf32>
    %49 = vector.broadcast %48 : vector<256x1xf32> to vector<256x32xf32>
    %50 = arith.mulf %41, %49 : vector<256x32xf32>
    %cst_40 = arith.constant dense<0.000000e+00> : vector<256x64xf32>
    %51 = tpu.matmul %50, %28, %cst_40 {dimension_numbers = #tpu.dot_dimension_numbers<[1], [0], [0], [1], [0, 0, 1, 1], [], []>} : vector<256x32xf32>, vector<32x64xf32>, vector<256x64xf32> -> vector<256x64xf32>
    %52 = arith.mulf %51, %22 : vector<256x64xf32>
    %cst_41 = arith.constant dense<0.000000e+00> : vector<32x64xf32>
    %53 = tpu.matmul %23, %52, %cst_41 {dimension_numbers = #tpu.dot_dimension_numbers<[1], [0], [0], [1], [0, 0, 1, 1], [], []>} : vector<32x256xf32>, vector<256x64xf32>, vector<32x64xf32> -> vector<32x64xf32>
    %cst_42 = arith.constant dense<0.000000e+00> : vector<32x32xf32>
    %54 = tpu.matmul %53, %5, %cst_42 {dimension_numbers = #tpu.dot_dimension_numbers<[1], [0], [0], [1], [0, 0, 1, 1], [], []>} : vector<32x64xf32>, vector<64x32xf32>, vector<32x32xf32> -> vector<32x32xf32>
    %55 = vector.broadcast %9 : vector<1x32xf32> to vector<32x32xf32>
    %56 = arith.addf %54, %55 : vector<32x32xf32>
    %57 = arith.addf %1, %56 : vector<32x32xf32>
    %cst_43 = arith.constant dense<0.000000e+00> : vector<32xf32>
    %58 = vector.multi_reduction <add>, %57, %cst_43 [1] : vector<32x32xf32> to vector<32xf32>
    %59 = vector.shape_cast %58 : vector<32xf32> to vector<32x1xf32>
    %cst_44 = arith.constant 3.200000e+01 : f32
    %60 = vector.broadcast %cst_44 : f32 to vector<32x1xf32>
    %61 = arith.divf %59, %60 : vector<32x1xf32>
    %62 = vector.broadcast %61 : vector<32x1xf32> to vector<32x32xf32>
    %63 = arith.subf %57, %62 : vector<32x32xf32>
    %64 = arith.mulf %63, %63 : vector<32x32xf32>
    %cst_45 = arith.constant dense<0.000000e+00> : vector<32xf32>
    %65 = vector.multi_reduction <add>, %64, %cst_45 [1] : vector<32x32xf32> to vector<32xf32>
    %66 = vector.shape_cast %65 : vector<32xf32> to vector<32x1xf32>
    %cst_46 = arith.constant 3.200000e+01 : f32
    %67 = vector.broadcast %cst_46 : f32 to vector<32x1xf32>
    %68 = arith.divf %66, %67 : vector<32x1xf32>
    %cst_47 = arith.constant 9.99999974E-6 : f32
    %69 = vector.broadcast %cst_47 : f32 to vector<32x1xf32>
    %70 = arith.addf %68, %69 : vector<32x1xf32>
    %71 = math.rsqrt %70 : vector<32x1xf32>
    %72 = vector.broadcast %71 : vector<32x1xf32> to vector<32x32xf32>
    %73 = arith.mulf %63, %72 : vector<32x32xf32>
    %74 = vector.broadcast %12 : vector<1x32xf32> to vector<32x32xf32>
    %75 = arith.mulf %73, %74 : vector<32x32xf32>
    %76 = vector.broadcast %13 : vector<1x32xf32> to vector<32x32xf32>
    %77 = arith.addf %75, %76 : vector<32x32xf32>
    %cst_48 = arith.constant dense<0.000000e+00> : vector<32x64xf32>
    %78 = tpu.matmul %77, %3, %cst_48 {dimension_numbers = #tpu.dot_dimension_numbers<[1], [0], [0], [1], [0, 0, 1, 1], [], []>} : vector<32x32xf32>, vector<32x64xf32>, vector<32x64xf32> -> vector<32x64xf32>
    %79 = vector.broadcast %7 : vector<1x64xf32> to vector<32x64xf32>
    %80 = arith.addf %78, %79 : vector<32x64xf32>
    %cst_49 = arith.constant dense<0.000000e+00> : vector<256x64xf32>
    %81 = tpu.matmul %18, %80, %cst_49 {dimension_numbers = #tpu.dot_dimension_numbers<[1], [0], [0], [1], [0, 0, 1, 1], [], []>} : vector<256x32xf32>, vector<32x64xf32>, vector<256x64xf32> -> vector<256x64xf32>
    %82 = arith.mulf %81, %21 : vector<256x64xf32>
    %cst_50 = arith.constant dense<0.000000e+00> : vector<256x8xf32>
    %83 = tpu.matmul %82, %29, %cst_50 {dimension_numbers = #tpu.dot_dimension_numbers<[1], [1], [0], [0], [0, 0, 1, 0], [], []>} : vector<256x64xf32>, vector<8x64xf32>, vector<256x8xf32> -> vector<256x8xf32>
    %84 = arith.addf %83, %20 : vector<256x8xf32>
    %cst_51 = arith.constant dense<0xFF800000> : vector<256xf32>
    %85 = vector.multi_reduction <maximumf>, %84, %cst_51 [1] : vector<256x8xf32> to vector<256xf32>
    %86 = vector.shape_cast %85 : vector<256xf32> to vector<256x1xf32>
    %87 = vector.broadcast %86 : vector<256x1xf32> to vector<256x8xf32>
    %88 = arith.subf %84, %87 : vector<256x8xf32>
    %89 = math.exp %88 : vector<256x8xf32>
    %cst_52 = arith.constant dense<0.000000e+00> : vector<256xf32>
    %90 = vector.multi_reduction <add>, %89, %cst_52 [1] : vector<256x8xf32> to vector<256xf32>
    %91 = vector.shape_cast %90 : vector<256xf32> to vector<256x1xf32>
    %92 = tpu.reciprocal %91 {approx = true} : vector<256x1xf32> -> vector<256x1xf32>
    %93 = arith.mulf %91, %92 : vector<256x1xf32>
    %cst_53 = arith.constant 2.000000e+00 : f32
    %94 = vector.broadcast %cst_53 : f32 to vector<256x1xf32>
    %95 = arith.subf %94, %93 : vector<256x1xf32>
    %96 = arith.mulf %92, %95 : vector<256x1xf32>
    %97 = vector.broadcast %96 : vector<256x1xf32> to vector<256x8xf32>
    %98 = arith.mulf %89, %97 : vector<256x8xf32>
    %cst_54 = arith.constant dense<0.000000e+00> : vector<256x64xf32>
    %99 = tpu.matmul %98, %29, %cst_54 {dimension_numbers = #tpu.dot_dimension_numbers<[1], [0], [0], [1], [0, 0, 1, 1], [], []>} : vector<256x8xf32>, vector<8x64xf32>, vector<256x64xf32> -> vector<256x64xf32>
    %100 = arith.mulf %99, %22 : vector<256x64xf32>
    %cst_55 = arith.constant dense<0.000000e+00> : vector<32x64xf32>
    %101 = tpu.matmul %23, %100, %cst_55 {dimension_numbers = #tpu.dot_dimension_numbers<[1], [0], [0], [1], [0, 0, 1, 1], [], []>} : vector<32x256xf32>, vector<256x64xf32>, vector<32x64xf32> -> vector<32x64xf32>
    %cst_56 = arith.constant dense<0.000000e+00> : vector<32x32xf32>
    %102 = tpu.matmul %101, %5, %cst_56 {dimension_numbers = #tpu.dot_dimension_numbers<[1], [0], [0], [1], [0, 0, 1, 1], [], []>} : vector<32x64xf32>, vector<64x32xf32>, vector<32x32xf32> -> vector<32x32xf32>
    %103 = vector.broadcast %9 : vector<1x32xf32> to vector<32x32xf32>
    %104 = arith.addf %102, %103 : vector<32x32xf32>
    %105 = arith.addf %1, %104 : vector<32x32xf32>
    %cst_57 = arith.constant dense<0.000000e+00> : vector<32xf32>
    %106 = vector.multi_reduction <add>, %105, %cst_57 [1] : vector<32x32xf32> to vector<32xf32>
    %107 = vector.shape_cast %106 : vector<32xf32> to vector<32x1xf32>
    %cst_58 = arith.constant 3.200000e+01 : f32
    %108 = vector.broadcast %cst_58 : f32 to vector<32x1xf32>
    %109 = arith.divf %107, %108 : vector<32x1xf32>
    %110 = vector.broadcast %109 : vector<32x1xf32> to vector<32x32xf32>
    %111 = arith.subf %105, %110 : vector<32x32xf32>
    %112 = arith.mulf %111, %111 : vector<32x32xf32>
    %cst_59 = arith.constant dense<0.000000e+00> : vector<32xf32>
    %113 = vector.multi_reduction <add>, %112, %cst_59 [1] : vector<32x32xf32> to vector<32xf32>
    %114 = vector.shape_cast %113 : vector<32xf32> to vector<32x1xf32>
    %cst_60 = arith.constant 3.200000e+01 : f32
    %115 = vector.broadcast %cst_60 : f32 to vector<32x1xf32>
    %116 = arith.divf %114, %115 : vector<32x1xf32>
    %cst_61 = arith.constant 9.99999974E-6 : f32
    %117 = vector.broadcast %cst_61 : f32 to vector<32x1xf32>
    %118 = arith.addf %116, %117 : vector<32x1xf32>
    %119 = math.rsqrt %118 : vector<32x1xf32>
    %120 = vector.broadcast %119 : vector<32x1xf32> to vector<32x32xf32>
    %121 = arith.mulf %111, %120 : vector<32x32xf32>
    %122 = vector.broadcast %14 : vector<1x32xf32> to vector<32x32xf32>
    %123 = arith.mulf %121, %122 : vector<32x32xf32>
    %124 = vector.broadcast %15 : vector<1x32xf32> to vector<32x32xf32>
    %125 = arith.addf %123, %124 : vector<32x32xf32>
    %cst_62 = arith.constant dense<0.000000e+00> : vector<32x64xf32>
    %126 = tpu.matmul %125, %4, %cst_62 {dimension_numbers = #tpu.dot_dimension_numbers<[1], [0], [0], [1], [0, 0, 1, 1], [], []>} : vector<32x32xf32>, vector<32x64xf32>, vector<32x64xf32> -> vector<32x64xf32>
    %127 = vector.broadcast %10 : vector<1x64xf32> to vector<32x64xf32>
    %128 = arith.addf %126, %127 : vector<32x64xf32>
    %cst_63 = arith.constant 0.000000e+00 : f32
    %129 = vector.broadcast %cst_63 : f32 to vector<32x64xf32>
    %130 = arith.maximumf %128, %129 : vector<32x64xf32>
    %cst_64 = arith.constant dense<0.000000e+00> : vector<32x32xf32>
    %131 = tpu.matmul %130, %6, %cst_64 {dimension_numbers = #tpu.dot_dimension_numbers<[1], [0], [0], [1], [0, 0, 1, 1], [], []>} : vector<32x64xf32>, vector<64x32xf32>, vector<32x32xf32> -> vector<32x32xf32>
    %132 = vector.broadcast %11 : vector<1x32xf32> to vector<32x32xf32>
    %133 = arith.addf %131, %132 : vector<32x32xf32>
    %134 = arith.addf %125, %133 : vector<32x32xf32>
    %cst_65 = arith.constant dense<0.000000e+00> : vector<32xf32>
    %135 = vector.multi_reduction <add>, %134, %cst_65 [1] : vector<32x32xf32> to vector<32xf32>
    %136 = vector.shape_cast %135 : vector<32xf32> to vector<32x1xf32>
    %cst_66 = arith.constant 3.200000e+01 : f32
    %137 = vector.broadcast %cst_66 : f32 to vector<32x1xf32>
    %138 = arith.divf %136, %137 : vector<32x1xf32>
    %139 = vector.broadcast %138 : vector<32x1xf32> to vector<32x32xf32>
    %140 = arith.subf %134, %139 : vector<32x32xf32>
    %141 = arith.mulf %140, %140 : vector<32x32xf32>
    %cst_67 = arith.constant dense<0.000000e+00> : vector<32xf32>
    %142 = vector.multi_reduction <add>, %141, %cst_67 [1] : vector<32x32xf32> to vector<32xf32>
    %143 = vector.shape_cast %142 : vector<32xf32> to vector<32x1xf32>
    %cst_68 = arith.constant 3.200000e+01 : f32
    %144 = vector.broadcast %cst_68 : f32 to vector<32x1xf32>
    %145 = arith.divf %143, %144 : vector<32x1xf32>
    %cst_69 = arith.constant 9.99999974E-6 : f32
    %146 = vector.broadcast %cst_69 : f32 to vector<32x1xf32>
    %147 = arith.addf %145, %146 : vector<32x1xf32>
    %148 = math.rsqrt %147 : vector<32x1xf32>
    %149 = vector.broadcast %148 : vector<32x1xf32> to vector<32x32xf32>
    %150 = arith.mulf %140, %149 : vector<32x32xf32>
    %151 = vector.broadcast %16 : vector<1x32xf32> to vector<32x32xf32>
    %152 = arith.mulf %150, %151 : vector<32x32xf32>
    %153 = vector.broadcast %17 : vector<1x32xf32> to vector<32x32xf32>
    %154 = arith.addf %152, %153 : vector<32x32xf32>
    %c0_70 = arith.constant 0 : index
    %c0_71 = arith.constant 0 : index
    %155 = vector.load %arg8[%c0_70, %c0_71] : memref<32x32xf32, #tpu.memory_space<vmem>>, vector<32x32xf32>
    tpu.vector_store %arg8[%c0_70, %c0_71], %154 {strides = array<i32>} : memref<32x32xf32, #tpu.memory_space<vmem>>, vector<32x32xf32>,
    return
  }
}

</mosaic_0001>

<bundles_post_ra>
// kernel: gdecoder_forward.1
= control target key start
LH: loop header
LB: loop body
LE: loop exit
PB: predicated region body
PF: predicated region fallthrough
CT: control target
= control target key end

     0   :  { %13 = vsyncpa [#allocation3], 0  ;;  %s7512_s0 = inlined_call_operand.vmem [shape: f32[64,32], index: 0, kind: input, shape index: {}]   ;;  %s7513_s1 = inlined_call_operand.vmem [shape: f32[40,64], index: 1, kind: input, shape index: {}]   ;;  %s7514_s2 = inlined_call_operand.vmem [shape: f32[128,32], index: 2, kind: input, shape index: {}]   ;;  %s7515_s3 = inlined_call_operand.vmem [shape: f32[128,64], index: 3, kind: input, shape index: {}]   ;;  %s7516_s4 = inlined_call_operand.vmem [shape: f32[11,64], index: 4, kind: input, shape index: {}]   ;;  %s7517_s5 = inlined_call_operand.vmem [shape: f32[768,32], index: 5, kind: input, shape index: {}]   ;;  %s7518_s6 = inlined_call_operand.hbm [shape: f32[512,64], index: 6, kind: input, shape index: {}]   ;;  %s7519_s7 = inlined_call_operand.vmem [shape: f32[32,256], index: 7, kind: input, shape index: {}]   ;;  %s7520_s8 = inlined_call_operand.hbm [shape: f32[32,32], index: 8, kind: output, shape index: {}]  }
   0x1   :  { %14 = vsyncpa [#allocation4], 0  ;;  %s5781_s27 = smov [#allocation2]  }
   0x2   :  { %s32_s28 = sshll.u32 %s5781_s27, 4  ;;  %s33_s28 = int_to_ptr.vmem [resolvable:$true] %s32_s28 }
   0x3   :  { %s5745_s29 = scalar_lea.vmem %s33_s28, 8192  ;;  %p5750_p1 = scmp.lt.s32.totalorder %s33_s28, %s33_s28 }
   0x4   :  { %p5746_p0 = scmp.ne.s32.totalorder %s33_s28, %s5745_s29  ;;  %p5751_p2 = scmp.lt.s32.totalorder %s5745_s29, %s5745_s29 }
   0x6   :  { %p5752_p3 = por %p5751_p2, %p5750_p1 }
   0x8   :  { %p5753_p4 = pnand %p5752_p3, %p5746_p0 }
   0xa   :  { %5756 = shalt.err (!%p5753_p4)
}
   0xb   :  { %s5782_s30 = smov 128   ;;  %s5783_s9 = smov 8  }
   0xc   :  { %38 = dma.hbm_to_vmem [thread:$0]  %s7518_s6, 8192, %s33_s28, [#allocation3], %s5782_s30, %s5782_s30, %s5783_s9  }
   0xd   :  { %5777 = dma.done.wait [#allocation3], 8192  }
   0xe   :  { %5778 = vsyncadd [#allocation3], 4294959104  ;;  %v5784_v0 = vmov 0.0   ;;  %vm5785_vm0 = vmmov 0   ;;  %vm382_vm1 = vcmask 261120   ;;  %v63_v1 = vld [vmem:[%s7515_s3 + $0x58] sm:$0xff] }
   0xf   :  { %4867 = vmatprep.subr.mxu0 %v5784_v0  ;;  %4883 = vmatprep.mubr.msk.f32.mxu0 %vm5785_vm0, %v5784_v0  ;;  %v62_v2 = vld [vmem:[%s7515_s3 + $0x50] sm:$0xff]  ;;  %v44_v3 = vld [vmem:[%s7512_s0] sm:$0xff]  ;;  %v61_v4 = vld [vmem:[%s7515_s3 + $0x48] sm:$0xff]  ;;  %vm272_vm2 = vcmask 523264   ;;  %vm2904_vm3 = vcmask 64512   ;;  %s5786_s18 = smov [#allocation5]  }
  0x10   :  { %4898 = vmatprep.subr.mxu1 %v63_v1  ;;  %4906 = vmatprep.mubr.msk.f32.mxu1 %vm382_vm1, %v44_v3  ;;  %v59_v5 = vld [vmem:[%s7515_s3 + $0x38] sm:$0xff]  ;;  %v58_v6 = vld [vmem:[%s7515_s3 + $0x30] sm:$0xff]  ;;  %v60_v7 = vld [vmem:[%s7515_s3 + $0x40] sm:$0xff] }
  0x11   :  { %4899 = vmatpush3.msra.mxu1 %v63_v1  ;;  %4868 = vmatpush3.msra.mxu0 %v59_v5  ;;  %v57_v8 = vld [vmem:[%s7515_s3 + $0x28] sm:$0xff]  ;;  %v56_v10 = vld [vmem:[%s7515_s3 + $0x20] sm:$0xff]  ;;  %v46_v11 = vld [vmem:[%s7512_s0 + $0x10] sm:$0xff] }
  0x12   :  { %4900 = vmatprep.subr.mxu1 %v62_v2  ;;  %4869 = vmatprep.subr.mxu0 %v5784_v0  ;;  %v45_v9 = vld [vmem:[%s7512_s0 + $0x8] sm:$0xff]  ;;  %v55_v12 = vld [vmem:[%s7515_s3 + $0x18] sm:$0xff]  ;;  %v54_v14 = vld [vmem:[%s7515_s3 + $0x10] sm:$0xff] }
  0x13   :  { %4901 = vmatpush3.msra.mxu1 %v62_v2  ;;  %4870 = vmatpush3.msra.mxu0 %v58_v6  ;;  %v47_v13 = vld [vmem:[%s7512_s0 + $0x18] sm:$0xff]  ;;  %v53_v15 = vld [vmem:[%s7515_s3 + $0x8] sm:$0xff]  ;;  %v52_v16 = vld [vmem:[%s7515_s3] sm:$0xff] }
  0x14   :  { %4902 = vmatprep.subr.mxu1 %v61_v4  ;;  %4871 = vmatprep.subr.mxu0 %v5784_v0  ;;  %v263_v17 = vld [vmem:[%s7513_s1] sm:$0xff]  ;;  %v264_v18 = vld [vmem:[%s7513_s1 + $0x8] sm:$0xff]  ;;  %v265_v19 = vld [vmem:[%s7513_s1 + $0x10] sm:$0xff] }
  0x15   :  { %4903 = vmatpush3.msra.mxu1 %v61_v4  ;;  %4872 = vmatpush3.msra.mxu0 %v57_v8  ;;  %v266_v20 = vld [vmem:[%s7513_s1 + $0x18] sm:$0xff]  ;;  %v95_v21 = vld [vmem:[%s7517_s5] sm:$0xff]  ;;  %v96_v34 = vld [vmem:[%s7517_s5 + $0x8] sm:$0xff] }
  0x16   :  { %4904 = vmatprep.subr.mxu1 %v60_v7  ;;  %4873 = vmatprep.subr.mxu0 %v5784_v0  ;;  %v267_v22 = vld [vmem:[%s7513_s1 + $0x20] sm:$0xff]  ;;  %v97_v35 = vld [vmem:[%s7517_s5 + $0x10] sm:$0xff]  ;;  %v98_v38 = vld [vmem:[%s7517_s5 + $0x18] sm:$0xff] }
  0x17   :  { %4905 = vmatpush3.msra.mxu1 %v60_v7  ;;  %4874 = vmatpush3.msra.mxu0 %v56_v10  ;;  %v4265_v25 = vld [vmem:[%s7516_s4] ss:$0 sm:$0xff]  ;;  %v5940_v41 = vld [vmem:[%s7516_s4 + $0x1] ss:$0 sm:$0xff]  ;;  %v100_v43 = vld [vmem:[%s7517_s5 + $0x28] sm:$0xff] }
  0x18   :  { %4907 = vmatmul.mubr.msk.f32.vlgmr.msra.gmra.mxu1 %vm382_vm1, %v45_v9  ;;  %4875 = vmatprep.subr.mxu0 %v5784_v0  ;;  %v99_v39 = vld [vmem:[%s7517_s5 + $0x20] sm:$0xff]  ;;  %v101_v44 = vld [vmem:[%s7517_s5 + $0x30] sm:$0xff]  ;;  %v102_v49 = vld [vmem:[%s7517_s5 + $0x38] sm:$0xff] }
  0x19   :  { %4909 = vmatprep.mubr.msk.f32.mxu1 %vm382_vm1, %v46_v11  ;;  %4876 = vmatpush3.msra.mxu0 %v55_v12  ;;  %v103_v50 = vld [vmem:[%s7517_s5 + $0x40] sm:$0xff]  ;;  %v104_v53 = vld [vmem:[%s7517_s5 + $0x48] sm:$0xff]  ;;  %v105_v54 = vld [vmem:[%s7517_s5 + $0x50] sm:$0xff] }
  0x1a   :  { %4877 = vmatprep.subr.mxu0 %v5784_v0  ;;  %v106_v55 = vld [vmem:[%s7517_s5 + $0x58] sm:$0xff]  ;;  %v107_v56 = vld [vmem:[%s7517_s5 + $0x60] sm:$0xff]  ;;  %v108_v57 = vld [vmem:[%s7517_s5 + $0x68] sm:$0xff] }
  0x1b   :  { %4878 = vmatpush3.msra.mxu0 %v54_v14  ;;  %v109_v58 = vld [vmem:[%s7517_s5 + $0x70] sm:$0xff]  ;;  %v110_v59 = vld [vmem:[%s7517_s5 + $0x78] sm:$0xff]  ;;  %v111_v60 = vld [vmem:[%s7517_s5 + $0x80] sm:$0xff] }
  0x1c   :  { %4910 = vmatmul.mubr.msk.f32.gmra.mxu1 %vm382_vm1, %v47_v13  ;;  %4879 = vmatprep.subr.mxu0 %v5784_v0  ;;  %v112_v61 = vld [vmem:[%s7517_s5 + $0x88] sm:$0xff]  ;;  %v113_v62 = vld [vmem:[%s7517_s5 + $0x90] sm:$0xff]  ;;  %v114_v63 = vld [vmem:[%s7517_s5 + $0x98] sm:$0xff] }
  0x1d   :  { %4880 = vmatpush3.msra.mxu0 %v53_v15  ;;  %4920 = vmatprep.mubr.msk.f32.mxu1 %vm382_vm1, %v95_v21  ;;  %v116_v1 = vld [vmem:[%s7517_s5 + $0xa8] sm:$0xff]  ;;  %v117_v2 = vld [vmem:[%s7517_s5 + $0xb0] sm:$0xff]  ;;  %v118_v3 = vld [vmem:[%s7517_s5 + $0xb8] sm:$0xff] }
  0x1e   :  { %4881 = vmatprep.subr.mxu0 %v5784_v0  ;;  %v119_v4 = vld [vmem:[%s7517_s5 + $0xc0] sm:$0xff]  ;;  %v120_v5 = vld [vmem:[%s7517_s5 + $0xc8] sm:$0xff]  ;;  %v121_v6 = vld [vmem:[%s7517_s5 + $0xd0] sm:$0xff] }
  0x1f   :  { %4882 = vmatpush3.msra.mxu0 %v52_v16  ;;  %v122_v7 = vld [vmem:[%s7517_s5 + $0xd8] sm:$0xff]  ;;  %v123_v8 = vld [vmem:[%s7517_s5 + $0xe0] sm:$0xff]  ;;  %v124_v9 = vld [vmem:[%s7517_s5 + $0xe8] sm:$0xff] }
  0x20   :  { %4884 = vmatmul.mubr.msk.f32.vlgmr.msra.gmra.mxu0 %vm272_vm2, %v263_v17  ;;  %v125_v10 = vld [vmem:[%s7517_s5 + $0xf0] sm:$0xff]  ;;  %v126_v11 = vld [vmem:[%s7517_s5 + $0xf8] sm:$0xff]  ;;  %v191_v16 = vld [vmem:[#allocation2] sm:$0xff] }
  0x21   :  { %4886 = vmatprep.mubr.msk.f32.mxu0 %vm5785_vm0, %v5784_v0  ;;  %v192_v17 = vld [vmem:[#allocation2 + $0x8] sm:$0xff] }
  0x24   :  { %4887 = vmatmul.mubr.msk.f32.gmra.mxu0 %vm272_vm2, %v264_v18 }
  0x25   :  { %4889 = vmatprep.mubr.msk.f32.mxu0 %vm5785_vm0, %v5784_v0 }
  0x28   :  { %4890 = vmatmul.mubr.msk.f32.gmra.mxu0 %vm272_vm2, %v265_v19 }
  0x29   :  { %4892 = vmatprep.mubr.msk.f32.mxu0 %vm5785_vm0, %v5784_v0 }
  0x2c   :  { %4893 = vmatmul.mubr.msk.f32.gmra.mxu0 %vm272_vm2, %v266_v20 }
  0x2d   :  { %4895 = vmatprep.mubr.msk.f32.mxu0 %vm5785_vm0, %v5784_v0  ;;  %v115_v0 = vld [vmem:[%s7517_s5 + $0xa0] sm:$0xff] }
  0x30   :  { %4896 = vmatmul.mubr.msk.f32.gmra.mxu0 %vm272_vm2, %v267_v22  ;;  %v193_v22 = vld [vmem:[#allocation2 + $0x10] sm:$0xff] }
  0xd8   :  { %v4908_v23 = vpop.f32.mrf.mxu1 }
  0xd9   :  { %v467_v30 = vadd.f32 %v4908_v23, %v4265_v25  ;;  %v194_v23 = vld [vmem:[#allocation2 + $0x18] sm:$0xff] }
  0xda   :  { %v461_v24 = vpop.f32.mrf.mxu1 }
  0xdb   :  { %v462_v32 = vadd.f32 %v4265_v25, %v461_v24 }
  0xdc   :  { %v4911_v26 = vpop.f32.mrf.mxu1 }
  0xdd   :  { %v477_v27 = vadd.f32 %v4911_v26, %v4265_v25  ;;  %v196_v26 = vld [vmem:[#allocation2 + $0x28] sm:$0xff] }
  0xde   :  { %v471_v28 = vpop.f32.mrf.mxu1 }
  0xdf   :  { %v472_v29 = vadd.f32 %v4265_v25, %v471_v28  ;;  %4912 = vmatprep.subr.mxu1 %v477_v27 }
  0xe0   :  { %4913 = vmatpush3.msra.mxu1 %v477_v27  ;;  %v354_v31 = vpop.f32.mrf.mxu0 }
  0xe1   :  { %4914 = vmatprep.subr.mxu1 %v472_v29  ;;  %v355_v52 = vadd.f32 %v5940_v41, %v354_v31 }
  0xe2   :  { %4915 = vmatpush3.msra.mxu1 %v472_v29  ;;  %v4885_v33 = vpop.f32.mrf.mxu0  ;;  %v195_v29 = vld [vmem:[#allocation2 + $0x20] sm:$0xff] }
  0xe3   :  { %4916 = vmatprep.subr.mxu1 %v467_v30  ;;  %v198_v33 = vld [vmem:[#allocation2 + $0x38] sm:$0xff] }
  0xe4   :  { %4917 = vmatpush3.msra.mxu1 %v467_v30  ;;  %v359_v36 = vpop.f32.mrf.mxu0 }
  0xe5   :  { %4918 = vmatprep.subr.mxu1 %v462_v32  ;;  %v360_v51 = vadd.f32 %v5940_v41, %v359_v36 }
  0xe6   :  { %4919 = vmatpush3.msra.mxu1 %v462_v32  ;;  %v4888_v37 = vpop.f32.mrf.mxu0 }
  0xe7   :  { %4921 = vmatmul.mubr.msk.f32.vlgmr.msra.gmra.mxu1 %vm382_vm1, %v96_v34 }
  0xe8   :  { %4923 = vmatprep.mubr.msk.f32.mxu1 %vm382_vm1, %v97_v35  ;;  %v364_v40 = vpop.f32.mrf.mxu0  ;;  %v197_v35 = vld [vmem:[#allocation2 + $0x30] sm:$0xff] }
  0xe9   :  { %v365_v46 = vadd.f32 %v5940_v41, %v364_v40 }
  0xea   :  { %v4891_v42 = vpop.f32.mrf.mxu0 }
  0xeb   :  { %4924 = vmatmul.mubr.msk.f32.gmra.mxu1 %vm382_vm1, %v98_v38 }
  0xec   :  { %4926 = vmatprep.mubr.msk.f32.mxu1 %vm382_vm1, %v99_v39  ;;  %v369_v45 = vpop.f32.mrf.mxu0  ;;  %v200_v39 = vld [vmem:[#allocation2 + $0x48] sm:$0xff] }
  0xed   :  { %v370_v47 = vadd.f32 %v5940_v41, %v369_v45  ;;  %v202_v45 = vld [vmem:[#allocation2 + $0x58] sm:$0xff] }
  0xee   :  { %v4894_v48 = vpop.f32.mrf.mxu0 }
  0xef   :  { %4927 = vmatmul.mubr.msk.f32.gmra.mxu1 %vm382_vm1, %v100_v43  ;;  %4968 = vmatprep.subr.msk.mxu0 %vm272_vm2, %v370_v47 }
  0xf0   :  { %4929 = vmatprep.mubr.msk.f32.mxu1 %vm382_vm1, %v101_v44  ;;  %4969 = vmatpush3.xpose.msk.msra.mxu0 %vm272_vm2, %v370_v47  ;;  %v374_v12 = vpop.f32.mrf.mxu0 }
  0xf1   :  { %5024 = vmatprep.subr.mxu1 %v370_v47  ;;  %4970 = vmatprep.subr.msk.mxu0 %vm272_vm2, %v365_v46  ;;  %v6064_v13 = vadd.f32 %v5940_v41, %v374_v12  ;;  %v199_v41 = vld [vmem:[#allocation2 + $0x40] sm:$0xff] }
  0xf2   :  { %5025 = vmatpush3.msra.mxu1 %v370_v47  ;;  %v4897_v14 = vpop.f32.mrf.mxu0  ;;  %v201_v47 = vld [vmem:[#allocation2 + $0x50] sm:$0xff] }
  0xf3   :  { %4930 = vmatmul.mubr.msk.f32.gmra.mxu1 %vm382_vm1, %v102_v49  ;;  %5026 = vmatprep.subr.mxu1 %v365_v46  ;;  %v211_v14 = vld [vmem:[#allocation2 + $0xa0] sm:$0xff] }
  0xf4   :  { %4932 = vmatprep.mubr.msk.f32.mxu1 %vm382_vm1, %v103_v50  ;;  %5027 = vmatpush3.msra.mxu1 %v365_v46 }
  0xf5   :  { %4971 = vmatpush3.xpose.msk.msra.mxu0 %vm272_vm2, %v365_v46  ;;  %5028 = vmatprep.subr.mxu1 %v360_v51 }
  0xf6   :  { %4972 = vmatprep.subr.msk.mxu0 %vm272_vm2, %v360_v51  ;;  %5029 = vmatpush3.msra.mxu1 %v360_v51 }
  0xf7   :  { %4933 = vmatmul.mubr.msk.f32.gmra.mxu1 %vm382_vm1, %v104_v53  ;;  %5030 = vmatprep.subr.mxu1 %v355_v52  ;;  %v203_v53 = vld [vmem:[#allocation2 + $0x60] sm:$0xff] }
  0xf8   :  { %4935 = vmatprep.mubr.msk.f32.mxu1 %vm382_vm1, %v105_v54  ;;  %5031 = vmatpush3.msra.mxu1 %v355_v52 }
  0xf9   :  { %4973 = vmatpush3.xpose.msk.msra.mxu0 %vm272_vm2, %v360_v51  ;;  %5172 = vmatprep.subr.msk.mxu1 %vm272_vm2, %v6064_v13  ;;  %v204_v51 = vld [vmem:[#allocation2 + $0x68] sm:$0xff] }
  0xfa   :  { %4974 = vmatprep.subr.msk.mxu0 %vm272_vm2, %v355_v52 }
  0xfb   :  { %4936 = vmatmul.mubr.msk.f32.gmra.mxu1 %vm382_vm1, %v106_v55 }
  0xfc   :  { %4938 = vmatprep.mubr.msk.f32.mxu1 %vm382_vm1, %v107_v56 }
  0xfd   :  { %4975 = vmatpush3.xpose.msk.msra.mxu0 %vm272_vm2, %v355_v52 }
  0xff   :  { %4939 = vmatmul.mubr.msk.f32.gmra.mxu1 %vm382_vm1, %v108_v57  ;;  %v206_v57 = vld [vmem:[#allocation2 + $0x78] sm:$0xff] }
 0x100   :  { %4941 = vmatprep.mubr.msk.f32.mxu1 %vm382_vm1, %v109_v58 }
 0x103   :  { %4942 = vmatmul.mubr.msk.f32.gmra.mxu1 %vm382_vm1, %v110_v59  ;;  %v205_v59 = vld [vmem:[#allocation2 + $0x70] sm:$0xff] }
 0x104   :  { %4944 = vmatprep.mubr.msk.f32.mxu1 %vm382_vm1, %v111_v60 }
 0x107   :  { %4945 = vmatmul.mubr.msk.f32.gmra.mxu1 %vm382_vm1, %v112_v61 }
 0x108   :  { %4947 = vmatprep.mubr.msk.f32.mxu1 %vm382_vm1, %v113_v62 }
 0x10b   :  { %4948 = vmatmul.mubr.msk.f32.gmra.mxu1 %vm382_vm1, %v114_v63  ;;  %v208_v63 = vld [vmem:[#allocation2 + $0x88] sm:$0xff] }
 0x10c   :  { %4950 = vmatprep.mubr.msk.f32.mxu1 %vm382_vm1, %v115_v0 }
 0x10f   :  { %4951 = vmatmul.mubr.msk.f32.gmra.mxu1 %vm382_vm1, %v116_v1  ;;  %v207_v1 = vld [vmem:[#allocation2 + $0x80] sm:$0xff] }
 0x110   :  { %4953 = vmatprep.mubr.msk.f32.mxu1 %vm382_vm1, %v117_v2 }
 0x113   :  { %4954 = vmatmul.mubr.msk.f32.gmra.mxu1 %vm382_vm1, %v118_v3 }
 0x114   :  { %4956 = vmatprep.mubr.msk.f32.mxu1 %vm382_vm1, %v119_v4 }
 0x117   :  { %4957 = vmatmul.mubr.msk.f32.gmra.mxu1 %vm382_vm1, %v120_v5  ;;  %v210_v5 = vld [vmem:[#allocation2 + $0x98] sm:$0xff] }
 0x118   :  { %4959 = vmatprep.mubr.msk.f32.mxu1 %vm382_vm1, %v121_v6 }
 0x11b   :  { %4960 = vmatmul.mubr.msk.f32.gmra.mxu1 %vm382_vm1, %v122_v7  ;;  %v209_v7 = vld [vmem:[#allocation2 + $0x90] sm:$0xff] }
 0x11c   :  { %4962 = vmatprep.mubr.msk.f32.mxu1 %vm382_vm1, %v123_v8 }
 0x11f   :  { %4963 = vmatmul.mubr.msk.f32.gmra.mxu1 %vm382_vm1, %v124_v9 }
 0x120   :  { %4965 = vmatprep.mubr.msk.f32.mxu1 %vm382_vm1, %v125_v10 }
 0x123   :  { %4966 = vmatmul.mubr.msk.f32.gmra.mxu1 %vm382_vm1, %v126_v11  ;;  %v212_v11 = vld [vmem:[#allocation2 + $0xa8] sm:$0xff] }
 0x1a7   :  { %v4922_v15 = vpop.f32.mrf.mxu1 }
 0x1a8   :  { %v802_v20 = vmul.f32 %v4922_v15, %v192_v17 }
 0x1a9   :  { %v642_v18 = vpop.f32.mrf.mxu1 }
 0x1aa   :  { %v801_v19 = vmul.f32 %v642_v18, %v191_v16  ;;  %v214_v18 = vld [vmem:[#allocation2 + $0xb8] sm:$0xff] }
 0x1ab   :  { %v4925_v21 = vpop.f32.mrf.mxu1 }
 0x1ac   :  { %4976 = vmatprep.mubr.msk.f32.mxu0 %vm272_vm2, %v801_v19  ;;  %v804_v27 = vmul.f32 %v4925_v21, %v194_v23 }
 0x1ad   :  { %v652_v24 = vpop.f32.mrf.mxu1  ;;  %4977 = vmatmul.mubr.msk.f32.vlgmr.msra.gmra.mxu0 %vm272_vm2, %v802_v20  ;;  %v213_v20 = vld [vmem:[#allocation2 + $0xb0] sm:$0xff] }
 0x1ae   :  { %v803_v25 = vmul.f32 %v652_v24, %v193_v22  ;;  %v216_v24 = vld [vmem:[#allocation2 + $0xc8] sm:$0xff] }
 0x1af   :  { %v4928_v28 = vpop.f32.mrf.mxu1 }
 0x1b0   :  { %4979 = vmatprep.mubr.msk.f32.mxu0 %vm272_vm2, %v803_v25  ;;  %v806_v30 = vmul.f32 %v4928_v28, %v196_v26  ;;  %v215_v26 = vld [vmem:[#allocation2 + $0xc0] sm:$0xff] }
 0x1b1   :  { %v662_v31 = vpop.f32.mrf.mxu1  ;;  %4980 = vmatmul.mubr.msk.f32.gmra.mxu0 %vm272_vm2, %v804_v27 }
 0x1b2   :  { %v805_v32 = vmul.f32 %v662_v31, %v195_v29 }
 0x1b3   :  { %v4931_v34 = vpop.f32.mrf.mxu1 }
 0x1b4   :  { %4982 = vmatprep.mubr.msk.f32.mxu0 %vm272_vm2, %v805_v32  ;;  %v808_v36 = vmul.f32 %v4931_v34, %v198_v33  ;;  %v217_v32 = vld [vmem:[#allocation2 + $0xd0] sm:$0xff] }
 0x1b5   :  { %v672_v37 = vpop.f32.mrf.mxu1  ;;  %4983 = vmatmul.mubr.msk.f32.gmra.mxu0 %vm272_vm2, %v806_v30  ;;  %v218_v30 = vld [vmem:[#allocation2 + $0xd8] sm:$0xff] }
 0x1b6   :  { %v807_v38 = vmul.f32 %v672_v37, %v197_v35 }
 0x1b7   :  { %v4934_v40 = vpop.f32.mrf.mxu1 }
 0x1b8   :  { %4985 = vmatprep.mubr.msk.f32.mxu0 %vm272_vm2, %v807_v38  ;;  %v810_v42 = vmul.f32 %v4934_v40, %v200_v39  ;;  %v219_v38 = vld [vmem:[#allocation2 + $0xe0] sm:$0xff] }
 0x1b9   :  { %v682_v43 = vpop.f32.mrf.mxu1  ;;  %4986 = vmatmul.mubr.msk.f32.gmra.mxu0 %vm272_vm2, %v808_v36  ;;  %v220_v36 = vld [vmem:[#allocation2 + $0xe8] sm:$0xff] }
 0x1ba   :  { %v809_v44 = vmul.f32 %v682_v43, %v199_v41 }
 0x1bb   :  { %v4937_v46 = vpop.f32.mrf.mxu1 }
 0x1bc   :  { %4988 = vmatprep.mubr.msk.f32.mxu0 %vm272_vm2, %v809_v44  ;;  %v812_v48 = vmul.f32 %v4937_v46, %v202_v45  ;;  %v221_v44 = vld [vmem:[#allocation2 + $0xf0] sm:$0xff] }
 0x1bd   :  { %v692_v49 = vpop.f32.mrf.mxu1  ;;  %4989 = vmatmul.mubr.msk.f32.gmra.mxu0 %vm272_vm2, %v810_v42  ;;  %v222_v42 = vld [vmem:[#allocation2 + $0xf8] sm:$0xff] }
 0x1be   :  { %v811_v50 = vmul.f32 %v692_v49, %v201_v47  ;;  %v127_v49 = vld [vmem:[%s7517_s5 + $0x100] sm:$0xff] }
 0x1bf   :  { %v4940_v52 = vpop.f32.mrf.mxu1 }
 0x1c0   :  { %4991 = vmatprep.mubr.msk.f32.mxu0 %vm272_vm2, %v811_v50  ;;  %v814_v54 = vmul.f32 %v4940_v52, %v204_v51  ;;  %v128_v50 = vld [vmem:[%s7517_s5 + $0x108] sm:$0xff] }
 0x1c1   :  { %v702_v55 = vpop.f32.mrf.mxu1  ;;  %4992 = vmatmul.mubr.msk.f32.gmra.mxu0 %vm272_vm2, %v812_v48 }
 0x1c2   :  { %v813_v56 = vmul.f32 %v702_v55, %v203_v53 }
 0x1c3   :  { %v4943_v58 = vpop.f32.mrf.mxu1 }
 0x1c4   :  { %4994 = vmatprep.mubr.msk.f32.mxu0 %vm272_vm2, %v813_v56  ;;  %v816_v60 = vmul.f32 %v4943_v58, %v206_v57  ;;  %v130_v57 = vld [vmem:[%s7517_s5 + $0x118] sm:$0xff] }
 0x1c5   :  { %v712_v61 = vpop.f32.mrf.mxu1  ;;  %4995 = vmatmul.mubr.msk.f32.gmra.mxu0 %vm272_vm2, %v814_v54  ;;  %v129_v54 = vld [vmem:[%s7517_s5 + $0x110] sm:$0xff] }
 0x1c6   :  { %v815_v62 = vmul.f32 %v712_v61, %v205_v59  ;;  %v131_v61 = vld [vmem:[%s7517_s5 + $0x120] sm:$0xff] }
 0x1c7   :  { %v4946_v0 = vpop.f32.mrf.mxu1 }
 0x1c8   :  { %4997 = vmatprep.mubr.msk.f32.mxu0 %vm272_vm2, %v815_v62  ;;  %v818_v2 = vmul.f32 %v4946_v0, %v208_v63 }
 0x1c9   :  { %v722_v3 = vpop.f32.mrf.mxu1  ;;  %4998 = vmatmul.mubr.msk.f32.gmra.mxu0 %vm272_vm2, %v816_v60 }
 0x1ca   :  { %v817_v4 = vmul.f32 %v722_v3, %v207_v1  ;;  %v132_v1 = vld [vmem:[%s7517_s5 + $0x128] sm:$0xff] }
 0x1cb   :  { %v4949_v6 = vpop.f32.mrf.mxu1 }
 0x1cc   :  { %5000 = vmatprep.mubr.msk.f32.mxu0 %vm272_vm2, %v817_v4  ;;  %v820_v8 = vmul.f32 %v4949_v6, %v210_v5  ;;  %v133_v5 = vld [vmem:[%s7517_s5 + $0x130] sm:$0xff] }
 0x1cd   :  { %v732_v9 = vpop.f32.mrf.mxu1  ;;  %5001 = vmatmul.mubr.msk.f32.gmra.mxu0 %vm272_vm2, %v818_v2 }
 0x1ce   :  { %v819_v10 = vmul.f32 %v732_v9, %v209_v7  ;;  %v134_v9 = vld [vmem:[%s7517_s5 + $0x138] sm:$0xff] }
 0x1cf   :  { %v4952_v12 = vpop.f32.mrf.mxu1 }
 0x1d0   :  { %5003 = vmatprep.mubr.msk.f32.mxu0 %vm272_vm2, %v819_v10  ;;  %v822_v15 = vmul.f32 %v4952_v12, %v212_v11 }
 0x1d1   :  { %v742_v16 = vpop.f32.mrf.mxu1  ;;  %5004 = vmatmul.mubr.msk.f32.gmra.mxu0 %vm272_vm2, %v820_v8 }
 0x1d2   :  { %v821_v17 = vmul.f32 %v742_v16, %v211_v14  ;;  %v135_v14 = vld [vmem:[%s7517_s5 + $0x140] sm:$0xff] }
 0x1d3   :  { %v4955_v19 = vpop.f32.mrf.mxu1 }
 0x1d4   :  { %5006 = vmatprep.mubr.msk.f32.mxu0 %vm272_vm2, %v821_v17  ;;  %v824_v21 = vmul.f32 %v4955_v19, %v214_v18  ;;  %v136_v18 = vld [vmem:[%s7517_s5 + $0x148] sm:$0xff] }
 0x1d5   :  { %v752_v22 = vpop.f32.mrf.mxu1  ;;  %5007 = vmatmul.mubr.msk.f32.gmra.mxu0 %vm272_vm2, %v822_v15 }
 0x1d6   :  { %v823_v23 = vmul.f32 %v752_v22, %v213_v20  ;;  %v137_v22 = vld [vmem:[%s7517_s5 + $0x150] sm:$0xff] }
 0x1d7   :  { %v4958_v25 = vpop.f32.mrf.mxu1 }
 0x1d8   :  { %5009 = vmatprep.mubr.msk.f32.mxu0 %vm272_vm2, %v823_v23  ;;  %v826_v27 = vmul.f32 %v4958_v25, %v216_v24 }
 0x1d9   :  { %v762_v28 = vpop.f32.mrf.mxu1  ;;  %5010 = vmatmul.mubr.msk.f32.gmra.mxu0 %vm272_vm2, %v824_v21 }
 0x1da   :  { %v825_v29 = vmul.f32 %v762_v28, %v215_v26  ;;  %v138_v26 = vld [vmem:[%s7517_s5 + $0x158] sm:$0xff] }
 0x1db   :  { %v4961_v31 = vpop.f32.mrf.mxu1 }
 0x1dc   :  { %5012 = vmatprep.mubr.msk.f32.mxu0 %vm272_vm2, %v825_v29  ;;  %v828_v33 = vmul.f32 %v4961_v31, %v218_v30  ;;  %v139_v30 = vld [vmem:[%s7517_s5 + $0x160] sm:$0xff] }
 0x1dd   :  { %v772_v34 = vpop.f32.mrf.mxu1  ;;  %5013 = vmatmul.mubr.msk.f32.gmra.mxu0 %vm272_vm2, %v826_v27 }
 0x1de   :  { %v827_v35 = vmul.f32 %v772_v34, %v217_v32  ;;  %v140_v34 = vld [vmem:[%s7517_s5 + $0x168] sm:$0xff] }
 0x1df   :  { %v4964_v37 = vpop.f32.mrf.mxu1 }
 0x1e0   :  { %5015 = vmatprep.mubr.msk.f32.mxu0 %vm272_vm2, %v827_v35  ;;  %v830_v39 = vmul.f32 %v4964_v37, %v220_v36 }
 0x1e1   :  { %v782_v40 = vpop.f32.mrf.mxu1  ;;  %5016 = vmatmul.mubr.msk.f32.gmra.mxu0 %vm272_vm2, %v828_v33 }
 0x1e2   :  { %v829_v41 = vmul.f32 %v782_v40, %v219_v38  ;;  %v141_v38 = vld [vmem:[%s7517_s5 + $0x170] sm:$0xff] }
 0x1e3   :  { %v4967_v43 = vpop.f32.mrf.mxu1 }
 0x1e4   :  { %5018 = vmatprep.mubr.msk.f32.mxu0 %vm272_vm2, %v829_v41  ;;  %v832_v45 = vmul.f32 %v4967_v43, %v222_v42  ;;  %v142_v42 = vld [vmem:[%s7517_s5 + $0x178] sm:$0xff] }
 0x1e5   :  { %v792_v46 = vpop.f32.mrf.mxu1  ;;  %5019 = vmatmul.mubr.msk.f32.gmra.mxu0 %vm272_vm2, %v830_v39 }
 0x1e6   :  { %v831_v47 = vmul.f32 %v792_v46, %v221_v44  ;;  %v143_v46 = vld [vmem:[%s7517_s5 + $0x180] sm:$0xff] }
 0x1e8   :  { %5021 = vmatprep.mubr.msk.f32.mxu0 %vm272_vm2, %v831_v47 }
 0x1e9   :  { %5022 = vmatmul.mubr.msk.f32.gmra.mxu0 %vm272_vm2, %v832_v45 }
 0x26d   :  { %v4978_v48 = vpop.f32.mrf.mxu0 }
 0x26e   :  { %v6111_v55 = vadd.f32 %v4978_v48, %v128_v50  ;;  %v144_v50 = vld [vmem:[%s7517_s5 + $0x188] sm:$0xff] }
 0x26f   :  { %v1007_v51 = vpop.f32.mrf.mxu0 }
 0x270   :  { %v6106_v52 = vadd.f32 %v1007_v51, %v127_v49  ;;  %v1169_v63 = vsel %vm382_vm1, %v6111_v55, -inf }
 0x271   :  { %v4981_v53 = vpop.f32.mrf.mxu0 }
 0x272   :  { %v1166_v56 = vsel %vm382_vm1, %v6106_v52, -inf  ;;  %v6123_v62 = vadd.f32 %v4981_v53, %v130_v57 }
 0x273   :  { %1167 = vmax.xlane.f32.xlu0 %v1166_v56  ;;  %v1017_v58 = vpop.f32.mrf.mxu0  ;;  %v145_v56 = vld [vmem:[%s7517_s5 + $0x190] sm:$0xff] }
 0x274   :  { %v6118_v59 = vadd.f32 %v1017_v58, %v129_v54  ;;  %v1175_v7 = vsel %vm382_vm1, %v6123_v62, -inf }
 0x275   :  { %v4984_v60 = vpop.f32.mrf.mxu0 }
 0x276   :  { %v1172_v0 = vsel %vm382_vm1, %v6118_v59, -inf  ;;  %v6137_v6 = vadd.f32 %v4984_v60, %v132_v1 }
 0x277   :  { %1170 = vmax.xlane.f32.xlu0 %v1169_v63  ;;  %1173 = vmax.xlane.f32.xlu1 %v1172_v0  ;;  %v1027_v2 = vpop.f32.mrf.mxu0 }
 0x278   :  { %v6132_v3 = vadd.f32 %v1027_v2, %v131_v61  ;;  %v1181_v16 = vsel %vm382_vm1, %v6137_v6, -inf  ;;  %v146_v61 = vld [vmem:[%s7517_s5 + $0x198] sm:$0xff]  ;;  %v147_v2 = vld [vmem:[%s7517_s5 + $0x1a0] sm:$0xff] }
 0x279   :  { %v4987_v4 = vpop.f32.mrf.mxu0 }
 0x27a   :  { %v1178_v8 = vsel %vm382_vm1, %v6132_v3, -inf  ;;  %v6151_v15 = vadd.f32 %v4987_v4, %v134_v9 }
 0x27b   :  { %1176 = vmax.xlane.f32.xlu1 %v1175_v7  ;;  %1179 = vmax.xlane.f32.xlu0 %v1178_v8  ;;  %v1037_v10 = vpop.f32.mrf.mxu0  ;;  %v148_v8 = vld [vmem:[%s7517_s5 + $0x1a8] sm:$0xff] }
 0x27c   :  { %v6146_v11 = vadd.f32 %v1037_v10, %v133_v5  ;;  %v1187_v24 = vsel %vm382_vm1, %v6151_v15, -inf }
 0x27d   :  { %v4990_v12 = vpop.f32.mrf.mxu0 }
 0x27e   :  { %v1184_v17 = vsel %vm382_vm1, %v6146_v11, -inf  ;;  %v6165_v23 = vadd.f32 %v4990_v12, %v136_v18 }
 0x27f   :  { %1182 = vmax.xlane.f32.xlu1 %v1181_v16  ;;  %1185 = vmax.xlane.f32.xlu0 %v1184_v17  ;;  %v1047_v19 = vpop.f32.mrf.mxu0 }
 0x280   :  { %v6160_v20 = vadd.f32 %v1047_v19, %v135_v14  ;;  %v1193_v32 = vsel %vm382_vm1, %v6165_v23, -inf  ;;  %v149_v14 = vld [vmem:[%s7517_s5 + $0x1b0] sm:$0xff]  ;;  %v150_v19 = vld [vmem:[%s7517_s5 + $0x1b8] sm:$0xff] }
 0x281   :  { %v4993_v21 = vpop.f32.mrf.mxu0 }
 0x282   :  { %v1190_v25 = vsel %vm382_vm1, %v6160_v20, -inf  ;;  %v6179_v31 = vadd.f32 %v4993_v21, %v138_v26 }
 0x283   :  { %1188 = vmax.xlane.f32.xlu1 %v1187_v24  ;;  %1191 = vmax.xlane.f32.xlu0 %v1190_v25  ;;  %v1057_v27 = vpop.f32.mrf.mxu0  ;;  %v151_v25 = vld [vmem:[%s7517_s5 + $0x1c0] sm:$0xff] }
 0x284   :  { %v6174_v28 = vadd.f32 %v1057_v27, %v137_v22  ;;  %v1199_v40 = vsel %vm382_vm1, %v6179_v31, -inf }
 0x285   :  { %v4996_v29 = vpop.f32.mrf.mxu0 }
 0x286   :  { %v1196_v33 = vsel %vm382_vm1, %v6174_v28, -inf  ;;  %v6193_v39 = vadd.f32 %v4996_v29, %v140_v34 }
 0x287   :  { %1194 = vmax.xlane.f32.xlu1 %v1193_v32  ;;  %1197 = vmax.xlane.f32.xlu0 %v1196_v33  ;;  %v1067_v35 = vpop.f32.mrf.mxu0 }
 0x288   :  { %v6188_v36 = vadd.f32 %v1067_v35, %v139_v30  ;;  %v1205_v48 = vsel %vm382_vm1, %v6193_v39, -inf  ;;  %v152_v30 = vld [vmem:[%s7517_s5 + $0x1c8] sm:$0xff]  ;;  %v153_v35 = vld [vmem:[%s7517_s5 + $0x1d0] sm:$0xff] }
 0x289   :  { %v4999_v37 = vpop.f32.mrf.mxu0 }
 0x28a   :  { %v1202_v41 = vsel %vm382_vm1, %v6188_v36, -inf  ;;  %v6207_v47 = vadd.f32 %v4999_v37, %v142_v42 }
 0x28b   :  { %1200 = vmax.xlane.f32.xlu1 %v1199_v40  ;;  %1203 = vmax.xlane.f32.xlu0 %v1202_v41  ;;  %v1077_v43 = vpop.f32.mrf.mxu0  ;;  %v154_v41 = vld [vmem:[%s7517_s5 + $0x1d8] sm:$0xff] }
 0x28c   :  { %v6202_v44 = vadd.f32 %v1077_v43, %v141_v38  ;;  %v1211_v58 = vsel %vm382_vm1, %v6207_v47, -inf }
 0x28d   :  { %v5002_v45 = vpop.f32.mrf.mxu0 }
 0x28e   :  { %v1208_v49 = vsel %vm382_vm1, %v6202_v44, -inf  ;;  %v6221_v57 = vadd.f32 %v5002_v45, %v144_v50 }
 0x28f   :  { %1206 = vmax.xlane.f32.xlu1 %v1205_v48  ;;  %1209 = vmax.xlane.f32.xlu0 %v1208_v49  ;;  %v1087_v51 = vpop.f32.mrf.mxu0 }
 0x290   :  { %v6216_v53 = vadd.f32 %v1087_v51, %v143_v46  ;;  %v1217_v5 = vsel %vm382_vm1, %v6221_v57, -inf  ;;  %v155_v46 = vld [vmem:[%s7517_s5 + $0x1e0] sm:$0xff]  ;;  %v156_v51 = vld [vmem:[%s7517_s5 + $0x1e8] sm:$0xff] }
 0x291   :  { %v5005_v54 = vpop.f32.mrf.mxu0 }
 0x292   :  { %v1214_v60 = vsel %vm382_vm1, %v6216_v53, -inf  ;;  %v6235_v4 = vadd.f32 %v5005_v54, %v146_v61 }
 0x293   :  { %1212 = vmax.xlane.f32.xlu1 %v1211_v58  ;;  %1215 = vmax.xlane.f32.xlu0 %v1214_v60  ;;  %v1097_v63 = vpop.f32.mrf.mxu0  ;;  %v157_v60 = vld [vmem:[%s7517_s5 + $0x1f0] sm:$0xff] }
 0x294   :  { %v6230_v0 = vadd.f32 %v1097_v63, %v145_v56  ;;  %v1223_v17 = vsel %vm382_vm1, %v6235_v4, -inf }
 0x295   :  { %v5008_v1 = vpop.f32.mrf.mxu0 }
 0x296   :  { %v1220_v7 = vsel %vm382_vm1, %v6230_v0, -inf  ;;  %v6249_v16 = vadd.f32 %v5008_v1, %v148_v8 }
 0x297   :  { %1218 = vmax.xlane.f32.xlu1 %v1217_v5  ;;  %1221 = vmax.xlane.f32.xlu0 %v1220_v7  ;;  %v1107_v9 = vpop.f32.mrf.mxu0 }
 0x298   :  { %v6244_v10 = vadd.f32 %v1107_v9, %v147_v2  ;;  %v1229_v27 = vsel %vm382_vm1, %v6249_v16, -inf  ;;  %v158_v2 = vld [vmem:[%s7517_s5 + $0x1f8] sm:$0xff] }
 0x299   :  { %v5011_v12 = vpop.f32.mrf.mxu0 }
 0x29a   :  { %v1226_v18 = vsel %vm382_vm1, %v6244_v10, -inf  ;;  %v6263_v26 = vadd.f32 %v5011_v12, %v150_v19 }
 0x29b   :  { %1224 = vmax.xlane.f32.xlu1 %v1223_v17  ;;  %1227 = vmax.xlane.f32.xlu0 %v1226_v18  ;;  %v1117_v21 = vpop.f32.mrf.mxu0 }
 0x29c   :  { %v6258_v22 = vadd.f32 %v1117_v21, %v149_v14  ;;  %v1235_v38 = vsel %vm382_vm1, %v6263_v26, -inf }
 0x29d   :  { %v5014_v24 = vpop.f32.mrf.mxu0 }
 0x29e   :  { %v1232_v29 = vsel %vm382_vm1, %v6258_v22, -inf  ;;  %v6277_v37 = vadd.f32 %v5014_v24, %v152_v30 }
 0x29f   :  { %1230 = vmax.xlane.f32.xlu1 %v1229_v27  ;;  %1233 = vmax.xlane.f32.xlu0 %v1232_v29  ;;  %v1127_v32 = vpop.f32.mrf.mxu0 }
 0x2a0   :  { %v6272_v33 = vadd.f32 %v1127_v32, %v151_v25  ;;  %v1241_v49 = vsel %vm382_vm1, %v6277_v37, -inf }
 0x2a1   :  { %v5017_v34 = vpop.f32.mrf.mxu0 }
 0x2a2   :  { %v1238_v40 = vsel %vm382_vm1, %v6272_v33, -inf  ;;  %v6291_v48 = vadd.f32 %v5017_v34, %v154_v41 }
 0x2a3   :  { %1236 = vmax.xlane.f32.xlu1 %v1235_v38  ;;  %1239 = vmax.xlane.f32.xlu0 %v1238_v40  ;;  %v1137_v42 = vpop.f32.mrf.mxu0 }
 0x2a4   :  { %v6286_v43 = vadd.f32 %v1137_v42, %v153_v35  ;;  %v1247_v63 = vsel %vm382_vm1, %v6291_v48, -inf }
 0x2a5   :  { %v5020_v45 = vpop.f32.mrf.mxu0 }
 0x2a6   :  { %v1244_v50 = vsel %vm382_vm1, %v6286_v43, -inf  ;;  %v6305_v61 = vadd.f32 %v5020_v45, %v156_v51 }
 0x2a7   :  { %1242 = vmax.xlane.f32.xlu1 %v1241_v49  ;;  %1245 = vmax.xlane.f32.xlu0 %v1244_v50  ;;  %v1147_v54 = vpop.f32.mrf.mxu0 }
 0x2a8   :  { %v6300_v56 = vadd.f32 %v1147_v54, %v155_v46  ;;  %v1253_v9 = vsel %vm382_vm1, %v6305_v61, -inf }
 0x2a9   :  { %v5023_v58 = vpop.f32.mrf.mxu0 }
 0x2aa   :  { %v1250_v1 = vsel %vm382_vm1, %v6300_v56, -inf  ;;  %v6316_v8 = vadd.f32 %v5023_v58, %v158_v2 }
 0x2ab   :  { %1248 = vmax.xlane.f32.xlu1 %v1247_v63  ;;  %1251 = vmax.xlane.f32.xlu0 %v1250_v1  ;;  %v1157_v5 = vpop.f32.mrf.mxu0 }
 0x2ac   :  { %v6314_v7 = vadd.f32 %v1157_v5, %v157_v60  ;;  %v1259_v14 = vsel %vm382_vm1, %v6316_v8, -inf }
 0x2ae   :  { %v1256_v12 = vsel %vm382_vm1, %v6314_v7, -inf }
 0x2af   :  { %1254 = vmax.xlane.f32.xlu1 %v1253_v9  ;;  %1257 = vmax.xlane.f32.xlu0 %v1256_v12 }
 0x2b3   :  { %1260 = vmax.xlane.f32.xlu1 %v1259_v14 }
 0x2fc   :  { %v1168_v17 = vpop.xlane.xlu0 %1167 }
 0x2fd   :  { %v1262_v18 = vsub.f32 %v6106_v52, %v1168_v17 }
 0x2ff   :  { %v1294_v19 = vmul.f32 1.442695, %v1262_v18 }
 0x300   :  { %v1171_v21 = vpop.xlane.xlu0 %1170  ;;  %v1174_v24 = vpop.xlane.xlu1 %1173 }
 0x301   :  { %5336 = vpow2.f32 %v1294_v19  ;;  %v1263_v25 = vsub.f32 %v6111_v55, %v1171_v21  ;;  %v1264_v27 = vsub.f32 %v6118_v59, %v1174_v24 }
 0x303   :  { %v1296_v29 = vmul.f32 1.442695, %v1263_v25  ;;  %v1298_v30 = vmul.f32 1.442695, %v1264_v27 }
 0x304   :  { %v1177_v32 = vpop.xlane.xlu1 %1176  ;;  %v1180_v34 = vpop.xlane.xlu0 %1179 }
 0x305   :  { %5338 = vpow2.f32 %v1296_v29  ;;  %v1265_v35 = vsub.f32 %v6123_v62, %v1177_v32  ;;  %v1266_v38 = vsub.f32 %v6132_v3, %v1180_v34 }
 0x306   :  { %5340 = vpow2.f32 %v1298_v30 }
 0x307   :  { %v1300_v40 = vmul.f32 1.442695, %v1265_v35  ;;  %v1302_v52 = vmul.f32 1.442695, %v1266_v38 }
 0x308   :  { %v1183_v41 = vpop.xlane.xlu1 %1182  ;;  %v1186_v42 = vpop.xlane.xlu0 %1185 }
 0x309   :  { %5342 = vpow2.f32 %v1300_v40  ;;  %v1267_v45 = vsub.f32 %v6137_v6, %v1183_v41  ;;  %v1268_v55 = vsub.f32 %v6146_v11, %v1186_v42 }
 0x30a   :  { %5344 = vpow2.f32 %v1302_v52 }
 0x30b   :  { %v1304_v59 = vmul.f32 1.442695, %v1267_v45  ;;  %v1306_v46 = vmul.f32 1.442695, %v1268_v55 }
 0x30c   :  { %v1189_v49 = vpop.xlane.xlu1 %1188  ;;  %v1192_v50 = vpop.xlane.xlu0 %1191 }
 0x30d   :  { %5346 = vpow2.f32 %v1304_v59  ;;  %v1269_v62 = vsub.f32 %v6151_v15, %v1189_v49  ;;  %v1270_v3 = vsub.f32 %v6160_v20, %v1192_v50 }
 0x30e   :  { %v6333_v51 = vpop.eup %5336  ;;  %5348 = vpow2.f32 %v1306_v46 }
 0x30f   :  { %v1308_v54 = vmul.f32 1.442695, %v1269_v62  ;;  %v1310_v58 = vmul.f32 1.442695, %v1270_v3  ;;  %v1358_v6 = vsel %vm382_vm1, %v6333_v51, 0.0 }
 0x310   :  { %v1195_v60 = vpop.xlane.xlu1 %1194  ;;  %v1198_v11 = vpop.xlane.xlu0 %1197  ;;  %1359 = vadd.xlane.f32.xlu0 %v1358_v6 }
 0x311   :  { %5350 = vpow2.f32 %v1308_v54  ;;  %v1271_v63 = vsub.f32 %v6165_v23, %v1195_v60  ;;  %v1272_v1 = vsub.f32 %v6174_v28, %v1198_v11 }
 0x312   :  { %v6339_v2 = vpop.eup %5338  ;;  %5352 = vpow2.f32 %v1310_v58 }
 0x313   :  { %v6341_v15 = vpop.eup %5340  ;;  %v1312_v20 = vmul.f32 1.442695, %v1271_v63  ;;  %v1314_v5 = vmul.f32 1.442695, %v1272_v1  ;;  %v1361_v9 = vsel %vm382_vm1, %v6339_v2, 0.0 }
 0x314   :  { %v1201_v12 = vpop.xlane.xlu1 %1200  ;;  %v1204_v14 = vpop.xlane.xlu0 %1203  ;;  %1362 = vadd.xlane.f32.xlu1 %v1361_v9  ;;  %v1364_v17 = vsel %vm382_vm1, %v6341_v15, 0.0 }
 0x315   :  { %5354 = vpow2.f32 %v1312_v20  ;;  %v1273_v23 = vsub.f32 %v6179_v31, %v1201_v12  ;;  %v1274_v28 = vsub.f32 %v6188_v36, %v1204_v14  ;;  %1365 = vadd.xlane.f32.xlu0 %v1364_v17 }
 0x316   :  { %v6349_v18 = vpop.eup %5342  ;;  %5356 = vpow2.f32 %v1314_v5 }
 0x317   :  { %v6351_v19 = vpop.eup %5344  ;;  %v1316_v21 = vmul.f32 1.442695, %v1273_v23  ;;  %v1318_v24 = vmul.f32 1.442695, %v1274_v28  ;;  %v1367_v25 = vsel %vm382_vm1, %v6349_v18, 0.0 }
 0x318   :  { %v1207_v27 = vpop.xlane.xlu1 %1206  ;;  %v1210_v29 = vpop.xlane.xlu0 %1209  ;;  %1368 = vadd.xlane.f32.xlu1 %v1367_v25  ;;  %v1370_v30 = vsel %vm382_vm1, %v6351_v19, 0.0 }
 0x319   :  { %5358 = vpow2.f32 %v1316_v21  ;;  %v1275_v31 = vsub.f32 %v6193_v39, %v1207_v27  ;;  %v1276_v36 = vsub.f32 %v6202_v44, %v1210_v29  ;;  %1371 = vadd.xlane.f32.xlu0 %v1370_v30 }
 0x31a   :  { %v6359_v32 = vpop.eup %5346  ;;  %5360 = vpow2.f32 %v1318_v24 }
 0x31b   :  { %v6361_v34 = vpop.eup %5348  ;;  %v1320_v35 = vmul.f32 1.442695, %v1275_v31  ;;  %v1322_v38 = vmul.f32 1.442695, %v1276_v36  ;;  %v1373_v40 = vsel %vm382_vm1, %v6359_v32, 0.0 }
 0x31c   :  { %v1213_v52 = vpop.xlane.xlu1 %1212  ;;  %v1216_v41 = vpop.xlane.xlu0 %1215  ;;  %1374 = vadd.xlane.f32.xlu1 %v1373_v40  ;;  %v1376_v42 = vsel %vm382_vm1, %v6361_v34, 0.0 }
 0x31d   :  { %5362 = vpow2.f32 %v1320_v35  ;;  %v1277_v39 = vsub.f32 %v6207_v47, %v1213_v52  ;;  %v1278_v44 = vsub.f32 %v6216_v53, %v1216_v41  ;;  %1377 = vadd.xlane.f32.xlu0 %v1376_v42 }
 0x31e   :  { %v6369_v45 = vpop.eup %5350  ;;  %5364 = vpow2.f32 %v1322_v38 }
 0x31f   :  { %v6371_v55 = vpop.eup %5352  ;;  %v1324_v59 = vmul.f32 1.442695, %v1277_v39  ;;  %v1326_v46 = vmul.f32 1.442695, %v1278_v44  ;;  %v1379_v49 = vsel %vm382_vm1, %v6369_v45, 0.0 }
 0x320   :  { %v1219_v50 = vpop.xlane.xlu1 %1218  ;;  %v1222_v62 = vpop.xlane.xlu0 %1221  ;;  %1380 = vadd.xlane.f32.xlu1 %v1379_v49  ;;  %v1382_v3 = vsel %vm382_vm1, %v6371_v55, 0.0 }
 0x321   :  { %5366 = vpow2.f32 %v1324_v59  ;;  %v1279_v47 = vsub.f32 %v6221_v57, %v1219_v50  ;;  %v1280_v53 = vsub.f32 %v6230_v0, %v1222_v62  ;;  %1383 = vadd.xlane.f32.xlu0 %v1382_v3 }
 0x322   :  { %v6379_v54 = vpop.eup %5354  ;;  %5368 = vpow2.f32 %v1326_v46 }
 0x323   :  { %v6381_v58 = vpop.eup %5356  ;;  %v1328_v6 = vmul.f32 1.442695, %v1279_v47  ;;  %v1330_v60 = vmul.f32 1.442695, %v1280_v53  ;;  %v1385_v11 = vsel %vm382_vm1, %v6379_v54, 0.0 }
 0x324   :  { %v1225_v63 = vpop.xlane.xlu1 %1224  ;;  %v1228_v1 = vpop.xlane.xlu0 %1227  ;;  %1386 = vadd.xlane.f32.xlu1 %v1385_v11  ;;  %v1388_v20 = vsel %vm382_vm1, %v6381_v58, 0.0 }
 0x325   :  { %5370 = vpow2.f32 %v1328_v6  ;;  %v1281_v57 = vsub.f32 %v6235_v4, %v1225_v63  ;;  %v1282_v0 = vsub.f32 %v6244_v10, %v1228_v1  ;;  %1389 = vadd.xlane.f32.xlu0 %v1388_v20 }
 0x326   :  { %v6389_v5 = vpop.eup %5358  ;;  %5372 = vpow2.f32 %v1330_v60 }
 0x327   :  { %v6391_v9 = vpop.eup %5360  ;;  %v1332_v12 = vmul.f32 1.442695, %v1281_v57  ;;  %v1334_v14 = vmul.f32 1.442695, %v1282_v0  ;;  %v1391_v17 = vsel %vm382_vm1, %v6389_v5, 0.0 }
 0x328   :  { %v1231_v23 = vpop.xlane.xlu1 %1230  ;;  %v1234_v28 = vpop.xlane.xlu0 %1233  ;;  %1392 = vadd.xlane.f32.xlu1 %v1391_v17  ;;  %v1394_v21 = vsel %vm382_vm1, %v6391_v9, 0.0 }
 0x329   :  { %5374 = vpow2.f32 %v1332_v12  ;;  %v1283_v4 = vsub.f32 %v6249_v16, %v1231_v23  ;;  %v1284_v10 = vsub.f32 %v6258_v22, %v1234_v28  ;;  %1395 = vadd.xlane.f32.xlu0 %v1394_v21 }
 0x32a   :  { %v6399_v24 = vpop.eup %5362  ;;  %5376 = vpow2.f32 %v1334_v14 }
 0x32b   :  { %v6401_v25 = vpop.eup %5364  ;;  %v1336_v27 = vmul.f32 1.442695, %v1283_v4  ;;  %v1338_v29 = vmul.f32 1.442695, %v1284_v10  ;;  %v1397_v30 = vsel %vm382_vm1, %v6399_v24, 0.0 }
 0x32c   :  { %v1237_v31 = vpop.xlane.xlu1 %1236  ;;  %v1240_v36 = vpop.xlane.xlu0 %1239  ;;  %1398 = vadd.xlane.f32.xlu1 %v1397_v30  ;;  %v1400_v35 = vsel %vm382_vm1, %v6401_v25, 0.0 }
 0x32d   :  { %5378 = vpow2.f32 %v1336_v27  ;;  %v1285_v16 = vsub.f32 %v6263_v26, %v1237_v31  ;;  %v1286_v22 = vsub.f32 %v6272_v33, %v1240_v36  ;;  %1401 = vadd.xlane.f32.xlu0 %v1400_v35 }
 0x32e   :  { %v6409_v38 = vpop.eup %5366  ;;  %5380 = vpow2.f32 %v1338_v29 }
 0x32f   :  { %v6411_v40 = vpop.eup %5368  ;;  %v1340_v52 = vmul.f32 1.442695, %v1285_v16  ;;  %v1342_v41 = vmul.f32 1.442695, %v1286_v22  ;;  %v1403_v42 = vsel %vm382_vm1, %v6409_v38, 0.0 }
 0x330   :  { %v1243_v39 = vpop.xlane.xlu1 %1242  ;;  %v1246_v44 = vpop.xlane.xlu0 %1245  ;;  %1404 = vadd.xlane.f32.xlu1 %v1403_v42  ;;  %v1406_v59 = vsel %vm382_vm1, %v6411_v40, 0.0 }
 0x331   :  { %5382 = vpow2.f32 %v1340_v52  ;;  %v1287_v26 = vsub.f32 %v6277_v37, %v1243_v39  ;;  %v1288_v33 = vsub.f32 %v6286_v43, %v1246_v44  ;;  %1407 = vadd.xlane.f32.xlu0 %v1406_v59 }
 0x332   :  { %v6419_v46 = vpop.eup %5370  ;;  %5384 = vpow2.f32 %v1342_v41 }
 0x333   :  { %v6421_v49 = vpop.eup %5372  ;;  %v1344_v50 = vmul.f32 1.442695, %v1287_v26  ;;  %v1346_v62 = vmul.f32 1.442695, %v1288_v33  ;;  %v1409_v3 = vsel %vm382_vm1, %v6419_v46, 0.0 }
 0x334   :  { %v1249_v47 = vpop.xlane.xlu1 %1248  ;;  %v1252_v53 = vpop.xlane.xlu0 %1251  ;;  %1410 = vadd.xlane.f32.xlu1 %v1409_v3  ;;  %v1412_v6 = vsel %vm382_vm1, %v6421_v49, 0.0 }
 0x335   :  { %5386 = vpow2.f32 %v1344_v50  ;;  %v1289_v37 = vsub.f32 %v6291_v48, %v1249_v47  ;;  %v1290_v43 = vsub.f32 %v6300_v56, %v1252_v53  ;;  %1413 = vadd.xlane.f32.xlu0 %v1412_v6 }
 0x336   :  { %v6429_v60 = vpop.eup %5374  ;;  %5388 = vpow2.f32 %v1346_v62 }
 0x337   :  { %v6431_v11 = vpop.eup %5376  ;;  %v1348_v63 = vmul.f32 1.442695, %v1289_v37  ;;  %v1350_v1 = vmul.f32 1.442695, %v1290_v43  ;;  %v1415_v20 = vsel %vm382_vm1, %v6429_v60, 0.0 }
 0x338   :  { %v1255_v57 = vpop.xlane.xlu1 %1254  ;;  %1416 = vadd.xlane.f32.xlu1 %v1415_v20  ;;  %v1418_v0 = vsel %vm382_vm1, %v6431_v11, 0.0  ;;  %v1258_v12 = vpop.xlane.xlu0 %1257 }
 0x339   :  { %5390 = vpow2.f32 %v1348_v63  ;;  %v1291_v48 = vsub.f32 %v6305_v61, %v1255_v57  ;;  %1419 = vadd.xlane.f32.xlu0 %v1418_v0  ;;  %v1292_v56 = vsub.f32 %v6314_v7, %v1258_v12 }
 0x33a   :  { %v6439_v14 = vpop.eup %5378  ;;  %5392 = vpow2.f32 %v1350_v1 }
 0x33b   :  { %v6441_v17 = vpop.eup %5380  ;;  %v1352_v23 = vmul.f32 1.442695, %v1291_v48  ;;  %v1354_v28 = vmul.f32 1.442695, %v1292_v56  ;;  %v1421_v21 = vsel %vm382_vm1, %v6439_v14, 0.0 }
 0x33c   :  { %1422 = vadd.xlane.f32.xlu1 %v1421_v21  ;;  %v1261_v4 = vpop.xlane.xlu1 %1260  ;;  %v1424_v10 = vsel %vm382_vm1, %v6441_v17, 0.0 }
 0x33d   :  { %5394 = vpow2.f32 %v1352_v23  ;;  %v1293_v61 = vsub.f32 %v6316_v8, %v1261_v4  ;;  %1425 = vadd.xlane.f32.xlu0 %v1424_v10 }
 0x33e   :  { %v6448_v7 = vpop.eup %5382  ;;  %5396 = vpow2.f32 %v1354_v28 }
 0x33f   :  { %v6450_v27 = vpop.eup %5384  ;;  %v1356_v29 = vmul.f32 1.442695, %v1293_v61  ;;  %v1427_v30 = vsel %vm382_vm1, %v6448_v7, 0.0 }
 0x340   :  { %1428 = vadd.xlane.f32.xlu1 %v1427_v30  ;;  %v1430_v31 = vsel %vm382_vm1, %v6450_v27, 0.0 }
 0x341   :  { %5398 = vpow2.f32 %v1356_v29  ;;  %1431 = vadd.xlane.f32.xlu0 %v1430_v31 }
 0x342   :  { %v6456_v36 = vpop.eup %5386 }
 0x343   :  { %v6458_v35 = vpop.eup %5388  ;;  %v1433_v8 = vsel %vm382_vm1, %v6456_v36, 0.0 }
 0x344   :  { %1434 = vadd.xlane.f32.xlu1 %v1433_v8  ;;  %v1436_v16 = vsel %vm382_vm1, %v6458_v35, 0.0 }
 0x345   :  { %1437 = vadd.xlane.f32.xlu0 %v1436_v16 }
 0x346   :  { %v6464_v22 = vpop.eup %5390 }
 0x347   :  { %v6466_v52 = vpop.eup %5392  ;;  %v1439_v41 = vsel %vm382_vm1, %v6464_v22, 0.0 }
 0x348   :  { %1440 = vadd.xlane.f32.xlu1 %v1439_v41  ;;  %v1442_v42 = vsel %vm382_vm1, %v6466_v52, 0.0 }
 0x349   :  { %1443 = vadd.xlane.f32.xlu0 %v1442_v42 }
 0x34a   :  { %v6472_v39 = vpop.eup %5394 }
 0x34b   :  { %v6474_v44 = vpop.eup %5396  ;;  %v1445_v59 = vsel %vm382_vm1, %v6472_v39, 0.0 }
 0x34c   :  { %1446 = vadd.xlane.f32.xlu1 %v1445_v59  ;;  %v1448_v26 = vsel %vm382_vm1, %v6474_v44, 0.0 }
 0x34d   :  { %1449 = vadd.xlane.f32.xlu0 %v1448_v26 }
 0x34e   :  { %v6480_v33 = vpop.eup %5398 }
 0x34f   :  { %v1451_v50 = vsel %vm382_vm1, %v6480_v33, 0.0 }
 0x350   :  { %1452 = vadd.xlane.f32.xlu1 %v1451_v50 }
 0x399   :  { %v1360_v62 = vpop.xlane.xlu0 %1359 }
 0x39a   :  { %5400 = vrcp.f32 %v1360_v62 }
 0x39d   :  { %v1363_v3 = vpop.xlane.xlu1 %1362 }
 0x39e   :  { %5402 = vrcp.f32 %v1363_v3  ;;  %v1366_v47 = vpop.xlane.xlu0 %1365 }
 0x39f   :  { %5404 = vrcp.f32 %v1366_v47 }
 0x3a1   :  { %v1369_v53 = vpop.xlane.xlu1 %1368 }
 0x3a2   :  { %5406 = vrcp.f32 %v1369_v53  ;;  %v1372_v6 = vpop.xlane.xlu0 %1371 }
 0x3a3   :  { %5408 = vrcp.f32 %v1372_v6 }
 0x3a5   :  { %v1375_v37 = vpop.xlane.xlu1 %1374 }
 0x3a6   :  { %5410 = vrcp.f32 %v1375_v37  ;;  %v1378_v43 = vpop.xlane.xlu0 %1377 }
 0x3a7   :  { %v5401_v63 = vpop.eup %5400  ;;  %5412 = vrcp.f32 %v1378_v43 }
 0x3a8   :  { %v1486_v1 = vmul.f32 %v5401_v63, %v1360_v62 }
 0x3a9   :  { %v1381_v20 = vpop.xlane.xlu1 %1380 }
 0x3aa   :  { %v1518_v57 = vsub.f32 2.0, %v1486_v1  ;;  %5414 = vrcp.f32 %v1381_v20  ;;  %v1384_v0 = vpop.xlane.xlu0 %1383 }
 0x3ab   :  { %v5403_v12 = vpop.eup %5402  ;;  %5416 = vrcp.f32 %v1384_v0 }
 0x3ac   :  { %v5405_v48 = vpop.eup %5404  ;;  %v1550_v56 = vmul.f32 %v5401_v63, %v1518_v57  ;;  %v1487_v23 = vmul.f32 %v5403_v12, %v1363_v3 }
 0x3ad   :  { %v1488_v28 = vmul.f32 %v5405_v48, %v1366_v47  ;;  %v1387_v21 = vpop.xlane.xlu1 %1386 }
 0x3ae   :  { %v1519_v4 = vsub.f32 2.0, %v1487_v23  ;;  %5418 = vrcp.f32 %v1387_v21  ;;  %v1390_v10 = vpop.xlane.xlu0 %1389  ;;  %v1582_v61 = vmul.f32 %v6333_v51, %v1550_v56 }
 0x3af   :  { %v5407_v29 = vpop.eup %5406  ;;  %v1520_v30 = vsub.f32 2.0, %v1488_v28  ;;  %5420 = vrcp.f32 %v1390_v10 }
 0x3b0   :  { %v5409_v31 = vpop.eup %5408  ;;  %v1551_v8 = vmul.f32 %v5403_v12, %v1519_v4  ;;  %v1489_v16 = vmul.f32 %v5407_v29, %v1369_v53  ;;  %5032 = vmatprep.mubr.msk.f32.mxu1 %vm382_vm1, %v1582_v61 }
 0x3b1   :  { %v1552_v41 = vmul.f32 %v5405_v48, %v1520_v30  ;;  %v1490_v42 = vmul.f32 %v5409_v31, %v1372_v6  ;;  %v1393_v59 = vpop.xlane.xlu1 %1392 }
 0x3b2   :  { %v1583_v26 = vmul.f32 %v6339_v2, %v1551_v8  ;;  %v1521_v50 = vsub.f32 2.0, %v1489_v16  ;;  %5422 = vrcp.f32 %v1393_v59  ;;  %v1396_v62 = vpop.xlane.xlu0 %1395 }
 0x3b3   :  { %v5411_v3 = vpop.eup %5410  ;;  %v1522_v47 = vsub.f32 2.0, %v1490_v42  ;;  %5424 = vrcp.f32 %v1396_v62  ;;  %v1584_v51 = vmul.f32 %v6341_v15, %v1552_v41 }
 0x3b4   :  { %v5413_v63 = vpop.eup %5412  ;;  %v1553_v1 = vmul.f32 %v5407_v29, %v1521_v50  ;;  %v1491_v57 = vmul.f32 %v5411_v3, %v1375_v37  ;;  %5033 = vmatmul.mubr.msk.f32.vlgmr.msra.gmra.mxu1 %vm382_vm1, %v1583_v26 }
 0x3b5   :  { %v1554_v53 = vmul.f32 %v5409_v31, %v1522_v47  ;;  %v1492_v12 = vmul.f32 %v5413_v63, %v1378_v43  ;;  %5173 = vmatpush3.xpose.msk.msra.mxu1 %vm272_vm2, %v6064_v13  ;;  %v1399_v6 = vpop.xlane.xlu1 %1398  ;;  %5035 = vmatprep.mubr.msk.f32.mxu1 %vm382_vm1, %v1584_v51 }
 0x3b6   :  { %v1523_v2 = vsub.f32 2.0, %v1491_v57  ;;  %5426 = vrcp.f32 %v1399_v6  ;;  %v1402_v48 = vpop.xlane.xlu0 %1401  ;;  %v1585_v56 = vmul.f32 %v6349_v18, %v1553_v1 }
 0x3b7   :  { %v5415_v23 = vpop.eup %5414  ;;  %v1524_v15 = vsub.f32 2.0, %v1492_v12  ;;  %5428 = vrcp.f32 %v1402_v48  ;;  %v1586_v37 = vmul.f32 %v6351_v19, %v1554_v53 }
 0x3b8   :  { %v5417_v28 = vpop.eup %5416  ;;  %v1555_v4 = vmul.f32 %v5411_v3, %v1523_v2  ;;  %v1493_v61 = vmul.f32 %v5415_v23, %v1381_v20  ;;  %5036 = vmatmul.mubr.msk.f32.gmra.mxu1 %vm382_vm1, %v1585_v56 }
 0x3b9   :  { %v1556_v43 = vmul.f32 %v5413_v63, %v1524_v15  ;;  %v1494_v29 = vmul.f32 %v5417_v28, %v1384_v0  ;;  %v1405_v30 = vpop.xlane.xlu1 %1404  ;;  %5038 = vmatprep.mubr.msk.f32.mxu1 %vm382_vm1, %v1586_v37 }
 0x3ba   :  { %v1525_v31 = vsub.f32 2.0, %v1493_v61  ;;  %5430 = vrcp.f32 %v1405_v30  ;;  %v1408_v8 = vpop.xlane.xlu0 %1407  ;;  %v1587_v18 = vmul.f32 %v6359_v32, %v1555_v4 }
 0x3bb   :  { %v5419_v16 = vpop.eup %5418  ;;  %v1526_v41 = vsub.f32 2.0, %v1494_v29  ;;  %5432 = vrcp.f32 %v1408_v8  ;;  %v1588_v19 = vmul.f32 %v6361_v34, %v1556_v43 }
 0x3bc   :  { %v5421_v42 = vpop.eup %5420  ;;  %v1557_v26 = vmul.f32 %v5415_v23, %v1525_v31  ;;  %v1495_v20 = vmul.f32 %v5419_v16, %v1387_v21  ;;  %5039 = vmatmul.mubr.msk.f32.gmra.mxu1 %vm382_vm1, %v1587_v18 }
 0x3bd   :  { %v1558_v50 = vmul.f32 %v5417_v28, %v1526_v41  ;;  %v1496_v0 = vmul.f32 %v5421_v42, %v1390_v10  ;;  %v1411_v3 = vpop.xlane.xlu1 %1410  ;;  %5041 = vmatprep.mubr.msk.f32.mxu1 %vm382_vm1, %v1588_v19 }
 0x3be   :  { %v1527_v47 = vsub.f32 2.0, %v1495_v20  ;;  %5434 = vrcp.f32 %v1411_v3  ;;  %v1414_v51 = vpop.xlane.xlu0 %1413  ;;  %v1589_v32 = vmul.f32 %v6369_v45, %v1557_v26 }
 0x3bf   :  { %v5423_v63 = vpop.eup %5422  ;;  %v1528_v1 = vsub.f32 2.0, %v1496_v0  ;;  %5436 = vrcp.f32 %v1414_v51  ;;  %v1590_v34 = vmul.f32 %v6371_v55, %v1558_v50 }
 0x3c0   :  { %v5425_v57 = vpop.eup %5424  ;;  %v1559_v53 = vmul.f32 %v5419_v16, %v1527_v47  ;;  %v1497_v21 = vmul.f32 %v5423_v63, %v1393_v59  ;;  %5042 = vmatmul.mubr.msk.f32.gmra.mxu1 %vm382_vm1, %v1589_v32 }
 0x3c1   :  { %v1560_v12 = vmul.f32 %v5421_v42, %v1528_v1  ;;  %v1498_v10 = vmul.f32 %v5425_v57, %v1396_v62  ;;  %v1417_v2 = vpop.xlane.xlu1 %1416  ;;  %5044 = vmatprep.mubr.msk.f32.mxu1 %vm382_vm1, %v1590_v34 }
 0x3c2   :  { %v1529_v56 = vsub.f32 2.0, %v1497_v21  ;;  %5438 = vrcp.f32 %v1417_v2  ;;  %v1420_v23 = vpop.xlane.xlu0 %1419  ;;  %v1591_v45 = vmul.f32 %v6379_v54, %v1559_v53 }
 0x3c3   :  { %v5427_v15 = vpop.eup %5426  ;;  %v1530_v37 = vsub.f32 2.0, %v1498_v10  ;;  %5440 = vrcp.f32 %v1420_v23  ;;  %v1592_v55 = vmul.f32 %v6381_v58, %v1560_v12 }
 0x3c4   :  { %v5429_v28 = vpop.eup %5428  ;;  %v1561_v4 = vmul.f32 %v5423_v63, %v1529_v56  ;;  %v1499_v59 = vmul.f32 %v5427_v15, %v1399_v6  ;;  %5045 = vmatmul.mubr.msk.f32.gmra.mxu1 %vm382_vm1, %v1591_v45 }
 0x3c5   :  { %v1562_v61 = vmul.f32 %v5425_v57, %v1530_v37  ;;  %v1500_v62 = vmul.f32 %v5429_v28, %v1402_v48  ;;  %v1423_v43 = vpop.xlane.xlu1 %1422  ;;  %5047 = vmatprep.mubr.msk.f32.mxu1 %vm382_vm1, %v1592_v55 }
 0x3c6   :  { %v1531_v29 = vsub.f32 2.0, %v1499_v59  ;;  %5442 = vrcp.f32 %v1423_v43  ;;  %v1426_v31 = vpop.xlane.xlu0 %1425  ;;  %v1593_v54 = vmul.f32 %v6389_v5, %v1561_v4 }
 0x3c7   :  { %v5431_v18 = vpop.eup %5430  ;;  %v1532_v16 = vsub.f32 2.0, %v1500_v62  ;;  %5444 = vrcp.f32 %v1426_v31  ;;  %v1594_v58 = vmul.f32 %v6391_v9, %v1562_v61 }
 0x3c8   :  { %v5433_v41 = vpop.eup %5432  ;;  %v1563_v19 = vmul.f32 %v5427_v15, %v1531_v29  ;;  %v1501_v6 = vmul.f32 %v5431_v18, %v1405_v30  ;;  %5048 = vmatmul.mubr.msk.f32.gmra.mxu1 %vm382_vm1, %v1593_v54 }
 0x3c9   :  { %v1564_v42 = vmul.f32 %v5429_v28, %v1532_v16  ;;  %v1502_v48 = vmul.f32 %v5433_v41, %v1408_v8  ;;  %v1429_v26 = vpop.xlane.xlu1 %1428  ;;  %5050 = vmatprep.mubr.msk.f32.mxu1 %vm382_vm1, %v1594_v58 }
 0x3ca   :  { %v1533_v20 = vsub.f32 2.0, %v1501_v6  ;;  %5446 = vrcp.f32 %v1429_v26  ;;  %v1432_v50 = vpop.xlane.xlu0 %1431  ;;  %v1595_v5 = vmul.f32 %v6399_v24, %v1563_v19 }
 0x3cb   :  { %v5435_v0 = vpop.eup %5434  ;;  %v1534_v47 = vsub.f32 2.0, %v1502_v48  ;;  %5448 = vrcp.f32 %v1432_v50  ;;  %v1596_v9 = vmul.f32 %v6401_v25, %v1564_v42 }
 0x3cc   :  { %v5437_v32 = vpop.eup %5436  ;;  %v1565_v63 = vmul.f32 %v5431_v18, %v1533_v20  ;;  %v1503_v30 = vmul.f32 %v5435_v0, %v1411_v3  ;;  %5051 = vmatmul.mubr.msk.f32.gmra.mxu1 %vm382_vm1, %v1595_v5 }
 0x3cd   :  { %v1566_v1 = vmul.f32 %v5433_v41, %v1534_v47  ;;  %v1504_v8 = vmul.f32 %v5437_v32, %v1414_v51  ;;  %v1435_v34 = vpop.xlane.xlu1 %1434  ;;  %5053 = vmatprep.mubr.msk.f32.mxu1 %vm382_vm1, %v1596_v9 }
 0x3ce   :  { %v1535_v57 = vsub.f32 2.0, %v1503_v30  ;;  %5450 = vrcp.f32 %v1435_v34  ;;  %v1438_v53 = vpop.xlane.xlu0 %1437  ;;  %v1597_v24 = vmul.f32 %v6409_v38, %v1565_v63 }
 0x3cf   :  { %v5439_v21 = vpop.eup %5438  ;;  %v1536_v12 = vsub.f32 2.0, %v1504_v8  ;;  %5452 = vrcp.f32 %v1438_v53  ;;  %v1598_v25 = vmul.f32 %v6411_v40, %v1566_v1 }
 0x3d0   :  { %v5441_v10 = vpop.eup %5440  ;;  %v1567_v56 = vmul.f32 %v5435_v0, %v1535_v57  ;;  %v1505_v3 = vmul.f32 %v5439_v21, %v1417_v2  ;;  %5054 = vmatmul.mubr.msk.f32.gmra.mxu1 %vm382_vm1, %v1597_v24 }
 0x3d1   :  { %v1568_v45 = vmul.f32 %v5437_v32, %v1536_v12  ;;  %v1506_v51 = vmul.f32 %v5441_v10, %v1420_v23  ;;  %v1441_v15 = vpop.xlane.xlu1 %1440  ;;  %5056 = vmatprep.mubr.msk.f32.mxu1 %vm382_vm1, %v1598_v25 }
 0x3d2   :  { %v1537_v37 = vsub.f32 2.0, %v1505_v3  ;;  %5454 = vrcp.f32 %v1441_v15  ;;  %v1444_v55 = vpop.xlane.xlu0 %1443  ;;  %v1599_v38 = vmul.f32 %v6419_v46, %v1567_v56 }
 0x3d3   :  { %v5443_v28 = vpop.eup %5442  ;;  %v1538_v4 = vsub.f32 2.0, %v1506_v51  ;;  %5456 = vrcp.f32 %v1444_v55  ;;  %v1600_v40 = vmul.f32 %v6421_v49, %v1568_v45 }
 0x3d4   :  { %v5445_v59 = vpop.eup %5444  ;;  %v1569_v61 = vmul.f32 %v5439_v21, %v1537_v37  ;;  %v1507_v2 = vmul.f32 %v5443_v28, %v1423_v43  ;;  %5057 = vmatmul.mubr.msk.f32.gmra.mxu1 %vm382_vm1, %v1599_v38 }
 0x3d5   :  { %v1570_v62 = vmul.f32 %v5441_v10, %v1538_v4  ;;  %v1508_v23 = vmul.f32 %v5445_v59, %v1426_v31  ;;  %v1447_v29 = vpop.xlane.xlu1 %1446  ;;  %5059 = vmatprep.mubr.msk.f32.mxu1 %vm382_vm1, %v1600_v40 }
 0x3d6   :  { %v1539_v54 = vsub.f32 2.0, %v1507_v2  ;;  %5458 = vrcp.f32 %v1447_v29  ;;  %v1450_v18 = vpop.xlane.xlu0 %1449  ;;  %v1601_v46 = vmul.f32 %v6429_v60, %v1569_v61 }
 0x3d7   :  { %v5447_v16 = vpop.eup %5446  ;;  %v1540_v58 = vsub.f32 2.0, %v1508_v23  ;;  %5460 = vrcp.f32 %v1450_v18  ;;  %v1602_v49 = vmul.f32 %v6431_v11, %v1570_v62 }
 0x3d8   :  { %v5449_v41 = vpop.eup %5448  ;;  %v1571_v19 = vmul.f32 %v5443_v28, %v1539_v54  ;;  %v1509_v43 = vmul.f32 %v5447_v16, %v1429_v26  ;;  %5060 = vmatmul.mubr.msk.f32.gmra.mxu1 %vm382_vm1, %v1601_v46 }
 0x3d9   :  { %v1572_v6 = vmul.f32 %v5445_v59, %v1540_v58  ;;  %v1510_v31 = vmul.f32 %v5449_v41, %v1432_v50  ;;  %v1453_v42 = vpop.xlane.xlu1 %1452  ;;  %5062 = vmatprep.mubr.msk.f32.mxu1 %vm382_vm1, %v1602_v49 }
 0x3da   :  { %v1541_v48 = vsub.f32 2.0, %v1509_v43  ;;  %5462 = vrcp.f32 %v1453_v42  ;;  %v1603_v20 = vmul.f32 %v6439_v14, %v1571_v19 }
 0x3db   :  { %v5451_v60 = vpop.eup %5450  ;;  %v1604_v5 = vmul.f32 %v6441_v17, %v1572_v6  ;;  %v1542_v0 = vsub.f32 2.0, %v1510_v31 }
 0x3dc   :  { %v5453_v47 = vpop.eup %5452  ;;  %v1573_v11 = vmul.f32 %v5447_v16, %v1541_v48  ;;  %v1511_v9 = vmul.f32 %v5451_v60, %v1435_v34  ;;  %5063 = vmatmul.mubr.msk.f32.gmra.mxu1 %vm382_vm1, %v1603_v20 }
 0x3dd   :  { %v1574_v26 = vmul.f32 %v5449_v41, %v1542_v0  ;;  %v1512_v32 = vmul.f32 %v5453_v47, %v1438_v53  ;;  %5065 = vmatprep.mubr.msk.f32.mxu1 %vm382_vm1, %v1604_v5 }
 0x3de   :  { %v1605_v50 = vmul.f32 %v6448_v7, %v1573_v11  ;;  %v1543_v63 = vsub.f32 2.0, %v1511_v9 }
 0x3df   :  { %v5455_v30 = vpop.eup %5454  ;;  %v1606_v1 = vmul.f32 %v6450_v27, %v1574_v26  ;;  %v1544_v14 = vsub.f32 2.0, %v1512_v32 }
 0x3e0   :  { %v5457_v8 = vpop.eup %5456  ;;  %v1575_v57 = vmul.f32 %v5451_v60, %v1543_v63  ;;  %v1513_v17 = vmul.f32 %v5455_v30, %v1441_v15  ;;  %5066 = vmatmul.mubr.msk.f32.gmra.mxu1 %vm382_vm1, %v1605_v50  ;;  %v254_v63 = vld [vmem:[#allocation2 + $0x1f8] sm:$0xff] }
 0x3e1   :  { %v1576_v24 = vmul.f32 %v5453_v47, %v1544_v14  ;;  %v1514_v34 = vmul.f32 %v5457_v8, %v1444_v55  ;;  %5068 = vmatprep.mubr.msk.f32.mxu1 %vm382_vm1, %v1606_v1  ;;  %v253_v14 = vld [vmem:[#allocation2 + $0x1f0] sm:$0xff] }
 0x3e2   :  { %v1607_v53 = vmul.f32 %v6456_v36, %v1575_v57  ;;  %v1545_v21 = vsub.f32 2.0, %v1513_v17 }
 0x3e3   :  { %v5459_v12 = vpop.eup %5458  ;;  %v1608_v7 = vmul.f32 %v6458_v35, %v1576_v24  ;;  %v1546_v25 = vsub.f32 2.0, %v1514_v34  ;;  %v252_v24 = vld [vmem:[#allocation2 + $0x1e8] sm:$0xff] }
 0x3e4   :  { %v5461_v10 = vpop.eup %5460  ;;  %v1577_v56 = vmul.f32 %v5455_v30, %v1545_v21  ;;  %v1515_v27 = vmul.f32 %v5459_v12, %v1447_v29  ;;  %5069 = vmatmul.mubr.msk.f32.gmra.mxu1 %vm382_vm1, %v1607_v53  ;;  %v238_v30 = vld [vmem:[#allocation2 + $0x178] sm:$0xff]  ;;  %v236_v53 = vld [vmem:[#allocation2 + $0x168] sm:$0xff] }
 0x3e5   :  { %v1578_v3 = vmul.f32 %v5457_v8, %v1546_v25  ;;  %v1516_v45 = vmul.f32 %v5461_v10, %v1450_v18  ;;  %5071 = vmatprep.mubr.msk.f32.mxu1 %vm382_vm1, %v1608_v7  ;;  %v237_v8 = vld [vmem:[#allocation2 + $0x170] sm:$0xff]  ;;  %v251_v7 = vld [vmem:[#allocation2 + $0x1e0] sm:$0xff] }
 0x3e6   :  { %v1609_v51 = vmul.f32 %v6464_v22, %v1577_v56  ;;  %v1547_v15 = vsub.f32 2.0, %v1515_v27  ;;  %v235_v25 = vld [vmem:[#allocation2 + $0x160] sm:$0xff]  ;;  %v250_v27 = vld [vmem:[#allocation2 + $0x1d8] sm:$0xff] }
 0x3e7   :  { %v5463_v37 = vpop.eup %5462  ;;  %v1610_v36 = vmul.f32 %v6466_v52, %v1578_v3  ;;  %v1548_v55 = vsub.f32 2.0, %v1516_v45  ;;  %v6553_v52 = vld [vmem:[%s7519_s7 + $0x8] sm:$0xff]  ;;  %v234_v3 = vld [vmem:[#allocation2 + $0x158] sm:$0xff] }
 0x3e8   :  { %v1579_v38 = vmul.f32 %v5459_v12, %v1547_v15  ;;  %v1517_v28 = vmul.f32 %v5463_v37, %v1453_v42  ;;  %5072 = vmatmul.mubr.msk.f32.gmra.mxu1 %vm382_vm1, %v1609_v51  ;;  %2031 = vmatprep.mubr.f32.mxu0 %v6553_v52  ;;  %v249_v15 = vld [vmem:[#allocation2 + $0x1d0] sm:$0xff] }
 0x3e9   :  { %v1580_v35 = vmul.f32 %v5461_v10, %v1548_v55  ;;  %5074 = vmatprep.mubr.msk.f32.mxu1 %vm382_vm1, %v1610_v36 }
 0x3ea   :  { %v1611_v4 = vmul.f32 %v6472_v39, %v1579_v38  ;;  %v1549_v40 = vsub.f32 2.0, %v1517_v28  ;;  %v248_v38 = vld [vmem:[#allocation2 + $0x1c8] sm:$0xff] }
 0x3eb   :  { %v1612_v59 = vmul.f32 %v6474_v44, %v1580_v35  ;;  %v232_v28 = vld [vmem:[#allocation2 + $0x148] sm:$0xff] }
 0x3ec   :  { %v1581_v61 = vmul.f32 %v5463_v37, %v1549_v40  ;;  %5075 = vmatmul.mubr.msk.f32.gmra.mxu1 %vm382_vm1, %v1611_v4  ;;  %v233_v37 = vld [vmem:[#allocation2 + $0x150] sm:$0xff]  ;;  %v247_v40 = vld [vmem:[#allocation2 + $0x1c0] sm:$0xff] }
 0x3ed   :  { %5077 = vmatprep.mubr.msk.f32.mxu1 %vm382_vm1, %v1612_v59  ;;  %v231_v59 = vld [vmem:[#allocation2 + $0x140] sm:$0xff] }
 0x3ee   :  { %v1613_v22 = vmul.f32 %v6480_v33, %v1581_v61 }
 0x3f0   :  { %5078 = vmatmul.mubr.msk.f32.gmra.mxu1 %vm382_vm1, %v1613_v22 }
 0x474   :  { %v6556_v39 = vpop.f32.mrf.mxu1 }
 0x476   :  { %v6558_v2 = vpop.f32.mrf.mxu1 }
 0x478   :  { %v6560_v44 = vpop.f32.mrf.mxu1 }
 0x47a   :  { %v6562_v62 = vpop.f32.mrf.mxu1 }
 0x47c   :  { %v6564_v23 = vpop.f32.mrf.mxu1 }
 0x47e   :  { %v6566_v33 = vpop.f32.mrf.mxu1 }
 0x480   :  { %v6568_v29 = vpop.f32.mrf.mxu1 }
 0x482   :  { %v6570_v54 = vpop.f32.mrf.mxu1 }
 0x484   :  { %v6572_v18 = vpop.f32.mrf.mxu1 }
 0x485   :  { %v1944_v22 = vmul.f32 %v6572_v18, %v232_v28 }
 0x486   :  { %v6574_v46 = vpop.f32.mrf.mxu1 }
 0x488   :  { %v5049_v16 = vpop.f32.mrf.mxu1 }
 0x489   :  { %v1946_v55 = vmul.f32 %v5049_v16, %v234_v3  ;;  %v1943_v16 = vmul.f32 %v6574_v46, %v231_v59  ;;  %v69_v3 = vld [vmem:[%s7514_s2 + $0x8] sm:$0xff]  ;;  %v5617_v59 = vld [vmem:[%s7515_s3 + $0x50] sm:$0xff] }
 0x48a   :  { %v1826_v58 = vpop.f32.mrf.mxu1 }
 0x48b   :  { %v1945_v4 = vmul.f32 %v1826_v58, %v233_v37 }
 0x48c   :  { %v5052_v49 = vpop.f32.mrf.mxu1 }
 0x48d   :  { %v1948_v56 = vmul.f32 %v5052_v49, %v236_v53  ;;  %v246_v49 = vld [vmem:[#allocation2 + $0x1b8] sm:$0xff] }
 0x48e   :  { %v1836_v41 = vpop.f32.mrf.mxu1 }
 0x48f   :  { %v1947_v51 = vmul.f32 %v1836_v41, %v235_v25  ;;  %v230_v41 = vld [vmem:[#allocation2 + $0x138] sm:$0xff] }
 0x490   :  { %v5055_v19 = vpop.f32.mrf.mxu1  ;;  %v1942_v58 = vmul.f32 %v6568_v29, %v230_v41  ;;  %v262_v25 = vld [vmem:[%s7519_s7 + $0x38] sm:$0xff] }
 0x491   :  { %v1950_v17 = vmul.f32 %v5055_v19, %v238_v30 }
 0x492   :  { %v1846_v43 = vpop.f32.mrf.mxu1 }
 0x493   :  { %v1949_v12 = vmul.f32 %v1846_v43, %v237_v8  ;;  %v245_v43 = vld [vmem:[#allocation2 + $0x1b0] sm:$0xff] }
 0x494   :  { %v6576_v6 = vpop.f32.mrf.mxu1  ;;  %v225_v8 = vld [vmem:[#allocation2 + $0x110] sm:$0xff] }
 0x496   :  { %v6578_v31 = vpop.f32.mrf.mxu1 }
 0x498   :  { %v6580_v42 = vpop.f32.mrf.mxu1 }
 0x49a   :  { %v6582_v48 = vpop.f32.mrf.mxu1 }
 0x49c   :  { %v6584_v20 = vpop.f32.mrf.mxu1 }
 0x49e   :  { %v6586_v60 = vpop.f32.mrf.mxu1 }
 0x4a0   :  { %v5067_v5 = vpop.f32.mrf.mxu1 }
 0x4a2   :  { %v6588_v0 = vpop.f32.mrf.mxu1 }
 0x4a4   :  { %v5070_v47 = vpop.f32.mrf.mxu1 }
 0x4a5   :  { %v1960_v61 = vmul.f32 %v5070_v47, %v248_v38  ;;  %v228_v47 = vld [vmem:[#allocation2 + $0x128] sm:$0xff] }
 0x4a6   :  { %v1896_v11 = vpop.f32.mrf.mxu1  ;;  %v1940_v30 = vmul.f32 %v6564_v23, %v228_v47 }
 0x4a7   :  { %v1959_v19 = vmul.f32 %v1896_v11, %v247_v40  ;;  %v227_v11 = vld [vmem:[#allocation2 + $0x120] sm:$0xff] }
 0x4a8   :  { %v5073_v9 = vpop.f32.mrf.mxu1 }
 0x4a9   :  { %v1962_v36 = vmul.f32 %v5073_v9, %v250_v27  ;;  %v229_v9 = vld [vmem:[#allocation2 + $0x130] sm:$0xff] }
 0x4aa   :  { %v1906_v26 = vpop.f32.mrf.mxu1  ;;  %v1941_v18 = vmul.f32 %v6570_v54, %v229_v9  ;;  %v70_v27 = vld [vmem:[%s7514_s2 + $0x10] sm:$0xff]  ;;  %v49_v9 = vld [vmem:[%s7512_s0 + $0x28] sm:$0xff] }
 0x4ab   :  { %v1961_v35 = vmul.f32 %v1906_v26, %v249_v15  ;;  %v1958_v26 = vmul.f32 %v5067_v5, %v246_v49  ;;  %v242_v5 = vld [vmem:[#allocation2 + $0x198] sm:$0xff] }
 0x4ac   :  { %v5076_v32 = vpop.f32.mrf.mxu1  ;;  %v1954_v54 = vmul.f32 %v6580_v42, %v242_v5 }
 0x4ad   :  { %v1964_v10 = vmul.f32 %v5076_v32, %v252_v24  ;;  %v244_v32 = vld [vmem:[#allocation2 + $0x1a8] sm:$0xff]  ;;  %v1937_v24 = vmul.f32 %v6562_v62, %v225_v8  ;;  %v75_v62 = vld [vmem:[%s7514_s2 + $0x38] sm:$0xff] }
 0x4ae   :  { %v1916_v50 = vpop.f32.mrf.mxu1  ;;  %v1956_v46 = vmul.f32 %v6584_v20, %v244_v32  ;;  %v240_v20 = vld [vmem:[#allocation2 + $0x188] sm:$0xff]  ;;  %v48_v32 = vld [vmem:[%s7512_s0 + $0x20] sm:$0xff] }
 0x4af   :  { %v1963_v45 = vmul.f32 %v1916_v50, %v251_v7  ;;  %v1957_v50 = vmul.f32 %v6588_v0, %v245_v43  ;;  %v241_v0 = vld [vmem:[#allocation2 + $0x190] sm:$0xff]  ;;  %v259_v7 = vld [vmem:[%s7519_s7 + $0x20] sm:$0xff] }
 0x4b0   :  { %v5079_v1 = vpop.f32.mrf.mxu1  ;;  %v1953_v23 = vmul.f32 %v6582_v48, %v241_v0  ;;  %v255_v48 = vld [vmem:[%s7519_s7] sm:$0xff] }
 0x4b1   :  { %v1966_v57 = vmul.f32 %v5079_v1, %v254_v63  ;;  %v243_v63 = vld [vmem:[#allocation2 + $0x1a0] sm:$0xff]  ;;  %v226_v1 = vld [vmem:[#allocation2 + $0x118] sm:$0xff] }
 0x4b2   :  { %v1926_v34 = vpop.f32.mrf.mxu1  ;;  %v1955_v29 = vmul.f32 %v6586_v60, %v243_v63  ;;  %v239_v60 = vld [vmem:[#allocation2 + $0x180] sm:$0xff] }
 0x4b3   :  { %v1965_v21 = vmul.f32 %v1926_v34, %v253_v14  ;;  %4625 = vmatprep.subr.mxu0 %v1966_v57  ;;  %v1939_v14 = vmul.f32 %v6566_v33, %v227_v11  ;;  %v1938_v57 = vmul.f32 %v6560_v44, %v226_v1  ;;  %v223_v34 = vld [vmem:[#allocation2 + $0x100] sm:$0xff]  ;;  %v1952_v33 = vmul.f32 %v6576_v6, %v240_v20  ;;  %v74_v6 = vld [vmem:[%s7514_s2 + $0x30] sm:$0xff] }
 0x4b4   :  { %4626 = vmatpush3.msra.mxu0 %v1950_v17  ;;  %v224_v17 = vld [vmem:[#allocation2 + $0x108] sm:$0xff]  ;;  %v1951_v42 = vmul.f32 %v6578_v31, %v239_v60  ;;  %v1935_v44 = vmul.f32 %v6558_v2, %v223_v34  ;;  %v257_v2 = vld [vmem:[%s7519_s7 + $0x10] sm:$0xff] }
 0x4b5   :  { %4627 = vmatprep.subr.mxu0 %v1965_v21  ;;  %v1936_v53 = vmul.f32 %v6556_v39, %v224_v17  ;;  %v258_v39 = vld [vmem:[%s7519_s7 + $0x18] sm:$0xff]  ;;  %v73_v31 = vld [vmem:[%s7514_s2 + $0x28] sm:$0xff] }
 0x4b6   :  { %4628 = vmatpush3.msra.mxu0 %v1949_v12  ;;  %v260_v21 = vld [vmem:[%s7519_s7 + $0x28] sm:$0xff]  ;;  %v72_v12 = vld [vmem:[%s7514_s2 + $0x20] sm:$0xff] }
 0x4b7   :  { %4629 = vmatprep.subr.mxu0 %v1964_v10  ;;  %v261_v10 = vld [vmem:[%s7519_s7 + $0x30] sm:$0xff] }
 0x4b8   :  { %4630 = vmatpush3.msra.mxu0 %v1948_v56  ;;  %v71_v56 = vld [vmem:[%s7514_s2 + $0x18] sm:$0xff] }
 0x4b9   :  { %4631 = vmatprep.subr.mxu0 %v1963_v45  ;;  %v68_v45 = vld [vmem:[%s7514_s2] sm:$0xff] }
 0x4ba   :  { %4632 = vmatpush3.msra.mxu0 %v1947_v51  ;;  %v5616_v51 = vld [vmem:[%s7515_s3 + $0x58] sm:$0xff] }
 0x4bb   :  { %4633 = vmatprep.subr.mxu0 %v1962_v36 }
 0x4bc   :  { %4634 = vmatpush3.msra.mxu0 %v1946_v55 }
 0x4bd   :  { %4635 = vmatprep.subr.mxu0 %v1961_v35 }
 0x4be   :  { %4636 = vmatpush3.msra.mxu0 %v1945_v4 }
 0x4bf   :  { %4637 = vmatprep.subr.mxu0 %v1960_v61 }
 0x4c0   :  { %4638 = vmatpush3.msra.mxu0 %v1944_v22  ;;  %v5618_v22 = vld [vmem:[%s7515_s3 + $0x48] sm:$0xff] }
 0x4c1   :  { %4639 = vmatprep.subr.mxu0 %v1959_v19  ;;  %v5619_v19 = vld [vmem:[%s7515_s3 + $0x40] sm:$0xff] }
 0x4c2   :  { %4640 = vmatpush3.msra.mxu0 %v1943_v16  ;;  %v4370_v16 = vld [vmem:[%s7516_s4 + $0x2] ss:$0 sm:$0xff] }
 0x4c3   :  { %4641 = vmatprep.subr.mxu0 %v1958_v26 }
 0x4c4   :  { %4642 = vmatpush3.msra.mxu0 %v1942_v58 }
 0x4c5   :  { %4643 = vmatprep.subr.mxu0 %v1957_v50 }
 0x4c6   :  { %4644 = vmatpush3.msra.mxu0 %v1941_v18 }
 0x4c7   :  { %4645 = vmatprep.subr.mxu0 %v1956_v46 }
 0x4c8   :  { %4646 = vmatpush3.msra.mxu0 %v1940_v30  ;;  %v51_v30 = vld [vmem:[%s7512_s0 + $0x38] sm:$0xff] }
 0x4c9   :  { %4647 = vmatprep.subr.mxu0 %v1955_v29  ;;  %v50_v29 = vld [vmem:[%s7512_s0 + $0x30] sm:$0xff] }
 0x4ca   :  { %4648 = vmatpush3.msra.mxu0 %v1939_v14 }
 0x4cb   :  { %4649 = vmatprep.subr.mxu0 %v1954_v54 }
 0x4cc   :  { %4650 = vmatpush3.msra.mxu0 %v1938_v57 }
 0x4cd   :  { %4651 = vmatprep.subr.mxu0 %v1953_v23 }
 0x4ce   :  { %4652 = vmatpush3.msra.mxu0 %v1937_v24 }
 0x4cf   :  { %4653 = vmatprep.subr.mxu0 %v1952_v33 }
 0x4d0   :  { %4654 = vmatpush3.msra.mxu0 %v1936_v53 }
 0x4d1   :  { %4655 = vmatprep.subr.mxu0 %v1951_v42 }
 0x4d2   :  { %4656 = vmatpush3.msra.mxu0 %v1935_v44 }
 0x4d3   :  { %2032 = vmatmul.mubr.f32.vlgmr.msra.gmra.mxu0 %v255_v48  ;;  %5080 = vmatprep.subr.mxu0 %v75_v62 }
 0x4d4   :  { %2036 = vmatprep.mubr.f32.mxu0 %v258_v39  ;;  %5081 = vmatpush3.msra.mxu0 %v75_v62 }
 0x4d5   :  { %5082 = vmatprep.subr.mxu0 %v74_v6 }
 0x4d6   :  { %5083 = vmatpush3.msra.mxu0 %v74_v6 }
 0x4d7   :  { %2037 = vmatmul.mubr.f32.gmra.mxu0 %v257_v2  ;;  %5084 = vmatprep.subr.mxu0 %v73_v31 }
 0x4d8   :  { %2041 = vmatprep.mubr.f32.mxu0 %v260_v21  ;;  %5085 = vmatpush3.msra.mxu0 %v73_v31 }
 0x4d9   :  { %5086 = vmatprep.subr.mxu0 %v72_v12 }
 0x4da   :  { %5087 = vmatpush3.msra.mxu0 %v72_v12 }
 0x4db   :  { %2042 = vmatmul.mubr.f32.gmra.mxu0 %v259_v7  ;;  %5088 = vmatprep.subr.mxu0 %v71_v56 }
 0x4dc   :  { %2046 = vmatprep.mubr.f32.mxu0 %v262_v25  ;;  %5089 = vmatpush3.msra.mxu0 %v71_v56 }
 0x4dd   :  { %5090 = vmatprep.subr.mxu0 %v70_v27 }
 0x4de   :  { %5091 = vmatpush3.msra.mxu0 %v70_v27 }
 0x4df   :  { %2047 = vmatmul.mubr.f32.gmra.mxu0 %v261_v10  ;;  %5092 = vmatprep.subr.mxu0 %v69_v3 }
 0x4e0   :  { %5093 = vmatpush3.msra.mxu0 %v69_v3 }
 0x4e1   :  { %5094 = vmatprep.subr.mxu0 %v68_v45 }
 0x4e2   :  { %5095 = vmatpush3.msra.mxu0 %v68_v45 }
 0x4e3   :  { %5102 = vmatprep.subr.mxu0 %v5616_v51 }
 0x593   :  { %v4657_v15 = vpop.f32.mrf.mxu0 }
 0x595   :  { %v4658_v37 = vpop.f32.mrf.mxu0 }
 0x596   :  { %v4659_v36 = vadd.f32 %v4658_v37, %v4657_v15 }
 0x597   :  { %v4660_v55 = vpop.f32.mrf.mxu0 }
 0x598   :  { %5096 = vmatprep.mubr.msk.f32.mxu0 %vm272_vm2, %v4659_v36 }
 0x599   :  { %v4661_v38 = vpop.f32.mrf.mxu0 }
 0x59a   :  { %v4662_v28 = vadd.f32 %v4661_v38, %v4660_v55 }
 0x59b   :  { %v4663_v35 = vpop.f32.mrf.mxu0 }
 0x59c   :  { %5097 = vmatmul.mubr.msk.f32.vlgmr.msra.gmra.mxu0 %vm272_vm2, %v4662_v28 }
 0x59d   :  { %v4664_v4 = vpop.f32.mrf.mxu0  ;;  %5103 = vmatpush3.msra.mxu0 %v5616_v51 }
 0x59e   :  { %v4665_v40 = vadd.f32 %v4664_v4, %v4663_v35  ;;  %5104 = vmatprep.subr.mxu0 %v5617_v59 }
 0x59f   :  { %v4666_v61 = vpop.f32.mrf.mxu0  ;;  %5105 = vmatpush3.msra.mxu0 %v5617_v59 }
 0x5a0   :  { %5099 = vmatprep.mubr.msk.f32.mxu0 %vm272_vm2, %v4665_v40  ;;  %5106 = vmatprep.subr.mxu0 %v5618_v22  ;;  %v4375_v40 = vld [vmem:[%s7516_s4 + $0x5] ss:$0 sm:$0xff] }
 0x5a1   :  { %v4667_v49 = vpop.f32.mrf.mxu0  ;;  %5107 = vmatpush3.msra.mxu0 %v5618_v22 }
 0x5a2   :  { %v4668_v41 = vadd.f32 %v4667_v49, %v4666_v61  ;;  %5108 = vmatprep.subr.mxu0 %v5619_v19  ;;  %v4376_v49 = vld [vmem:[%s7516_s4 + $0x6] ss:$0 sm:$0xff] }
 0x5a3   :  { %5109 = vmatpush3.msra.mxu0 %v5619_v19 }
 0x5a4   :  { %5100 = vmatmul.mubr.msk.f32.gmra.mxu0 %vm272_vm2, %v4668_v41 }
 0x65c   :  { %v5098_v43 = vpop.f32.mrf.mxu0 }
 0x65d   :  { %v2140_v26 = vadd.f32 %v5098_v43, %v4370_v16 }
 0x65e   :  { %v2134_v58 = vpop.f32.mrf.mxu0 }
 0x65f   :  { %v2135_v47 = vadd.f32 %v4370_v16, %v2134_v58  ;;  %v2154_v50 = vadd.f32 %v2140_v26, %v49_v9 }
 0x661   :  { %v2160_v18 = vsel %vm382_vm1, %v2154_v50, 0.0  ;;  %v2153_v63 = vadd.f32 %v2135_v47, %v48_v32 }
 0x662   :  { %2161 = vadd.xlane.f32.xlu1 %v2160_v18 }
 0x663   :  { %v2157_v11 = vsel %vm382_vm1, %v2153_v63, 0.0 }
 0x664   :  { %v5101_v46 = vpop.f32.mrf.mxu0  ;;  %2158 = vadd.xlane.f32.xlu0 %v2157_v11 }
 0x665   :  { %v2150_v5 = vadd.f32 %v5101_v46, %v4370_v16 }
 0x666   :  { %v2144_v1 = vpop.f32.mrf.mxu0 }
 0x667   :  { %v2145_v14 = vadd.f32 %v4370_v16, %v2144_v1  ;;  %v2156_v0 = vadd.f32 %v2150_v5, %v51_v30  ;;  %v5621_v5 = vld [vmem:[%s7516_s4] ss:$0 sm:$0xff] }
 0x669   :  { %v2166_v8 = vsel %vm382_vm1, %v2156_v0, 0.0  ;;  %v2155_v54 = vadd.f32 %v2145_v14, %v50_v29 }
 0x66a   :  { %2167 = vadd.xlane.f32.xlu1 %v2166_v8 }
 0x66b   :  { %v2163_v57 = vsel %vm382_vm1, %v2155_v54, 0.0 }
 0x66c   :  { %2164 = vadd.xlane.f32.xlu0 %v2163_v57  ;;  %v5623_v57 = vld [vmem:[%s7517_s5 + $0x10] sm:$0xff] }
 0x6eb   :  { %v2162_v20 = vpop.xlane.xlu1 %2161 }
 0x6ec   :  { %v2171_v17 = vmul.f32 0.03125, %v2162_v20  ;;  %v5624_v20 = vld [vmem:[%s7517_s5 + $0x18] sm:$0xff] }
 0x6ed   :  { %v2159_v23 = vpop.xlane.xlu0 %2158 }
 0x6ee   :  { %v2175_v24 = vsub.f32 %v2154_v50, %v2171_v17  ;;  %v2170_v60 = vmul.f32 0.03125, %v2159_v23  ;;  %v5625_v17 = vld [vmem:[%s7517_s5 + $0x20] sm:$0xff]  ;;  %v5627_v23 = vld [vmem:[%s7517_s5 + $0x30] sm:$0xff] }
 0x6f0   :  { %v2174_v34 = vsub.f32 %v2153_v63, %v2170_v60  ;;  %v2179_v33 = vmul.f32 %v2175_v24, %v2175_v24  ;;  %v5620_v63 = vld [vmem:[%s7517_s5] sm:$0xff] }
 0x6f1   :  { %v5629_v60 = vld [vmem:[%s7517_s5 + $0x40] sm:$0xff] }
 0x6f2   :  { %v2185_v53 = vsel %vm382_vm1, %v2179_v33, 0.0  ;;  %v2178_v42 = vmul.f32 %v2174_v34, %v2174_v34  ;;  %v5631_v33 = vld [vmem:[%s7517_s5 + $0x50] sm:$0xff] }
 0x6f3   :  { %2186 = vadd.xlane.f32.xlu1 %v2185_v53  ;;  %v2168_v44 = vpop.xlane.xlu1 %2167  ;;  %v5632_v53 = vld [vmem:[%s7517_s5 + $0x58] sm:$0xff] }
 0x6f4   :  { %v2173_v48 = vmul.f32 0.03125, %v2168_v44  ;;  %v2182_v62 = vsel %vm382_vm1, %v2178_v42, 0.0  ;;  %v5633_v42 = vld [vmem:[%s7517_s5 + $0x60] sm:$0xff]  ;;  %v5634_v44 = vld [vmem:[%s7517_s5 + $0x68] sm:$0xff] }
 0x6f5   :  { %2183 = vadd.xlane.f32.xlu0 %v2182_v62  ;;  %v2165_v39 = vpop.xlane.xlu0 %2164  ;;  %v5636_v62 = vld [vmem:[%s7517_s5 + $0x78] sm:$0xff] }
 0x6f6   :  { %v2177_v6 = vsub.f32 %v2156_v0, %v2173_v48  ;;  %v2172_v2 = vmul.f32 0.03125, %v2165_v39  ;;  %v5635_v48 = vld [vmem:[%s7517_s5 + $0x70] sm:$0xff]  ;;  %v5637_v39 = vld [vmem:[%s7517_s5 + $0x80] sm:$0xff] }
 0x6f8   :  { %v2176_v31 = vsub.f32 %v2155_v54, %v2172_v2  ;;  %v2181_v21 = vmul.f32 %v2177_v6, %v2177_v6  ;;  %v5622_v54 = vld [vmem:[%s7517_s5 + $0x8] sm:$0xff]  ;;  %v5639_v2 = vld [vmem:[%s7517_s5 + $0x90] sm:$0xff] }
 0x6fa   :  { %v2191_v12 = vsel %vm382_vm1, %v2181_v21, 0.0  ;;  %v2180_v7 = vmul.f32 %v2176_v31, %v2176_v31  ;;  %v5641_v21 = vld [vmem:[%s7517_s5 + $0xa0] sm:$0xff] }
 0x6fb   :  { %2192 = vadd.xlane.f32.xlu1 %v2191_v12  ;;  %v5642_v12 = vld [vmem:[%s7517_s5 + $0xa8] sm:$0xff] }
 0x6fc   :  { %v2188_v25 = vsel %vm382_vm1, %v2180_v7, 0.0  ;;  %v5643_v7 = vld [vmem:[%s7517_s5 + $0xb0] sm:$0xff] }
 0x6fd   :  { %2189 = vadd.xlane.f32.xlu0 %v2188_v25  ;;  %v5644_v25 = vld [vmem:[%s7517_s5 + $0xb8] sm:$0xff] }
 0x77c   :  { %v2187_v10 = vpop.xlane.xlu1 %2186 }
 0x77d   :  { %v2195_v56 = vmul.f32 0.03125, %v2187_v10  ;;  %v5645_v10 = vld [vmem:[%s7517_s5 + $0xc0] sm:$0xff] }
 0x77e   :  { %v2184_v27 = vpop.xlane.xlu0 %2183 }
 0x77f   :  { %v2199_v3 = vadd.f32 1e-05, %v2195_v56  ;;  %v2194_v45 = vmul.f32 0.03125, %v2184_v27  ;;  %v5646_v56 = vld [vmem:[%s7517_s5 + $0xc8] sm:$0xff]  ;;  %v5647_v27 = vld [vmem:[%s7517_s5 + $0xd0] sm:$0xff] }
 0x781   :  { %5464 = vrsqrt.f32 %v2199_v3  ;;  %v2198_v51 = vadd.f32 1e-05, %v2194_v45  ;;  %v5648_v3 = vld [vmem:[%s7517_s5 + $0xd8] sm:$0xff]  ;;  %v5649_v45 = vld [vmem:[%s7517_s5 + $0xe0] sm:$0xff] }
 0x783   :  { %5466 = vrsqrt.f32 %v2198_v51  ;;  %v5650_v51 = vld [vmem:[%s7517_s5 + $0xe8] sm:$0xff] }
 0x784   :  { %v2193_v15 = vpop.xlane.xlu1 %2192 }
 0x785   :  { %v2197_v37 = vmul.f32 0.03125, %v2193_v15  ;;  %v5651_v15 = vld [vmem:[%s7517_s5 + $0xf0] sm:$0xff] }
 0x786   :  { %v2190_v36 = vpop.xlane.xlu0 %2189 }
 0x787   :  { %v2201_v55 = vadd.f32 1e-05, %v2197_v37  ;;  %v2196_v38 = vmul.f32 0.03125, %v2190_v36  ;;  %v5652_v37 = vld [vmem:[%s7517_s5 + $0xf8] sm:$0xff] }
 0x789   :  { %5468 = vrsqrt.f32 %v2201_v55  ;;  %v2200_v28 = vadd.f32 1e-05, %v2196_v38  ;;  %v5653_v38 = vld [vmem:[#allocation2] sm:$0xff] }
 0x78b   :  { %5470 = vrsqrt.f32 %v2200_v28 }
 0x78e   :  { %v5465_v35 = vpop.eup %5464 }
 0x78f   :  { %v2207_v4 = vmul.f32 %v5465_v35, %v2175_v24  ;;  %v5628_v24 = vld [vmem:[%s7517_s5 + $0x38] sm:$0xff]  ;;  %v5654_v35 = vld [vmem:[#allocation2 + $0x8] sm:$0xff] }
 0x790   :  { %v5467_v59 = vpop.eup %5466 }
 0x791   :  { %v2206_v61 = vmul.f32 %v5467_v59, %v2174_v34  ;;  %v2215_v22 = vmul.f32 %v4375_v40, %v2207_v4  ;;  %v5630_v34 = vld [vmem:[%s7517_s5 + $0x48] sm:$0xff] }
 0x793   :  { %v2214_v41 = vmul.f32 %v4375_v40, %v2206_v61  ;;  %v2223_v43 = vadd.f32 %v4376_v49, %v2215_v22  ;;  %v5655_v61 = vld [vmem:[#allocation2 + $0x10] sm:$0xff] }
 0x795   :  { %v2222_v19 = vadd.f32 %v4376_v49, %v2214_v41 }
 0x796   :  { %v5469_v16 = vpop.eup %5468 }
 0x797   :  { %5110 = vmatprep.mubr.msk.f32.mxu0 %vm382_vm1, %v2222_v19  ;;  %v2209_v9 = vmul.f32 %v5469_v16, %v2177_v6  ;;  %v5638_v6 = vld [vmem:[%s7517_s5 + $0x88] sm:$0xff] }
 0x798   :  { %v5471_v26 = vpop.eup %5470  ;;  %5111 = vmatmul.mubr.msk.f32.vlgmr.msra.gmra.mxu0 %vm382_vm1, %v2223_v43  ;;  %v5657_v43 = vld [vmem:[#allocation2 + $0x20] sm:$0xff] }
 0x799   :  { %v2208_v58 = vmul.f32 %v5471_v26, %v2176_v31  ;;  %v2217_v32 = vmul.f32 %v4375_v40, %v2209_v9  ;;  %v5640_v31 = vld [vmem:[%s7517_s5 + $0x98] sm:$0xff]  ;;  %v5658_v26 = vld [vmem:[#allocation2 + $0x28] sm:$0xff] }
 0x79b   :  { %v2216_v47 = vmul.f32 %v4375_v40, %v2208_v58  ;;  %v2225_v18 = vadd.f32 %v4376_v49, %v2217_v32 }
 0x79d   :  { %v2224_v50 = vadd.f32 %v4376_v49, %v2216_v47  ;;  %v5656_v49 = vld [vmem:[#allocation2 + $0x18] sm:$0xff] }
 0x79f   :  { %5113 = vmatprep.mubr.msk.f32.mxu0 %vm382_vm1, %v2224_v50  ;;  %v5659_v50 = vld [vmem:[#allocation2 + $0x30] sm:$0xff] }
 0x7a0   :  { %5114 = vmatmul.mubr.msk.f32.gmra.mxu0 %vm382_vm1, %v2225_v18 }
 0x7a1   :  { %5124 = vmatprep.mubr.msk.f32.mxu0 %vm382_vm1, %v5620_v63  ;;  %v5660_v63 = vld [vmem:[#allocation2 + $0x38] sm:$0xff] }
 0x858   :  { %v5112_v11 = vpop.f32.mrf.mxu0 }
 0x859   :  { %v2310_v0 = vadd.f32 %v5621_v5, %v5112_v11 }
 0x85a   :  { %v2304_v46 = vpop.f32.mrf.mxu0 }
 0x85b   :  { %v2305_v8 = vadd.f32 %v5621_v5, %v2304_v46 }
 0x860   :  { %v5115_v30 = vpop.f32.mrf.mxu0 }
 0x861   :  { %v2320_v1 = vadd.f32 %v5621_v5, %v5115_v30 }
 0x862   :  { %v2314_v29 = vpop.f32.mrf.mxu0 }
 0x863   :  { %v2315_v14 = vadd.f32 %v5621_v5, %v2314_v29  ;;  %5116 = vmatprep.subr.mxu0 %v2320_v1  ;;  %v5661_v5 = vld [vmem:[#allocation2 + $0x40] sm:$0xff]  ;;  %v5662_v29 = vld [vmem:[#allocation2 + $0x48] sm:$0xff] }
 0x864   :  { %5117 = vmatpush3.msra.mxu0 %v2320_v1 }
 0x865   :  { %5118 = vmatprep.subr.mxu0 %v2315_v14 }
 0x866   :  { %5119 = vmatpush3.msra.mxu0 %v2315_v14 }
 0x867   :  { %5120 = vmatprep.subr.mxu0 %v2310_v0 }
 0x868   :  { %5121 = vmatpush3.msra.mxu0 %v2310_v0 }
 0x869   :  { %5122 = vmatprep.subr.mxu0 %v2305_v8 }
 0x86a   :  { %5123 = vmatpush3.msra.mxu0 %v2305_v8 }
 0x86b   :  { %5125 = vmatmul.mubr.msk.f32.vlgmr.msra.gmra.mxu0 %vm382_vm1, %v5622_v54  ;;  %5222 = vmatprep.subr.mxu0 %v6064_v13  ;;  %v5663_v54 = vld [vmem:[#allocation2 + $0x50] sm:$0xff] }
 0x86c   :  { %5223 = vmatpush3.msra.mxu0 %v6064_v13  ;;  %5127 = vmatprep.mubr.msk.f32.mxu0 %vm382_vm1, %v5623_v57  ;;  %v5626_v13 = vld [vmem:[%s7517_s5 + $0x28] sm:$0xff] }
 0x86f   :  { %5128 = vmatmul.mubr.msk.f32.gmra.mxu0 %vm382_vm1, %v5624_v20  ;;  %v5664_v20 = vld [vmem:[#allocation2 + $0x58] sm:$0xff] }
 0x870   :  { %5130 = vmatprep.mubr.msk.f32.mxu0 %vm382_vm1, %v5625_v17 }
 0x873   :  { %5131 = vmatmul.mubr.msk.f32.gmra.mxu0 %vm382_vm1, %v5626_v13 }
 0x874   :  { %5133 = vmatprep.mubr.msk.f32.mxu0 %vm382_vm1, %v5627_v23 }
 0x877   :  { %5134 = vmatmul.mubr.msk.f32.gmra.mxu0 %vm382_vm1, %v5628_v24  ;;  %v5665_v24 = vld [vmem:[#allocation2 + $0x60] sm:$0xff] }
 0x878   :  { %5136 = vmatprep.mubr.msk.f32.mxu0 %vm382_vm1, %v5629_v60 }
 0x87b   :  { %5137 = vmatmul.mubr.msk.f32.gmra.mxu0 %vm382_vm1, %v5630_v34  ;;  %v5666_v34 = vld [vmem:[#allocation2 + $0x68] sm:$0xff] }
 0x87c   :  { %5139 = vmatprep.mubr.msk.f32.mxu0 %vm382_vm1, %v5631_v33 }
 0x87f   :  { %5140 = vmatmul.mubr.msk.f32.gmra.mxu0 %vm382_vm1, %v5632_v53 }
 0x880   :  { %5142 = vmatprep.mubr.msk.f32.mxu0 %vm382_vm1, %v5633_v42 }
 0x883   :  { %5143 = vmatmul.mubr.msk.f32.gmra.mxu0 %vm382_vm1, %v5634_v44  ;;  %v5667_v44 = vld [vmem:[#allocation2 + $0x70] sm:$0xff] }
 0x884   :  { %5145 = vmatprep.mubr.msk.f32.mxu0 %vm382_vm1, %v5635_v48 }
 0x887   :  { %5146 = vmatmul.mubr.msk.f32.gmra.mxu0 %vm382_vm1, %v5636_v62  ;;  %v5668_v62 = vld [vmem:[#allocation2 + $0x78] sm:$0xff] }
 0x888   :  { %5148 = vmatprep.mubr.msk.f32.mxu0 %vm382_vm1, %v5637_v39 }
 0x88b   :  { %5149 = vmatmul.mubr.msk.f32.gmra.mxu0 %vm382_vm1, %v5638_v6 }
 0x88c   :  { %5151 = vmatprep.mubr.msk.f32.mxu0 %vm382_vm1, %v5639_v2 }
 0x88f   :  { %5152 = vmatmul.mubr.msk.f32.gmra.mxu0 %vm382_vm1, %v5640_v31  ;;  %v5669_v31 = vld [vmem:[#allocation2 + $0x80] sm:$0xff] }
 0x890   :  { %5154 = vmatprep.mubr.msk.f32.mxu0 %vm382_vm1, %v5641_v21 }
 0x893   :  { %5155 = vmatmul.mubr.msk.f32.gmra.mxu0 %vm382_vm1, %v5642_v12  ;;  %v5670_v12 = vld [vmem:[#allocation2 + $0x88] sm:$0xff] }
 0x894   :  { %5157 = vmatprep.mubr.msk.f32.mxu0 %vm382_vm1, %v5643_v7 }
 0x897   :  { %5158 = vmatmul.mubr.msk.f32.gmra.mxu0 %vm382_vm1, %v5644_v25 }
 0x898   :  { %5160 = vmatprep.mubr.msk.f32.mxu0 %vm382_vm1, %v5645_v10 }
 0x89b   :  { %5161 = vmatmul.mubr.msk.f32.gmra.mxu0 %vm382_vm1, %v5646_v56  ;;  %v5671_v56 = vld [vmem:[#allocation2 + $0x90] sm:$0xff] }
 0x89c   :  { %5163 = vmatprep.mubr.msk.f32.mxu0 %vm382_vm1, %v5647_v27 }
 0x89f   :  { %5164 = vmatmul.mubr.msk.f32.gmra.mxu0 %vm382_vm1, %v5648_v3  ;;  %v5672_v3 = vld [vmem:[#allocation2 + $0x98] sm:$0xff] }
 0x8a0   :  { %5166 = vmatprep.mubr.msk.f32.mxu0 %vm382_vm1, %v5649_v45 }
 0x8a3   :  { %5167 = vmatmul.mubr.msk.f32.gmra.mxu0 %vm382_vm1, %v5650_v51 }
 0x8a4   :  { %5169 = vmatprep.mubr.msk.f32.mxu0 %vm382_vm1, %v5651_v15 }
 0x8a7   :  { %5170 = vmatmul.mubr.msk.f32.gmra.mxu0 %vm382_vm1, %v5652_v37  ;;  %v5673_v37 = vld [vmem:[#allocation2 + $0xa0] sm:$0xff] }
 0x92b   :  { %v5126_v36 = vpop.f32.mrf.mxu0 }
 0x92c   :  { %v2549_v4 = vmul.f32 %v5654_v35, %v5126_v36 }
 0x92d   :  { %v2389_v55 = vpop.f32.mrf.mxu0 }
 0x92e   :  { %v2548_v28 = vmul.f32 %v5653_v38, %v2389_v55  ;;  %v5674_v55 = vld [vmem:[#allocation2 + $0xa8] sm:$0xff] }
 0x92f   :  { %v5129_v40 = vpop.f32.mrf.mxu0 }
 0x930   :  { %5174 = vmatprep.mubr.msk.f32.mxu1 %vm272_vm2, %v2548_v28  ;;  %v2551_v41 = vmul.f32 %v5656_v49, %v5129_v40 }
 0x931   :  { %v2399_v59 = vpop.f32.mrf.mxu0  ;;  %5175 = vmatmul.mubr.msk.f32.vlgmr.msra.gmra.mxu1 %vm272_vm2, %v2549_v4  ;;  %v5675_v4 = vld [vmem:[#allocation2 + $0xb0] sm:$0xff] }
 0x932   :  { %v2550_v22 = vmul.f32 %v5655_v61, %v2399_v59  ;;  %v5676_v59 = vld [vmem:[#allocation2 + $0xb8] sm:$0xff] }
 0x933   :  { %v5132_v19 = vpop.f32.mrf.mxu0 }
 0x934   :  { %5177 = vmatprep.mubr.msk.f32.mxu1 %vm272_vm2, %v2550_v22  ;;  %v2553_v58 = vmul.f32 %v5658_v26, %v5132_v19 }
 0x935   :  { %v2409_v16 = vpop.f32.mrf.mxu0  ;;  %5178 = vmatmul.mubr.msk.f32.gmra.mxu1 %vm272_vm2, %v2551_v41  ;;  %v5677_v41 = vld [vmem:[#allocation2 + $0xc0] sm:$0xff] }
 0x936   :  { %v2552_v9 = vmul.f32 %v5657_v43, %v2409_v16  ;;  %v5678_v16 = vld [vmem:[#allocation2 + $0xc8] sm:$0xff] }
 0x937   :  { %v5135_v32 = vpop.f32.mrf.mxu0 }
 0x938   :  { %5180 = vmatprep.mubr.msk.f32.mxu1 %vm272_vm2, %v2552_v9  ;;  %v2555_v11 = vmul.f32 %v5660_v63, %v5135_v32 }
 0x939   :  { %v2419_v47 = vpop.f32.mrf.mxu0  ;;  %5181 = vmatmul.mubr.msk.f32.gmra.mxu1 %vm272_vm2, %v2553_v58  ;;  %v5679_v58 = vld [vmem:[#allocation2 + $0xd0] sm:$0xff] }
 0x93a   :  { %v2554_v18 = vmul.f32 %v5659_v50, %v2419_v47  ;;  %v5680_v47 = vld [vmem:[#allocation2 + $0xd8] sm:$0xff] }
 0x93b   :  { %v5138_v46 = vpop.f32.mrf.mxu0 }
 0x93c   :  { %5183 = vmatprep.mubr.msk.f32.mxu1 %vm272_vm2, %v2554_v18  ;;  %v2557_v14 = vmul.f32 %v5662_v29, %v5138_v46 }
 0x93d   :  { %v2429_v30 = vpop.f32.mrf.mxu0  ;;  %5184 = vmatmul.mubr.msk.f32.gmra.mxu1 %vm272_vm2, %v2555_v11  ;;  %v5681_v11 = vld [vmem:[#allocation2 + $0xe0] sm:$0xff] }
 0x93e   :  { %v2556_v1 = vmul.f32 %v5661_v5, %v2429_v30  ;;  %v5682_v30 = vld [vmem:[#allocation2 + $0xe8] sm:$0xff] }
 0x93f   :  { %v5141_v0 = vpop.f32.mrf.mxu0 }
 0x940   :  { %5186 = vmatprep.mubr.msk.f32.mxu1 %vm272_vm2, %v2556_v1  ;;  %v2559_v17 = vmul.f32 %v5664_v20, %v5141_v0 }
 0x941   :  { %v2439_v8 = vpop.f32.mrf.mxu0  ;;  %5187 = vmatmul.mubr.msk.f32.gmra.mxu1 %vm272_vm2, %v2557_v14  ;;  %v5683_v14 = vld [vmem:[#allocation2 + $0xf0] sm:$0xff] }
 0x942   :  { %v2558_v57 = vmul.f32 %v5663_v54, %v2439_v8  ;;  %v5684_v8 = vld [vmem:[#allocation2 + $0xf8] sm:$0xff] }
 0x943   :  { %v5144_v13 = vpop.f32.mrf.mxu0 }
 0x944   :  { %5189 = vmatprep.mubr.msk.f32.mxu1 %vm272_vm2, %v2558_v57  ;;  %v2561_v33 = vmul.f32 %v5666_v34, %v5144_v13  ;;  %v160_v57 = vld [vmem:[%s7517_s5 + $0x208] sm:$0xff] }
 0x945   :  { %v2449_v23 = vpop.f32.mrf.mxu0  ;;  %5190 = vmatmul.mubr.msk.f32.gmra.mxu1 %vm272_vm2, %v2559_v17  ;;  %v159_v17 = vld [vmem:[%s7517_s5 + $0x200] sm:$0xff] }
 0x946   :  { %v2560_v60 = vmul.f32 %v5665_v24, %v2449_v23  ;;  %v162_v24 = vld [vmem:[%s7517_s5 + $0x218] sm:$0xff] }
 0x947   :  { %v5147_v53 = vpop.f32.mrf.mxu0 }
 0x948   :  { %5192 = vmatprep.mubr.msk.f32.mxu1 %vm272_vm2, %v2560_v60  ;;  %v2563_v39 = vmul.f32 %v5668_v62, %v5147_v53 }
 0x949   :  { %v2459_v42 = vpop.f32.mrf.mxu0  ;;  %5193 = vmatmul.mubr.msk.f32.gmra.mxu1 %vm272_vm2, %v2561_v33  ;;  %v161_v33 = vld [vmem:[%s7517_s5 + $0x210] sm:$0xff] }
 0x94a   :  { %v2562_v48 = vmul.f32 %v5667_v44, %v2459_v42 }
 0x94b   :  { %v5150_v6 = vpop.f32.mrf.mxu0 }
 0x94c   :  { %5195 = vmatprep.mubr.msk.f32.mxu1 %vm272_vm2, %v2562_v48  ;;  %v2565_v7 = vmul.f32 %v5670_v12, %v5150_v6  ;;  %v164_v48 = vld [vmem:[%s7517_s5 + $0x228] sm:$0xff] }
 0x94d   :  { %v2469_v2 = vpop.f32.mrf.mxu0  ;;  %5196 = vmatmul.mubr.msk.f32.gmra.mxu1 %vm272_vm2, %v2563_v39 }
 0x94e   :  { %v2564_v21 = vmul.f32 %v5669_v31, %v2469_v2  ;;  %v163_v2 = vld [vmem:[%s7517_s5 + $0x220] sm:$0xff] }
 0x94f   :  { %v5153_v25 = vpop.f32.mrf.mxu0 }
 0x950   :  { %5198 = vmatprep.mubr.msk.f32.mxu1 %vm272_vm2, %v2564_v21  ;;  %v2567_v45 = vmul.f32 %v5672_v3, %v5153_v25 }
 0x951   :  { %v2479_v10 = vpop.f32.mrf.mxu0  ;;  %5199 = vmatmul.mubr.msk.f32.gmra.mxu1 %vm272_vm2, %v2565_v7  ;;  %v166_v7 = vld [vmem:[%s7517_s5 + $0x238] sm:$0xff] }
 0x952   :  { %v2566_v27 = vmul.f32 %v5671_v56, %v2479_v10 }
 0x953   :  { %v5156_v51 = vpop.f32.mrf.mxu0 }
 0x954   :  { %5201 = vmatprep.mubr.msk.f32.mxu1 %vm272_vm2, %v2566_v27  ;;  %v2569_v38 = vmul.f32 %v5674_v55, %v5156_v51  ;;  %v165_v27 = vld [vmem:[%s7517_s5 + $0x230] sm:$0xff] }
 0x955   :  { %v2489_v15 = vpop.f32.mrf.mxu0  ;;  %5202 = vmatmul.mubr.msk.f32.gmra.mxu1 %vm272_vm2, %v2567_v45 }
 0x956   :  { %v2568_v36 = vmul.f32 %v5673_v37, %v2489_v15  ;;  %v168_v15 = vld [vmem:[%s7517_s5 + $0x248] sm:$0xff] }
 0x957   :  { %v5159_v28 = vpop.f32.mrf.mxu0 }
 0x958   :  { %5204 = vmatprep.mubr.msk.f32.mxu1 %vm272_vm2, %v2568_v36  ;;  %v2571_v61 = vmul.f32 %v5676_v59, %v5159_v28 }
 0x959   :  { %v2499_v35 = vpop.f32.mrf.mxu0  ;;  %5205 = vmatmul.mubr.msk.f32.gmra.mxu1 %vm272_vm2, %v2569_v38  ;;  %v167_v38 = vld [vmem:[%s7517_s5 + $0x240] sm:$0xff] }
 0x95a   :  { %v2570_v40 = vmul.f32 %v5675_v4, %v2499_v35 }
 0x95b   :  { %v5162_v22 = vpop.f32.mrf.mxu0 }
 0x95c   :  { %5207 = vmatprep.mubr.msk.f32.mxu1 %vm272_vm2, %v2570_v40  ;;  %v2573_v43 = vmul.f32 %v5678_v16, %v5162_v22  ;;  %v170_v40 = vld [vmem:[%s7517_s5 + $0x258] sm:$0xff] }
 0x95d   :  { %v2509_v49 = vpop.f32.mrf.mxu0  ;;  %5208 = vmatmul.mubr.msk.f32.gmra.mxu1 %vm272_vm2, %v2571_v61 }
 0x95e   :  { %v2572_v19 = vmul.f32 %v5677_v41, %v2509_v49  ;;  %v169_v49 = vld [vmem:[%s7517_s5 + $0x250] sm:$0xff] }
 0x95f   :  { %v5165_v9 = vpop.f32.mrf.mxu0 }
 0x960   :  { %5210 = vmatprep.mubr.msk.f32.mxu1 %vm272_vm2, %v2572_v19  ;;  %v2575_v50 = vmul.f32 %v5680_v47, %v5165_v9 }
 0x961   :  { %v2519_v26 = vpop.f32.mrf.mxu0  ;;  %5211 = vmatmul.mubr.msk.f32.gmra.mxu1 %vm272_vm2, %v2573_v43  ;;  %v172_v43 = vld [vmem:[%s7517_s5 + $0x268] sm:$0xff] }
 0x962   :  { %v2574_v32 = vmul.f32 %v5679_v58, %v2519_v26 }
 0x963   :  { %v5168_v18 = vpop.f32.mrf.mxu0 }
 0x964   :  { %5213 = vmatprep.mubr.msk.f32.mxu1 %vm272_vm2, %v2574_v32  ;;  %v2577_v5 = vmul.f32 %v5682_v30, %v5168_v18  ;;  %v171_v32 = vld [vmem:[%s7517_s5 + $0x260] sm:$0xff] }
 0x965   :  { %v2529_v63 = vpop.f32.mrf.mxu0  ;;  %5214 = vmatmul.mubr.msk.f32.gmra.mxu1 %vm272_vm2, %v2575_v50 }
 0x966   :  { %v2576_v46 = vmul.f32 %v5681_v11, %v2529_v63  ;;  %v174_v63 = vld [vmem:[%s7517_s5 + $0x278] sm:$0xff] }
 0x967   :  { %v5171_v1 = vpop.f32.mrf.mxu0 }
 0x968   :  { %5216 = vmatprep.mubr.msk.f32.mxu1 %vm272_vm2, %v2576_v46  ;;  %v2579_v54 = vmul.f32 %v5684_v8, %v5171_v1 }
 0x969   :  { %v2539_v29 = vpop.f32.mrf.mxu0  ;;  %5217 = vmatmul.mubr.msk.f32.gmra.mxu1 %vm272_vm2, %v2577_v5  ;;  %v173_v5 = vld [vmem:[%s7517_s5 + $0x270] sm:$0xff] }
 0x96a   :  { %v2578_v0 = vmul.f32 %v5683_v14, %v2539_v29 }
 0x96c   :  { %5219 = vmatprep.mubr.msk.f32.mxu1 %vm272_vm2, %v2578_v0  ;;  %v176_v0 = vld [vmem:[%s7517_s5 + $0x288] sm:$0xff] }
 0x96d   :  { %5220 = vmatmul.mubr.msk.f32.gmra.mxu1 %vm272_vm2, %v2579_v54 }
 0x96e   :  { %3770 = vmatprep.mubr.f32.mxu1 %v6553_v52 }
 0x9f1   :  { %v5176_v20 = vpop.f32.mrf.mxu1 }
 0x9f2   :  { %v6873_v13 = vadd.f32 %v5176_v20, %v160_v57  ;;  %v175_v20 = vld [vmem:[%s7517_s5 + $0x280] sm:$0xff] }
 0x9f3   :  { %v2745_v23 = vpop.f32.mrf.mxu1 }
 0x9f4   :  { %v6878_v60 = vadd.f32 %v2745_v23, %v159_v17  ;;  %v2908_v52 = vsel %vm2904_vm3, %v6873_v13, -inf }
 0x9f5   :  { %2909 = vmax.xlane.f32.xlu1 %v2908_v52  ;;  %v5179_v34 = vpop.f32.mrf.mxu1  ;;  %v178_v52 = vld [vmem:[%s7517_s5 + $0x298] sm:$0xff] }
 0x9f6   :  { %v6885_v53 = vadd.f32 %v5179_v34, %v162_v24  ;;  %v2905_v42 = vsel %vm2904_vm3, %v6878_v60, -inf }
 0x9f7   :  { %2906 = vmax.xlane.f32.xlu0 %v2905_v42  ;;  %v2755_v44 = vpop.f32.mrf.mxu1 }
 0x9f8   :  { %v6892_v62 = vadd.f32 %v2755_v44, %v161_v33  ;;  %v2914_v39 = vsel %vm2904_vm3, %v6885_v53, -inf  ;;  %v177_v44 = vld [vmem:[%s7517_s5 + $0x290] sm:$0xff] }
 0x9f9   :  { %2915 = vmax.xlane.f32.xlu1 %v2914_v39  ;;  %v5182_v6 = vpop.f32.mrf.mxu1 }
 0x9fa   :  { %v6899_v31 = vadd.f32 %v5182_v6, %v164_v48  ;;  %v2911_v21 = vsel %vm2904_vm3, %v6892_v62, -inf }
 0x9fb   :  { %2912 = vmax.xlane.f32.xlu0 %v2911_v21  ;;  %v2765_v12 = vpop.f32.mrf.mxu1 }
 0x9fc   :  { %v6906_v25 = vadd.f32 %v2765_v12, %v163_v2  ;;  %v2920_v10 = vsel %vm2904_vm3, %v6899_v31, -inf  ;;  %v180_v2 = vld [vmem:[%s7517_s5 + $0x2a8] sm:$0xff] }
 0x9fd   :  { %2921 = vmax.xlane.f32.xlu1 %v2920_v10  ;;  %v5185_v56 = vpop.f32.mrf.mxu1  ;;  %v179_v10 = vld [vmem:[%s7517_s5 + $0x2a0] sm:$0xff] }
 0x9fe   :  { %v6913_v3 = vadd.f32 %v5185_v56, %v166_v7  ;;  %v2917_v45 = vsel %vm2904_vm3, %v6906_v25, -inf }
 0x9ff   :  { %2918 = vmax.xlane.f32.xlu0 %v2917_v45  ;;  %v2775_v51 = vpop.f32.mrf.mxu1 }
 0xa00   :  { %v6920_v37 = vadd.f32 %v2775_v51, %v165_v27  ;;  %v2926_v36 = vsel %vm2904_vm3, %v6913_v3, -inf  ;;  %v182_v51 = vld [vmem:[%s7517_s5 + $0x2b8] sm:$0xff] }
 0xa01   :  { %2927 = vmax.xlane.f32.xlu1 %v2926_v36  ;;  %v5188_v55 = vpop.f32.mrf.mxu1 }
 0xa02   :  { %v6927_v28 = vadd.f32 %v5188_v55, %v168_v15  ;;  %v2923_v35 = vsel %vm2904_vm3, %v6920_v37, -inf }
 0xa03   :  { %2924 = vmax.xlane.f32.xlu0 %v2923_v35  ;;  %v2785_v4 = vpop.f32.mrf.mxu1 }
 0xa04   :  { %v6934_v59 = vadd.f32 %v2785_v4, %v167_v38  ;;  %v2932_v61 = vsel %vm2904_vm3, %v6927_v28, -inf  ;;  %v181_v38 = vld [vmem:[%s7517_s5 + $0x2b0] sm:$0xff] }
 0xa05   :  { %2933 = vmax.xlane.f32.xlu1 %v2932_v61  ;;  %v5191_v22 = vpop.f32.mrf.mxu1  ;;  %v184_v61 = vld [vmem:[%s7517_s5 + $0x2c8] sm:$0xff] }
 0xa06   :  { %v6941_v41 = vadd.f32 %v5191_v22, %v170_v40  ;;  %v2929_v19 = vsel %vm2904_vm3, %v6934_v59, -inf }
 0xa07   :  { %2930 = vmax.xlane.f32.xlu0 %v2929_v19  ;;  %v2795_v16 = vpop.f32.mrf.mxu1 }
 0xa08   :  { %v6948_v9 = vadd.f32 %v2795_v16, %v169_v49  ;;  %v2938_v26 = vsel %vm2904_vm3, %v6941_v41, -inf  ;;  %v183_v16 = vld [vmem:[%s7517_s5 + $0x2c0] sm:$0xff] }
 0xa09   :  { %2939 = vmax.xlane.f32.xlu1 %v2938_v26  ;;  %v5194_v58 = vpop.f32.mrf.mxu1 }
 0xa0a   :  { %v6955_v47 = vadd.f32 %v5194_v58, %v172_v43  ;;  %v2935_v50 = vsel %vm2904_vm3, %v6948_v9, -inf }
 0xa0b   :  { %2936 = vmax.xlane.f32.xlu0 %v2935_v50  ;;  %v2805_v18 = vpop.f32.mrf.mxu1 }
 0xa0c   :  { %v6962_v11 = vadd.f32 %v2805_v18, %v171_v32  ;;  %v2944_v46 = vsel %vm2904_vm3, %v6955_v47, -inf  ;;  %v186_v32 = vld [vmem:[%s7517_s5 + $0x2d8] sm:$0xff] }
 0xa0d   :  { %2945 = vmax.xlane.f32.xlu1 %v2944_v46  ;;  %v5197_v30 = vpop.f32.mrf.mxu1  ;;  %v185_v46 = vld [vmem:[%s7517_s5 + $0x2d0] sm:$0xff] }
 0xa0e   :  { %v6969_v1 = vadd.f32 %v5197_v30, %v174_v63  ;;  %v2941_v29 = vsel %vm2904_vm3, %v6962_v11, -inf }
 0xa0f   :  { %2942 = vmax.xlane.f32.xlu0 %v2941_v29  ;;  %v2815_v14 = vpop.f32.mrf.mxu1 }
 0xa10   :  { %v6976_v8 = vadd.f32 %v2815_v14, %v173_v5  ;;  %v2950_v54 = vsel %vm2904_vm3, %v6969_v1, -inf  ;;  %v188_v14 = vld [vmem:[%s7517_s5 + $0x2e8] sm:$0xff] }
 0xa11   :  { %2951 = vmax.xlane.f32.xlu1 %v2950_v54  ;;  %v5200_v57 = vpop.f32.mrf.mxu1 }
 0xa12   :  { %v6983_v17 = vadd.f32 %v5200_v57, %v176_v0  ;;  %v2947_v23 = vsel %vm2904_vm3, %v6976_v8, -inf }
 0xa13   :  { %2948 = vmax.xlane.f32.xlu0 %v2947_v23  ;;  %v2825_v24 = vpop.f32.mrf.mxu1 }
 0xa14   :  { %v6990_v34 = vadd.f32 %v2825_v24, %v175_v20  ;;  %v2956_v33 = vsel %vm2904_vm3, %v6983_v17, -inf  ;;  %v187_v20 = vld [vmem:[%s7517_s5 + $0x2e0] sm:$0xff] }
 0xa15   :  { %2957 = vmax.xlane.f32.xlu1 %v2956_v33  ;;  %v5203_v42 = vpop.f32.mrf.mxu1  ;;  %v190_v33 = vld [vmem:[%s7517_s5 + $0x2f8] sm:$0xff] }
 0xa16   :  { %v6997_v48 = vadd.f32 %v5203_v42, %v178_v52  ;;  %v2953_v39 = vsel %vm2904_vm3, %v6990_v34, -inf }
 0xa17   :  { %2954 = vmax.xlane.f32.xlu0 %v2953_v39  ;;  %v2835_v6 = vpop.f32.mrf.mxu1 }
 0xa18   :  { %v7004_v21 = vadd.f32 %v2835_v6, %v177_v44  ;;  %v2962_v12 = vsel %vm2904_vm3, %v6997_v48, -inf  ;;  %v189_v6 = vld [vmem:[%s7517_s5 + $0x2f0] sm:$0xff] }
 0xa19   :  { %2963 = vmax.xlane.f32.xlu1 %v2962_v12  ;;  %v5206_v7 = vpop.f32.mrf.mxu1 }
 0xa1a   :  { %v7011_v56 = vadd.f32 %v5206_v7, %v180_v2  ;;  %v2959_v27 = vsel %vm2904_vm3, %v7004_v21, -inf }
 0xa1b   :  { %2960 = vmax.xlane.f32.xlu0 %v2959_v27  ;;  %v2845_v45 = vpop.f32.mrf.mxu1 }
 0xa1c   :  { %v7018_v15 = vadd.f32 %v2845_v45, %v179_v10  ;;  %v2968_v36 = vsel %vm2904_vm3, %v7011_v56, -inf }
 0xa1d   :  { %2969 = vmax.xlane.f32.xlu1 %v2968_v36  ;;  %v5209_v55 = vpop.f32.mrf.mxu1 }
 0xa1e   :  { %v7025_v35 = vadd.f32 %v5209_v55, %v182_v51  ;;  %v2965_v4 = vsel %vm2904_vm3, %v7018_v15, -inf }
 0xa1f   :  { %2966 = vmax.xlane.f32.xlu0 %v2965_v4  ;;  %v2855_v40 = vpop.f32.mrf.mxu1 }
 0xa20   :  { %v7032_v22 = vadd.f32 %v2855_v40, %v181_v38  ;;  %v2974_v49 = vsel %vm2904_vm3, %v7025_v35, -inf }
 0xa21   :  { %2975 = vmax.xlane.f32.xlu1 %v2974_v49  ;;  %v5212_v19 = vpop.f32.mrf.mxu1 }
 0xa22   :  { %v7039_v43 = vadd.f32 %v5212_v19, %v184_v61  ;;  %v2971_v26 = vsel %vm2904_vm3, %v7032_v22, -inf }
 0xa23   :  { %2972 = vmax.xlane.f32.xlu0 %v2971_v26  ;;  %v2865_v58 = vpop.f32.mrf.mxu1 }
 0xa24   :  { %v7046_v50 = vadd.f32 %v2865_v58, %v183_v16  ;;  %v2980_v18 = vsel %vm2904_vm3, %v7039_v43, -inf }
 0xa25   :  { %2981 = vmax.xlane.f32.xlu1 %v2980_v18  ;;  %v5215_v63 = vpop.f32.mrf.mxu1 }
 0xa26   :  { %v7053_v30 = vadd.f32 %v5215_v63, %v186_v32  ;;  %v2977_v5 = vsel %vm2904_vm3, %v7046_v50, -inf }
 0xa27   :  { %2978 = vmax.xlane.f32.xlu0 %v2977_v5  ;;  %v2875_v29 = vpop.f32.mrf.mxu1 }
 0xa28   :  { %v7060_v0 = vadd.f32 %v2875_v29, %v185_v46  ;;  %v2986_v54 = vsel %vm2904_vm3, %v7053_v30, -inf }
 0xa29   :  { %2987 = vmax.xlane.f32.xlu1 %v2986_v54  ;;  %v5218_v57 = vpop.f32.mrf.mxu1 }
 0xa2a   :  { %v7067_v23 = vadd.f32 %v5218_v57, %v188_v14  ;;  %v2983_v24 = vsel %vm2904_vm3, %v7060_v0, -inf }
 0xa2b   :  { %2984 = vmax.xlane.f32.xlu0 %v2983_v24  ;;  %v2885_v52 = vpop.f32.mrf.mxu1 }
 0xa2c   :  { %v7074_v42 = vadd.f32 %v2885_v52, %v187_v20  ;;  %v2992_v44 = vsel %vm2904_vm3, %v7067_v23, -inf }
 0xa2d   :  { %2993 = vmax.xlane.f32.xlu1 %v2992_v44  ;;  %v5221_v39 = vpop.f32.mrf.mxu1 }
 0xa2e   :  { %v7081_v2 = vadd.f32 %v5221_v39, %v190_v33  ;;  %v2989_v12 = vsel %vm2904_vm3, %v7074_v42, -inf }
 0xa2f   :  { %2990 = vmax.xlane.f32.xlu0 %v2989_v12  ;;  %v2895_v7 = vpop.f32.mrf.mxu1 }
 0xa30   :  { %v7085_v10 = vadd.f32 %v2895_v7, %v189_v6  ;;  %v2998_v27 = vsel %vm2904_vm3, %v7081_v2, -inf }
 0xa31   :  { %2999 = vmax.xlane.f32.xlu1 %v2998_v27 }
 0xa32   :  { %v2995_v45 = vsel %vm2904_vm3, %v7085_v10, -inf }
 0xa33   :  { %2996 = vmax.xlane.f32.xlu0 %v2995_v45 }
 0xa7e   :  { %v2910_v51 = vpop.xlane.xlu1 %2909 }
 0xa7f   :  { %v3002_v36 = vsub.f32 %v6873_v13, %v2910_v51 }
 0xa80   :  { %v2907_v55 = vpop.xlane.xlu0 %2906 }
 0xa81   :  { %v3035_v38 = vmul.f32 1.442695, %v3002_v36  ;;  %v3001_v4 = vsub.f32 %v6878_v60, %v2907_v55 }
 0xa82   :  { %v2916_v40 = vpop.xlane.xlu1 %2915 }
 0xa83   :  { %5472 = vpow2.f32 %v3035_v38  ;;  %v3033_v61 = vmul.f32 1.442695, %v3001_v4  ;;  %v3004_v49 = vsub.f32 %v6885_v53, %v2916_v40 }
 0xa84   :  { %v2913_v19 = vpop.xlane.xlu0 %2912 }
 0xa85   :  { %5474 = vpow2.f32 %v3033_v61  ;;  %v3039_v16 = vmul.f32 1.442695, %v3004_v49  ;;  %v3003_v26 = vsub.f32 %v6892_v62, %v2913_v19 }
 0xa86   :  { %v2922_v58 = vpop.xlane.xlu1 %2921 }
 0xa87   :  { %5476 = vpow2.f32 %v3039_v16  ;;  %v3037_v32 = vmul.f32 1.442695, %v3003_v26  ;;  %v3006_v18 = vsub.f32 %v6899_v31, %v2922_v58 }
 0xa88   :  { %v2919_v13 = vpop.xlane.xlu0 %2918 }
 0xa89   :  { %5478 = vpow2.f32 %v3037_v32  ;;  %v3043_v63 = vmul.f32 1.442695, %v3006_v18  ;;  %v3005_v60 = vsub.f32 %v6906_v25, %v2919_v13 }
 0xa8a   :  { %v2928_v46 = vpop.xlane.xlu1 %2927 }
 0xa8b   :  { %5480 = vpow2.f32 %v3043_v63  ;;  %v3041_v5 = vmul.f32 1.442695, %v3005_v60  ;;  %v3008_v53 = vsub.f32 %v6913_v3, %v2928_v46 }
 0xa8c   :  { %v2925_v29 = vpop.xlane.xlu0 %2924 }
 0xa8d   :  { %5482 = vpow2.f32 %v3041_v5  ;;  %v3047_v14 = vmul.f32 1.442695, %v3008_v53  ;;  %v3007_v62 = vsub.f32 %v6920_v37, %v2925_v29 }
 0xa8e   :  { %v2934_v54 = vpop.xlane.xlu1 %2933 }
 0xa8f   :  { %5484 = vpow2.f32 %v3047_v14  ;;  %v3045_v57 = vmul.f32 1.442695, %v3007_v62  ;;  %v3010_v31 = vsub.f32 %v6927_v28, %v2934_v54 }
 0xa90   :  { %v7100_v20 = vpop.eup %5472  ;;  %v2931_v24 = vpop.xlane.xlu0 %2930 }
 0xa91   :  { %5486 = vpow2.f32 %v3045_v57  ;;  %v3051_v25 = vmul.f32 1.442695, %v3010_v31  ;;  %v3009_v52 = vsub.f32 %v6934_v59, %v2931_v24  ;;  %v3100_v3 = vsel %vm2904_vm3, %v7100_v20, 0.0 }
 0xa92   :  { %v7105_v33 = vpop.eup %5474  ;;  %v2940_v44 = vpop.xlane.xlu1 %2939  ;;  %3101 = vadd.xlane.f32.xlu1 %v3100_v3 }
 0xa93   :  { %5488 = vpow2.f32 %v3051_v25  ;;  %v3049_v37 = vmul.f32 1.442695, %v3009_v52  ;;  %v3012_v39 = vsub.f32 %v6941_v41, %v2940_v44  ;;  %v3097_v28 = vsel %vm2904_vm3, %v7105_v33, 0.0 }
 0xa94   :  { %v7110_v6 = vpop.eup %5476  ;;  %v2937_v12 = vpop.xlane.xlu0 %2936  ;;  %3098 = vadd.xlane.f32.xlu0 %v3097_v28 }
 0xa95   :  { %5490 = vpow2.f32 %v3049_v37  ;;  %v3055_v59 = vmul.f32 1.442695, %v3012_v39  ;;  %v3011_v7 = vsub.f32 %v6948_v9, %v2937_v12  ;;  %v3106_v27 = vsel %vm2904_vm3, %v7110_v6, 0.0 }
 0xa96   :  { %v7115_v45 = vpop.eup %5478  ;;  %v2946_v51 = vpop.xlane.xlu1 %2945  ;;  %3107 = vadd.xlane.f32.xlu1 %v3106_v27 }
 0xa97   :  { %5492 = vpow2.f32 %v3055_v59  ;;  %v3053_v41 = vmul.f32 1.442695, %v3011_v7  ;;  %v3014_v36 = vsub.f32 %v6955_v47, %v2946_v51  ;;  %v3103_v55 = vsel %vm2904_vm3, %v7115_v45, 0.0 }
 0xa98   :  { %v7120_v38 = vpop.eup %5480  ;;  %v2943_v4 = vpop.xlane.xlu0 %2942  ;;  %3104 = vadd.xlane.f32.xlu0 %v3103_v55 }
 0xa99   :  { %5494 = vpow2.f32 %v3053_v41  ;;  %v3059_v9 = vmul.f32 1.442695, %v3014_v36  ;;  %v3013_v40 = vsub.f32 %v6962_v11, %v2943_v4  ;;  %v3112_v61 = vsel %vm2904_vm3, %v7120_v38, 0.0 }
 0xa9a   :  { %v7125_v49 = vpop.eup %5482  ;;  %v2952_v19 = vpop.xlane.xlu1 %2951  ;;  %3113 = vadd.xlane.f32.xlu1 %v3112_v61 }
 0xa9b   :  { %5496 = vpow2.f32 %v3059_v9  ;;  %v3057_v47 = vmul.f32 1.442695, %v3013_v40  ;;  %v3016_v16 = vsub.f32 %v6969_v1, %v2952_v19  ;;  %v3109_v26 = vsel %vm2904_vm3, %v7125_v49, 0.0 }
 0xa9c   :  { %v7130_v58 = vpop.eup %5484  ;;  %v2949_v32 = vpop.xlane.xlu0 %2948  ;;  %3110 = vadd.xlane.f32.xlu0 %v3109_v26 }
 0xa9d   :  { %5498 = vpow2.f32 %v3057_v47  ;;  %v3063_v11 = vmul.f32 1.442695, %v3016_v16  ;;  %v3015_v18 = vsub.f32 %v6976_v8, %v2949_v32  ;;  %v3118_v13 = vsel %vm2904_vm3, %v7130_v58, 0.0 }
 0xa9e   :  { %v7135_v63 = vpop.eup %5486  ;;  %v2958_v60 = vpop.xlane.xlu1 %2957  ;;  %3119 = vadd.xlane.f32.xlu1 %v3118_v13 }
 0xa9f   :  { %5500 = vpow2.f32 %v3063_v11  ;;  %v3061_v1 = vmul.f32 1.442695, %v3015_v18  ;;  %v3018_v46 = vsub.f32 %v6983_v17, %v2958_v60  ;;  %v3115_v5 = vsel %vm2904_vm3, %v7135_v63, 0.0 }
 0xaa0   :  { %v7140_v53 = vpop.eup %5488  ;;  %v2955_v29 = vpop.xlane.xlu0 %2954  ;;  %3116 = vadd.xlane.f32.xlu0 %v3115_v5 }
 0xaa1   :  { %5502 = vpow2.f32 %v3061_v1  ;;  %v3067_v8 = vmul.f32 1.442695, %v3018_v46  ;;  %v3017_v14 = vsub.f32 %v6990_v34, %v2955_v29  ;;  %v3124_v62 = vsel %vm2904_vm3, %v7140_v53, 0.0 }
 0xaa2   :  { %v7145_v54 = vpop.eup %5490  ;;  %v2964_v57 = vpop.xlane.xlu1 %2963  ;;  %3125 = vadd.xlane.f32.xlu1 %v3124_v62 }
 0xaa3   :  { %5504 = vpow2.f32 %v3067_v8  ;;  %v3065_v17 = vmul.f32 1.442695, %v3017_v14  ;;  %v3020_v31 = vsub.f32 %v6997_v48, %v2964_v57  ;;  %v3121_v24 = vsel %vm2904_vm3, %v7145_v54, 0.0 }
 0xaa4   :  { %v7150_v25 = vpop.eup %5492  ;;  %v2961_v52 = vpop.xlane.xlu0 %2960  ;;  %3122 = vadd.xlane.f32.xlu0 %v3121_v24 }
 0xaa5   :  { %5506 = vpow2.f32 %v3065_v17  ;;  %v3071_v34 = vmul.f32 1.442695, %v3020_v31  ;;  %v3019_v3 = vsub.f32 %v7004_v21, %v2961_v52  ;;  %v3130_v44 = vsel %vm2904_vm3, %v7150_v25, 0.0 }
 0xaa6   :  { %v7155_v37 = vpop.eup %5494  ;;  %v2970_v39 = vpop.xlane.xlu1 %2969  ;;  %3131 = vadd.xlane.f32.xlu1 %v3130_v44 }
 0xaa7   :  { %5508 = vpow2.f32 %v3071_v34  ;;  %v3069_v48 = vmul.f32 1.442695, %v3019_v3  ;;  %v3022_v28 = vsub.f32 %v7011_v56, %v2970_v39  ;;  %v3127_v12 = vsel %vm2904_vm3, %v7155_v37, 0.0 }
 0xaa8   :  { %v7160_v59 = vpop.eup %5496  ;;  %v2967_v7 = vpop.xlane.xlu0 %2966  ;;  %3128 = vadd.xlane.f32.xlu0 %v3127_v12 }
 0xaa9   :  { %5510 = vpow2.f32 %v3069_v48  ;;  %v3075_v21 = vmul.f32 1.442695, %v3022_v28  ;;  %v3021_v27 = vsub.f32 %v7018_v15, %v2967_v7  ;;  %v3136_v51 = vsel %vm2904_vm3, %v7160_v59, 0.0 }
 0xaaa   :  { %v7165_v41 = vpop.eup %5498  ;;  %v2976_v36 = vpop.xlane.xlu1 %2975  ;;  %3137 = vadd.xlane.f32.xlu1 %v3136_v51 }
 0xaab   :  { %5512 = vpow2.f32 %v3075_v21  ;;  %v3073_v56 = vmul.f32 1.442695, %v3021_v27  ;;  %v3024_v55 = vsub.f32 %v7025_v35, %v2976_v36  ;;  %v3133_v4 = vsel %vm2904_vm3, %v7165_v41, 0.0 }
 0xaac   :  { %v7170_v9 = vpop.eup %5500  ;;  %v2973_v40 = vpop.xlane.xlu0 %2972  ;;  %3134 = vadd.xlane.f32.xlu0 %v3133_v4 }
 0xaad   :  { %5514 = vpow2.f32 %v3073_v56  ;;  %v3079_v15 = vmul.f32 1.442695, %v3024_v55  ;;  %v3023_v61 = vsub.f32 %v7032_v22, %v2973_v40  ;;  %v3142_v19 = vsel %vm2904_vm3, %v7170_v9, 0.0 }
 0xaae   :  { %v7175_v47 = vpop.eup %5502  ;;  %v2982_v16 = vpop.xlane.xlu1 %2981  ;;  %3143 = vadd.xlane.f32.xlu1 %v3142_v19 }
 0xaaf   :  { %5516 = vpow2.f32 %v3079_v15  ;;  %v3077_v35 = vmul.f32 1.442695, %v3023_v61  ;;  %v3026_v26 = vsub.f32 %v7039_v43, %v2982_v16  ;;  %v3139_v32 = vsel %vm2904_vm3, %v7175_v47, 0.0 }
 0xab0   :  { %v7180_v11 = vpop.eup %5504  ;;  %v2979_v18 = vpop.xlane.xlu0 %2978  ;;  %3140 = vadd.xlane.f32.xlu0 %v3139_v32 }
 0xab1   :  { %5518 = vpow2.f32 %v3077_v35  ;;  %v3083_v22 = vmul.f32 1.442695, %v3026_v26  ;;  %v3025_v13 = vsub.f32 %v7046_v50, %v2979_v18  ;;  %v3148_v60 = vsel %vm2904_vm3, %v7180_v11, 0.0 }
 0xab2   :  { %v7185_v1 = vpop.eup %5506  ;;  %v2988_v46 = vpop.xlane.xlu1 %2987  ;;  %3149 = vadd.xlane.f32.xlu1 %v3148_v60 }
 0xab3   :  { %5520 = vpow2.f32 %v3083_v22  ;;  %v3081_v43 = vmul.f32 1.442695, %v3025_v13  ;;  %v3028_v5 = vsub.f32 %v7053_v30, %v2988_v46  ;;  %v3145_v29 = vsel %vm2904_vm3, %v7185_v1, 0.0 }
 0xab4   :  { %v7190_v8 = vpop.eup %5508  ;;  %v2985_v14 = vpop.xlane.xlu0 %2984  ;;  %3146 = vadd.xlane.f32.xlu0 %v3145_v29 }
 0xab5   :  { %5522 = vpow2.f32 %v3081_v43  ;;  %v3087_v50 = vmul.f32 1.442695, %v3028_v5  ;;  %v3027_v62 = vsub.f32 %v7060_v0, %v2985_v14  ;;  %v3154_v57 = vsel %vm2904_vm3, %v7190_v8, 0.0 }
 0xab6   :  { %v7195_v17 = vpop.eup %5510  ;;  %v2994_v31 = vpop.xlane.xlu1 %2993  ;;  %3155 = vadd.xlane.f32.xlu1 %v3154_v57 }
 0xab7   :  { %5524 = vpow2.f32 %v3087_v50  ;;  %v3085_v30 = vmul.f32 1.442695, %v3027_v62  ;;  %v3030_v24 = vsub.f32 %v7067_v23, %v2994_v31  ;;  %v3151_v52 = vsel %vm2904_vm3, %v7195_v17, 0.0 }
 0xab8   :  { %v7200_v34 = vpop.eup %5512  ;;  %v2991_v3 = vpop.xlane.xlu0 %2990  ;;  %3152 = vadd.xlane.f32.xlu0 %v3151_v52 }
 0xab9   :  { %5526 = vpow2.f32 %v3085_v30  ;;  %v3091_v0 = vmul.f32 1.442695, %v3030_v24  ;;  %v3029_v44 = vsub.f32 %v7074_v42, %v2991_v3  ;;  %v3160_v39 = vsel %vm2904_vm3, %v7200_v34, 0.0 }
 0xaba   :  { %v7205_v48 = vpop.eup %5514  ;;  %3161 = vadd.xlane.f32.xlu1 %v3160_v39  ;;  %v3000_v28 = vpop.xlane.xlu1 %2999 }
 0xabb   :  { %5528 = vpow2.f32 %v3091_v0  ;;  %v3089_v23 = vmul.f32 1.442695, %v3029_v44  ;;  %v3032_v12 = vsub.f32 %v7081_v2, %v3000_v28  ;;  %v3157_v7 = vsel %vm2904_vm3, %v7205_v48, 0.0 }
 0xabc   :  { %v7210_v21 = vpop.eup %5516  ;;  %3158 = vadd.xlane.f32.xlu0 %v3157_v7  ;;  %v2997_v27 = vpop.xlane.xlu0 %2996 }
 0xabd   :  { %5530 = vpow2.f32 %v3089_v23  ;;  %v3095_v42 = vmul.f32 1.442695, %v3032_v12  ;;  %v3031_v51 = vsub.f32 %v7085_v10, %v2997_v27  ;;  %v3166_v36 = vsel %vm2904_vm3, %v7210_v21, 0.0 }
 0xabe   :  { %v7215_v56 = vpop.eup %5518  ;;  %3167 = vadd.xlane.f32.xlu1 %v3166_v36 }
 0xabf   :  { %5532 = vpow2.f32 %v3095_v42  ;;  %v3093_v55 = vmul.f32 1.442695, %v3031_v51  ;;  %v3163_v2 = vsel %vm2904_vm3, %v7215_v56, 0.0 }
 0xac0   :  { %v7219_v4 = vpop.eup %5520  ;;  %3164 = vadd.xlane.f32.xlu0 %v3163_v2 }
 0xac1   :  { %5534 = vpow2.f32 %v3093_v55  ;;  %v3172_v40 = vsel %vm2904_vm3, %v7219_v4, 0.0 }
 0xac2   :  { %v7223_v15 = vpop.eup %5522  ;;  %3173 = vadd.xlane.f32.xlu1 %v3172_v40 }
 0xac3   :  { %v3169_v10 = vsel %vm2904_vm3, %v7223_v15, 0.0 }
 0xac4   :  { %v7227_v61 = vpop.eup %5524  ;;  %3170 = vadd.xlane.f32.xlu0 %v3169_v10 }
 0xac5   :  { %v3178_v19 = vsel %vm2904_vm3, %v7227_v61, 0.0 }
 0xac6   :  { %v7231_v16 = vpop.eup %5526  ;;  %3179 = vadd.xlane.f32.xlu1 %v3178_v19 }
 0xac7   :  { %v3175_v35 = vsel %vm2904_vm3, %v7231_v16, 0.0 }
 0xac8   :  { %v7235_v26 = vpop.eup %5528  ;;  %3176 = vadd.xlane.f32.xlu0 %v3175_v35 }
 0xac9   :  { %v3184_v32 = vsel %vm2904_vm3, %v7235_v26, 0.0 }
 0xaca   :  { %v7239_v18 = vpop.eup %5530  ;;  %3185 = vadd.xlane.f32.xlu1 %v3184_v32 }
 0xacb   :  { %v3181_v22 = vsel %vm2904_vm3, %v7239_v18, 0.0 }
 0xacc   :  { %v7243_v13 = vpop.eup %5532  ;;  %3182 = vadd.xlane.f32.xlu0 %v3181_v22 }
 0xacd   :  { %v3190_v60 = vsel %vm2904_vm3, %v7243_v13, 0.0 }
 0xace   :  { %v7247_v46 = vpop.eup %5534  ;;  %3191 = vadd.xlane.f32.xlu1 %v3190_v60 }
 0xacf   :  { %v3187_v43 = vsel %vm2904_vm3, %v7247_v46, 0.0 }
 0xad0   :  { %3188 = vadd.xlane.f32.xlu0 %v3187_v43 }
 0xb1b   :  { %v3102_v5 = vpop.xlane.xlu1 %3101 }
 0xb1c   :  { %5536 = vrcp.f32 %v3102_v5 }
 0xb1d   :  { %v3099_v29 = vpop.xlane.xlu0 %3098 }
 0xb1e   :  { %5538 = vrcp.f32 %v3099_v29 }
 0xb1f   :  { %v3108_v14 = vpop.xlane.xlu1 %3107 }
 0xb20   :  { %5540 = vrcp.f32 %v3108_v14 }
 0xb21   :  { %v3105_v50 = vpop.xlane.xlu0 %3104 }
 0xb22   :  { %5542 = vrcp.f32 %v3105_v50 }
 0xb23   :  { %v3114_v62 = vpop.xlane.xlu1 %3113 }
 0xb24   :  { %5544 = vrcp.f32 %v3114_v62 }
 0xb25   :  { %v3111_v57 = vpop.xlane.xlu0 %3110 }
 0xb26   :  { %5546 = vrcp.f32 %v3111_v57 }
 0xb27   :  { %v3120_v31 = vpop.xlane.xlu1 %3119 }
 0xb28   :  { %5548 = vrcp.f32 %v3120_v31 }
 0xb29   :  { %v5537_v30 = vpop.eup %5536  ;;  %v3117_v24 = vpop.xlane.xlu0 %3116 }
 0xb2a   :  { %v3226_v52 = vmul.f32 %v5537_v30, %v3102_v5  ;;  %5550 = vrcp.f32 %v3117_v24 }
 0xb2b   :  { %v5539_v3 = vpop.eup %5538  ;;  %v3126_v0 = vpop.xlane.xlu1 %3125 }
 0xb2c   :  { %v3258_v44 = vsub.f32 2.0, %v3226_v52  ;;  %v3225_v39 = vmul.f32 %v5539_v3, %v3099_v29  ;;  %5552 = vrcp.f32 %v3126_v0 }
 0xb2d   :  { %v5541_v28 = vpop.eup %5540  ;;  %v3123_v23 = vpop.xlane.xlu0 %3122 }
 0xb2e   :  { %v3257_v12 = vsub.f32 2.0, %v3225_v39  ;;  %v3228_v7 = vmul.f32 %v5541_v28, %v3108_v14  ;;  %5554 = vrcp.f32 %v3123_v23  ;;  %v3290_v42 = vmul.f32 %v5537_v30, %v3258_v44 }
 0xb2f   :  { %v5543_v27 = vpop.eup %5542  ;;  %v3132_v51 = vpop.xlane.xlu1 %3131 }
 0xb30   :  { %v3289_v36 = vmul.f32 %v5539_v3, %v3257_v12  ;;  %v3260_v55 = vsub.f32 2.0, %v3228_v7  ;;  %v3227_v2 = vmul.f32 %v5543_v27, %v3105_v50  ;;  %5556 = vrcp.f32 %v3132_v51 }
 0xb31   :  { %v5545_v40 = vpop.eup %5544  ;;  %v3129_v10 = vpop.xlane.xlu0 %3128  ;;  %v3322_v60 = vmul.f32 %v7100_v20, %v3290_v42 }
 0xb32   :  { %v3321_v19 = vmul.f32 %v7105_v33, %v3289_v36  ;;  %v3259_v35 = vsub.f32 2.0, %v3227_v2  ;;  %v3230_v32 = vmul.f32 %v5545_v40, %v3114_v62  ;;  %v3292_v43 = vmul.f32 %v5541_v28, %v3260_v55 }
 0xb33   :  { %v5547_v22 = vpop.eup %5546  ;;  %5558 = vrcp.f32 %v3129_v10  ;;  %v3138_v5 = vpop.xlane.xlu1 %3137 }
 0xb34   :  { %v3291_v29 = vmul.f32 %v5543_v27, %v3259_v35  ;;  %v3262_v14 = vsub.f32 2.0, %v3230_v32  ;;  %v3229_v30 = vmul.f32 %v5547_v22, %v3111_v57  ;;  %5224 = vmatprep.mubr.msk.f32.mxu0 %vm2904_vm3, %v3321_v19  ;;  %5560 = vrcp.f32 %v3138_v5 }
 0xb35   :  { %v5549_v52 = vpop.eup %5548  ;;  %5225 = vmatmul.mubr.msk.f32.vlgmr.msra.gmra.mxu0 %vm2904_vm3, %v3322_v60  ;;  %v3135_v50 = vpop.xlane.xlu0 %3134  ;;  %v3324_v20 = vmul.f32 %v7110_v6, %v3292_v43 }
 0xb36   :  { %v3323_v33 = vmul.f32 %v7115_v45, %v3291_v29  ;;  %v3261_v3 = vsub.f32 2.0, %v3229_v30  ;;  %v3232_v62 = vmul.f32 %v5549_v52, %v3120_v31  ;;  %v3294_v39 = vmul.f32 %v5545_v40, %v3262_v14 }
 0xb37   :  { %v5551_v44 = vpop.eup %5550  ;;  %5562 = vrcp.f32 %v3135_v50  ;;  %v3144_v28 = vpop.xlane.xlu1 %3143 }
 0xb38   :  { %v3293_v12 = vmul.f32 %v5547_v22, %v3261_v3  ;;  %v3264_v7 = vsub.f32 2.0, %v3232_v62  ;;  %v3231_v57 = vmul.f32 %v5551_v44, %v3117_v24  ;;  %5227 = vmatprep.mubr.msk.f32.mxu0 %vm2904_vm3, %v3323_v33  ;;  %5564 = vrcp.f32 %v3144_v28 }
 0xb39   :  { %v5553_v27 = vpop.eup %5552  ;;  %5228 = vmatmul.mubr.msk.f32.gmra.mxu0 %vm2904_vm3, %v3324_v20  ;;  %v3141_v42 = vpop.xlane.xlu0 %3140  ;;  %v3326_v6 = vmul.f32 %v7120_v38, %v3294_v39 }
 0xb3a   :  { %v3325_v45 = vmul.f32 %v7125_v49, %v3293_v12  ;;  %v3263_v36 = vsub.f32 2.0, %v3231_v57  ;;  %v3234_v31 = vmul.f32 %v5553_v27, %v3126_v0  ;;  %v3296_v2 = vmul.f32 %v5549_v52, %v3264_v7 }
 0xb3b   :  { %v5555_v55 = vpop.eup %5554  ;;  %5566 = vrcp.f32 %v3141_v42  ;;  %v3150_v40 = vpop.xlane.xlu1 %3149 }
 0xb3c   :  { %v3295_v19 = vmul.f32 %v5551_v44, %v3263_v36  ;;  %v3266_v35 = vsub.f32 2.0, %v3234_v31  ;;  %v3233_v24 = vmul.f32 %v5555_v55, %v3123_v23  ;;  %5230 = vmatprep.mubr.msk.f32.mxu0 %vm2904_vm3, %v3325_v45  ;;  %5568 = vrcp.f32 %v3150_v40 }
 0xb3d   :  { %5231 = vmatmul.mubr.msk.f32.gmra.mxu0 %vm2904_vm3, %v3326_v6  ;;  %v3147_v32 = vpop.xlane.xlu0 %3146  ;;  %v5557_v22 = vpop.eup %5556  ;;  %v3328_v0 = vmul.f32 %v7130_v58, %v3296_v2 }
 0xb3e   :  { %v3327_v49 = vmul.f32 %v7135_v63, %v3295_v19  ;;  %v3265_v60 = vsub.f32 2.0, %v3233_v24  ;;  %5570 = vrcp.f32 %v3147_v32  ;;  %v3298_v38 = vmul.f32 %v5553_v27, %v3266_v35 }
 0xb3f   :  { %v3236_v43 = vmul.f32 %v5557_v22, %v3132_v51  ;;  %v3156_v29 = vpop.xlane.xlu1 %3155 }
 0xb40   :  { %v5559_v14 = vpop.eup %5558  ;;  %v3297_v30 = vmul.f32 %v5555_v55, %v3265_v60  ;;  %5572 = vrcp.f32 %v3156_v29  ;;  %5233 = vmatprep.mubr.msk.f32.mxu0 %vm2904_vm3, %v3327_v49  ;;  %v3330_v62 = vmul.f32 %v7140_v53, %v3298_v38 }
 0xb41   :  { %v3268_v23 = vsub.f32 2.0, %v3236_v43  ;;  %v3235_v52 = vmul.f32 %v5559_v14, %v3129_v10  ;;  %5234 = vmatmul.mubr.msk.f32.gmra.mxu0 %vm2904_vm3, %v3328_v0  ;;  %v3153_v33 = vpop.xlane.xlu0 %3152  ;;  %v5561_v3 = vpop.eup %5560 }
 0xb42   :  { %v3329_v63 = vmul.f32 %v7145_v54, %v3297_v30  ;;  %5574 = vrcp.f32 %v3153_v33  ;;  %v3238_v44 = vmul.f32 %v5561_v3, %v3138_v5 }
 0xb43   :  { %v3267_v58 = vsub.f32 2.0, %v3235_v52  ;;  %v3162_v51 = vpop.xlane.xlu1 %3161  ;;  %v3300_v39 = vmul.f32 %v5557_v22, %v3268_v23 }
 0xb44   :  { %v5563_v20 = vpop.eup %5562  ;;  %5576 = vrcp.f32 %v3162_v51  ;;  %5236 = vmatprep.mubr.msk.f32.mxu0 %vm2904_vm3, %v3329_v63  ;;  %v3270_v7 = vsub.f32 2.0, %v3238_v44 }
 0xb45   :  { %v3299_v12 = vmul.f32 %v5559_v14, %v3267_v58  ;;  %v3237_v10 = vmul.f32 %v5563_v20, %v3135_v50  ;;  %5237 = vmatmul.mubr.msk.f32.gmra.mxu0 %vm2904_vm3, %v3330_v62  ;;  %v3159_v57 = vpop.xlane.xlu0 %3158  ;;  %v5565_v27 = vpop.eup %5564  ;;  %v3332_v31 = vmul.f32 %v7150_v25, %v3300_v39 }
 0xb46   :  { %5578 = vrcp.f32 %v3159_v57  ;;  %v3240_v53 = vmul.f32 %v5565_v27, %v3144_v28  ;;  %v3302_v55 = vmul.f32 %v5561_v3, %v3270_v7 }
 0xb47   :  { %v3331_v54 = vmul.f32 %v7155_v37, %v3299_v12  ;;  %v3269_v45 = vsub.f32 2.0, %v3237_v10  ;;  %v3168_v36 = vpop.xlane.xlu1 %3167 }
 0xb48   :  { %v5567_v5 = vpop.eup %5566  ;;  %5580 = vrcp.f32 %v3168_v36  ;;  %v3272_v2 = vsub.f32 2.0, %v3240_v53  ;;  %v3334_v25 = vmul.f32 %v7160_v59, %v3302_v55 }
 0xb49   :  { %v3301_v6 = vmul.f32 %v5563_v20, %v3269_v45  ;;  %v3239_v19 = vmul.f32 %v5567_v5, %v3141_v42  ;;  %5239 = vmatprep.mubr.msk.f32.mxu0 %vm2904_vm3, %v3331_v54  ;;  %v3165_v50 = vpop.xlane.xlu0 %3164  ;;  %v5569_v35 = vpop.eup %5568 }
 0xb4a   :  { %5240 = vmatmul.mubr.msk.f32.gmra.mxu0 %vm2904_vm3, %v3332_v31  ;;  %5582 = vrcp.f32 %v3165_v50  ;;  %v3304_v28 = vmul.f32 %v5565_v27, %v3272_v2  ;;  %v3242_v49 = vmul.f32 %v5569_v35, %v3150_v40 }
 0xb4b   :  { %v5571_v24 = vpop.eup %5570  ;;  %v3333_v37 = vmul.f32 %v7165_v41, %v3301_v6  ;;  %v3271_v22 = vsub.f32 2.0, %v3239_v19  ;;  %v3174_v60 = vpop.xlane.xlu1 %3173 }
 0xb4c   :  { %v3241_v0 = vmul.f32 %v5571_v24, %v3147_v32  ;;  %5584 = vrcp.f32 %v3174_v60  ;;  %v3274_v43 = vsub.f32 2.0, %v3242_v49  ;;  %v3336_v52 = vmul.f32 %v7170_v9, %v3304_v28 }
 0xb4d   :  { %v5573_v38 = vpop.eup %5572  ;;  %v3303_v42 = vmul.f32 %v5567_v5, %v3271_v22  ;;  %5242 = vmatprep.mubr.msk.f32.mxu0 %vm2904_vm3, %v3333_v37  ;;  %v3171_v14 = vpop.xlane.xlu0 %3170 }
 0xb4e   :  { %v3273_v30 = vsub.f32 2.0, %v3241_v0  ;;  %v3244_v23 = vmul.f32 %v5573_v38, %v3156_v29  ;;  %5243 = vmatmul.mubr.msk.f32.gmra.mxu0 %vm2904_vm3, %v3334_v25  ;;  %5586 = vrcp.f32 %v3171_v14  ;;  %v3306_v3 = vmul.f32 %v5569_v35, %v3274_v43 }
 0xb4f   :  { %v5575_v41 = vpop.eup %5574  ;;  %v3335_v40 = vmul.f32 %v7175_v47, %v3303_v42  ;;  %v3180_v59 = vpop.xlane.xlu1 %3179 }
 0xb50   :  { %v3305_v32 = vmul.f32 %v5571_v24, %v3273_v30  ;;  %v3276_v63 = vsub.f32 2.0, %v3244_v23  ;;  %v3243_v62 = vmul.f32 %v5575_v41, %v3153_v33  ;;  %5588 = vrcp.f32 %v3180_v59 }
 0xb51   :  { %v5577_v58 = vpop.eup %5576  ;;  %5245 = vmatprep.mubr.msk.f32.mxu0 %vm2904_vm3, %v3335_v40  ;;  %v3177_v44 = vpop.xlane.xlu0 %3176  ;;  %v3338_v9 = vmul.f32 %v7180_v11, %v3306_v3 }
 0xb52   :  { %v3337_v29 = vmul.f32 %v7185_v1, %v3305_v32  ;;  %v3275_v20 = vsub.f32 2.0, %v3243_v62  ;;  %v3246_v39 = vmul.f32 %v5577_v58, %v3162_v51  ;;  %5246 = vmatmul.mubr.msk.f32.gmra.mxu0 %vm2904_vm3, %v3336_v52  ;;  %5590 = vrcp.f32 %v3177_v44 }
 0xb53   :  { %v5579_v12 = vpop.eup %5578  ;;  %v3186_v47 = vpop.xlane.xlu1 %3185  ;;  %v3308_v7 = vmul.f32 %v5573_v38, %v3276_v63 }
 0xb54   :  { %v3307_v10 = vmul.f32 %v5575_v41, %v3275_v20  ;;  %v3278_v27 = vsub.f32 2.0, %v3246_v39  ;;  %v3245_v33 = vmul.f32 %v5579_v12, %v3159_v57  ;;  %5248 = vmatprep.mubr.msk.f32.mxu0 %vm2904_vm3, %v3337_v29  ;;  %5592 = vrcp.f32 %v3186_v47 }
 0xb55   :  { %v5581_v54 = vpop.eup %5580  ;;  %v3183_v45 = vpop.xlane.xlu0 %3182  ;;  %v3340_v55 = vmul.f32 %v7190_v8, %v3308_v7 }
 0xb56   :  { %v3339_v1 = vmul.f32 %v7195_v17, %v3307_v10  ;;  %v3277_v53 = vsub.f32 2.0, %v3245_v33  ;;  %v3248_v51 = vmul.f32 %v5581_v54, %v3168_v36  ;;  %5249 = vmatmul.mubr.msk.f32.gmra.mxu0 %vm2904_vm3, %v3338_v9  ;;  %v3310_v31 = vmul.f32 %v5577_v58, %v3278_v27 }
 0xb57   :  { %v5583_v5 = vpop.eup %5582  ;;  %5594 = vrcp.f32 %v3183_v45  ;;  %v3192_v11 = vpop.xlane.xlu1 %3191 }
 0xb58   :  { %v3309_v6 = vmul.f32 %v5579_v12, %v3277_v53  ;;  %v3280_v2 = vsub.f32 2.0, %v3248_v51  ;;  %v3247_v57 = vmul.f32 %v5583_v5, %v3165_v50  ;;  %5251 = vmatprep.mubr.msk.f32.mxu0 %vm2904_vm3, %v3339_v1  ;;  %5596 = vrcp.f32 %v3192_v11 }
 0xb59   :  { %v5585_v19 = vpop.eup %5584  ;;  %v3189_v35 = vpop.xlane.xlu0 %3188  ;;  %v3342_v28 = vmul.f32 %v7200_v34, %v3310_v31 }
 0xb5a   :  { %v3341_v17 = vmul.f32 %v7205_v48, %v3309_v6  ;;  %v3279_v24 = vsub.f32 2.0, %v3247_v57  ;;  %v3250_v36 = vmul.f32 %v5585_v19, %v3174_v60  ;;  %5252 = vmatmul.mubr.msk.f32.gmra.mxu0 %vm2904_vm3, %v3340_v55  ;;  %5598 = vrcp.f32 %v3189_v35 }
 0xb5b   :  { %v5587_v37 = vpop.eup %5586  ;;  %v3312_v22 = vmul.f32 %v5581_v54, %v3280_v2 }
 0xb5c   :  { %v3311_v8 = vmul.f32 %v5583_v5, %v3279_v24  ;;  %v3282_v49 = vsub.f32 2.0, %v3250_v36  ;;  %v3249_v25 = vmul.f32 %v5587_v37, %v3171_v14  ;;  %5254 = vmatprep.mubr.msk.f32.mxu0 %vm2904_vm3, %v3341_v17 }
 0xb5d   :  { %v5589_v50 = vpop.eup %5588  ;;  %v3344_v60 = vmul.f32 %v7210_v21, %v3312_v22 }
 0xb5e   :  { %v3343_v0 = vmul.f32 %v7215_v56, %v3311_v8  ;;  %v3281_v38 = vsub.f32 2.0, %v3249_v25  ;;  %v3252_v42 = vmul.f32 %v5589_v50, %v3180_v59  ;;  %5255 = vmatmul.mubr.msk.f32.gmra.mxu0 %vm2904_vm3, %v3342_v28  ;;  %v3314_v43 = vmul.f32 %v5585_v19, %v3282_v49 }
 0xb5f   :  { %v5591_v48 = vpop.eup %5590 }
 0xb60   :  { %v3313_v30 = vmul.f32 %v5587_v37, %v3281_v38  ;;  %v3284_v34 = vsub.f32 2.0, %v3252_v42  ;;  %5257 = vmatprep.mubr.msk.f32.mxu0 %vm2904_vm3, %v3343_v0  ;;  %v3251_v23 = vmul.f32 %v5591_v48, %v3177_v44  ;;  %v3346_v3 = vmul.f32 %v7219_v4, %v3314_v43  ;;  %v5686_v43 = vld [vmem:[#allocation2 + $0x178] sm:$0xff] }
 0xb61   :  { %v5593_v41 = vpop.eup %5592 }
 0xb62   :  { %v3345_v14 = vmul.f32 %v7223_v15, %v3313_v30  ;;  %5258 = vmatmul.mubr.msk.f32.gmra.mxu0 %vm2904_vm3, %v3344_v60  ;;  %v3283_v52 = vsub.f32 2.0, %v3251_v23  ;;  %v3254_v56 = vmul.f32 %v5593_v41, %v3186_v47  ;;  %v3316_v59 = vmul.f32 %v5589_v50, %v3284_v34  ;;  %v5687_v23 = vld [vmem:[#allocation2 + $0x1f0] sm:$0xff] }
 0xb64   :  { %v5595_v40 = vpop.eup %5594  ;;  %5260 = vmatprep.mubr.msk.f32.mxu0 %vm2904_vm3, %v3345_v14  ;;  %v3315_v21 = vmul.f32 %v5591_v48, %v3283_v52  ;;  %v3286_v32 = vsub.f32 2.0, %v3254_v56  ;;  %v3348_v20 = vmul.f32 %v7227_v61, %v3316_v59  ;;  %v5685_v48 = vld [vmem:[#allocation2 + $0x1f8] sm:$0xff]  ;;  %v5688_v14 = vld [vmem:[#allocation2 + $0x170] sm:$0xff]  ;;  %v5689_v56 = vld [vmem:[#allocation2 + $0x1e8] sm:$0xff] }
 0xb65   :  { %v3253_v63 = vmul.f32 %v5595_v40, %v3183_v45  ;;  %v5597_v62 = vpop.eup %5596 }
 0xb66   :  { %5261 = vmatmul.mubr.msk.f32.gmra.mxu0 %vm2904_vm3, %v3346_v3  ;;  %v3347_v58 = vmul.f32 %v7231_v16, %v3315_v21  ;;  %v3256_v15 = vmul.f32 %v5597_v62, %v3192_v11  ;;  %v3318_v39 = vmul.f32 %v5593_v41, %v3286_v32  ;;  %v5690_v3 = vld [vmem:[#allocation2 + $0x168] sm:$0xff]  ;;  %v5691_v21 = vld [vmem:[#allocation2 + $0x1e0] sm:$0xff] }
 0xb67   :  { %v3285_v44 = vsub.f32 2.0, %v3253_v63  ;;  %v5599_v29 = vpop.eup %5598  ;;  %v5692_v63 = vld [vmem:[#allocation2 + $0x160] sm:$0xff] }
 0xb68   :  { %v3288_v9 = vsub.f32 2.0, %v3256_v15  ;;  %v3255_v4 = vmul.f32 %v5599_v29, %v3189_v35  ;;  %5263 = vmatprep.mubr.msk.f32.mxu0 %vm2904_vm3, %v3347_v58  ;;  %v3350_v10 = vmul.f32 %v7235_v26, %v3318_v39  ;;  %v5693_v58 = vld [vmem:[#allocation2 + $0x1d8] sm:$0xff] }
 0xb69   :  { %v3317_v12 = vmul.f32 %v5595_v40, %v3285_v44  ;;  %v5694_v15 = vld [vmem:[#allocation2 + $0x158] sm:$0xff] }
 0xb6a   :  { %5264 = vmatmul.mubr.msk.f32.gmra.mxu0 %vm2904_vm3, %v3348_v20  ;;  %v3287_v7 = vsub.f32 2.0, %v3255_v4  ;;  %v3320_v27 = vmul.f32 %v5597_v62, %v3288_v9  ;;  %v5695_v20 = vld [vmem:[#allocation2 + $0x1d0] sm:$0xff]  ;;  %v5697_v4 = vld [vmem:[#allocation2 + $0x1c8] sm:$0xff] }
 0xb6b   :  { %v3349_v47 = vmul.f32 %v7239_v18, %v3317_v12  ;;  %v5696_v12 = vld [vmem:[#allocation2 + $0x150] sm:$0xff] }
 0xb6c   :  { %v3319_v16 = vmul.f32 %v5599_v29, %v3287_v7  ;;  %v3352_v33 = vmul.f32 %v7243_v13, %v3320_v27  ;;  %v5698_v7 = vld [vmem:[#allocation2 + $0x148] sm:$0xff]  ;;  %v5699_v27 = vld [vmem:[#allocation2 + $0x1c0] sm:$0xff] }
 0xb6d   :  { %5266 = vmatprep.mubr.msk.f32.mxu0 %vm2904_vm3, %v3349_v47 }
 0xb6e   :  { %5267 = vmatmul.mubr.msk.f32.gmra.mxu0 %vm2904_vm3, %v3350_v10  ;;  %v3351_v61 = vmul.f32 %v7247_v46, %v3319_v16 }
 0xb70   :  { %5269 = vmatprep.mubr.msk.f32.mxu0 %vm2904_vm3, %v3351_v61  ;;  %v5700_v61 = vld [vmem:[#allocation2 + $0x140] sm:$0xff] }
 0xb72   :  { %5270 = vmatmul.mubr.msk.f32.gmra.mxu0 %vm2904_vm3, %v3352_v33 }
 0xbf5   :  { %v7315_v54 = vpop.f32.mrf.mxu0 }
 0xbf7   :  { %v7317_v18 = vpop.f32.mrf.mxu0 }
 0xbf9   :  { %v7319_v45 = vpop.f32.mrf.mxu0 }
 0xbfb   :  { %v7321_v26 = vpop.f32.mrf.mxu0 }
 0xbfd   :  { %v7323_v1 = vpop.f32.mrf.mxu0 }
 0xbff   :  { %v7325_v53 = vpop.f32.mrf.mxu0 }
 0xc01   :  { %v7327_v51 = vpop.f32.mrf.mxu0 }
 0xc03   :  { %v7329_v46 = vpop.f32.mrf.mxu0 }
 0xc05   :  { %v5238_v13 = vpop.f32.mrf.mxu0 }
 0xc06   :  { %v3683_v10 = vmul.f32 %v5698_v7, %v5238_v13 }
 0xc07   :  { %v7331_v5 = vpop.f32.mrf.mxu0 }
 0xc08   :  { %v3682_v33 = vmul.f32 %v5700_v61, %v7331_v5  ;;  %v5706_v5 = vld [vmem:[#allocation2 + $0x128] sm:$0xff] }
 0xc0a   :  { %v5241_v31 = vpop.f32.mrf.mxu0 }
 0xc0b   :  { %v3685_v29 = vmul.f32 %v5694_v15, %v5241_v31  ;;  %v5701_v31 = vld [vmem:[#allocation2 + $0x1b8] sm:$0xff] }
 0xc0c   :  { %v3565_v11 = vpop.f32.mrf.mxu0 }
 0xc0d   :  { %v3684_v9 = vmul.f32 %v5696_v12, %v3565_v11 }
 0xc0e   :  { %v5244_v55 = vpop.f32.mrf.mxu0 }
 0xc0f   :  { %v3687_v59 = vmul.f32 %v5690_v3, %v5244_v55  ;;  %v5727_v3 = vld [vmem:[%s7519_s7 + $0x38] sm:$0xff] }
 0xc10   :  { %v3575_v6 = vpop.f32.mrf.mxu0 }
 0xc11   :  { %v3686_v62 = vmul.f32 %v5692_v63, %v3575_v6  ;;  %v5702_v6 = vld [vmem:[#allocation2 + $0x138] sm:$0xff]  ;;  %v5731_v63 = vld [vmem:[%s7514_s2] sm:$0xff] }
 0xc12   :  { %v5247_v2 = vpop.f32.mrf.mxu0  ;;  %v3681_v11 = vmul.f32 %v5702_v6, %v7327_v51  ;;  %v5708_v51 = vld [vmem:[#allocation2 + $0x120] sm:$0xff] }
 0xc13   :  { %v3689_v30 = vmul.f32 %v5686_v43, %v5247_v2  ;;  %v5703_v2 = vld [vmem:[#allocation2 + $0x1b0] sm:$0xff]  ;;  %v5713_v43 = vld [vmem:[#allocation2 + $0x188] sm:$0xff]  ;;  %v5734_v6 = vld [vmem:[%s7512_s0 + $0x20] sm:$0xff] }
 0xc14   :  { %v3585_v57 = vpop.f32.mrf.mxu0 }
 0xc15   :  { %v3688_v52 = vmul.f32 %v5688_v14, %v3585_v57  ;;  %v5723_v14 = vld [vmem:[%s7519_s7 + $0x28] sm:$0xff] }
 0xc16   :  { %v7333_v19 = vpop.f32.mrf.mxu0 }
 0xc18   :  { %v7335_v35 = vpop.f32.mrf.mxu0 }
 0xc1a   :  { %v7337_v17 = vpop.f32.mrf.mxu0 }
 0xc1c   :  { %v7339_v24 = vpop.f32.mrf.mxu0 }
 0xc1e   :  { %v7341_v36 = vpop.f32.mrf.mxu0 }
 0xc20   :  { %v7343_v37 = vpop.f32.mrf.mxu0 }
 0xc22   :  { %v5259_v28 = vpop.f32.mrf.mxu0 }
 0xc23   :  { %v3697_v55 = vmul.f32 %v5701_v31, %v5259_v28  ;;  %v5707_v28 = vld [vmem:[#allocation2 + $0x1a0] sm:$0xff] }
 0xc24   :  { %v3625_v22 = vpop.f32.mrf.mxu0 }
 0xc25   :  { %v3696_v57 = vmul.f32 %v5703_v2, %v3625_v22  ;;  %v3678_v22 = vmul.f32 %v5708_v51, %v7325_v53  ;;  %v3691_v53 = vmul.f32 %v5713_v43, %v7333_v19  ;;  %v5719_v19 = vld [vmem:[%s7519_s7 + $0x18] sm:$0xff] }
 0xc26   :  { %v5262_v8 = vpop.f32.mrf.mxu0 }
 0xc27   :  { %v3699_v47 = vmul.f32 %v5697_v4, %v5262_v8  ;;  %v5704_v8 = vld [vmem:[#allocation2 + $0x130] sm:$0xff] }
 0xc28   :  { %v3635_v49 = vpop.f32.mrf.mxu0  ;;  %v3680_v13 = vmul.f32 %v5704_v8, %v7329_v46 }
 0xc29   :  { %v3698_v16 = vmul.f32 %v5699_v27, %v3635_v49  ;;  %v5705_v49 = vld [vmem:[#allocation2 + $0x1a8] sm:$0xff]  ;;  %v5732_v27 = vld [vmem:[%s7516_s4 + $0x2] ss:$0 sm:$0xff] }
 0xc2a   :  { %v5265_v25 = vpop.f32.mrf.mxu0 }
 0xc2b   :  { %v3701_v44 = vmul.f32 %v5693_v58, %v5265_v25  ;;  %v3695_v25 = vmul.f32 %v5705_v49, %v7341_v36 }
 0xc2c   :  { %v3645_v50 = vpop.f32.mrf.mxu0 }
 0xc2d   :  { %v3700_v39 = vmul.f32 %v5695_v20, %v3645_v50  ;;  %v3679_v50 = vmul.f32 %v5706_v5, %v7323_v1 }
 0xc2e   :  { %v5268_v0 = vpop.f32.mrf.mxu0 }
 0xc2f   :  { %v3703_v40 = vmul.f32 %v5689_v56, %v5268_v0  ;;  %v3694_v0 = vmul.f32 %v5707_v28, %v7343_v37  ;;  %v5725_v56 = vld [vmem:[%s7519_s7 + $0x20] sm:$0xff]  ;;  %v5736_v28 = vld [vmem:[%s7512_s0 + $0x30] sm:$0xff] }
 0xc30   :  { %v3655_v38 = vpop.f32.mrf.mxu0 }
 0xc31   :  { %v3702_v32 = vmul.f32 %v5691_v21, %v3655_v38  ;;  %v5709_v38 = vld [vmem:[#allocation2 + $0x198] sm:$0xff]  ;;  %v5729_v21 = vld [vmem:[%s7519_s7 + $0x30] sm:$0xff] }
 0xc32   :  { %v5271_v42 = vpop.f32.mrf.mxu0  ;;  %v3693_v46 = vmul.f32 %v5709_v38, %v7337_v17 }
 0xc33   :  { %v3705_v60 = vmul.f32 %v5685_v48, %v5271_v42  ;;  %v5710_v42 = vld [vmem:[#allocation2 + $0x118] sm:$0xff]  ;;  %v5711_v48 = vld [vmem:[#allocation2 + $0x190] sm:$0xff] }
 0xc34   :  { %v3665_v34 = vpop.f32.mrf.mxu0  ;;  %v3677_v36 = vmul.f32 %v5710_v42, %v7319_v45  ;;  %v3692_v1 = vmul.f32 %v5711_v48, %v7339_v24 }
 0xc35   :  { %v3704_v41 = vmul.f32 %v5687_v23, %v3665_v34  ;;  %4791 = vmatprep.subr.mxu1 %v3705_v60  ;;  %v5712_v60 = vld [vmem:[#allocation2 + $0x110] sm:$0xff]  ;;  %v5715_v34 = vld [vmem:[#allocation2 + $0x180] sm:$0xff] }
 0xc36   :  { %4792 = vmatpush3.msra.mxu1 %v3689_v30  ;;  %v3676_v37 = vmul.f32 %v5712_v60, %v7321_v26  ;;  %v5714_v30 = vld [vmem:[#allocation2 + $0x108] sm:$0xff]  ;;  %v3690_v45 = vmul.f32 %v5715_v34, %v7335_v35  ;;  %v5716_v23 = vld [vmem:[#allocation2 + $0x100] sm:$0xff]  ;;  %v5721_v35 = vld [vmem:[%s7519_s7 + $0x10] sm:$0xff] }
 0xc37   :  { %4793 = vmatprep.subr.mxu1 %v3704_v41  ;;  %v3675_v17 = vmul.f32 %v5714_v30, %v7315_v54  ;;  %v3674_v24 = vmul.f32 %v5716_v23, %v7317_v18  ;;  %v5717_v26 = vld [vmem:[%s7519_s7] sm:$0xff]  ;;  %v5718_v54 = vld [vmem:[%s7514_s2 + $0x38] sm:$0xff]  ;;  %v5720_v18 = vld [vmem:[%s7514_s2 + $0x30] sm:$0xff] }
 0xc38   :  { %4794 = vmatpush3.msra.mxu1 %v3688_v52  ;;  %v5722_v41 = vld [vmem:[%s7514_s2 + $0x28] sm:$0xff]  ;;  %v5724_v52 = vld [vmem:[%s7514_s2 + $0x20] sm:$0xff] }
 0xc39   :  { %4795 = vmatprep.subr.mxu1 %v3703_v40  ;;  %v5726_v40 = vld [vmem:[%s7514_s2 + $0x18] sm:$0xff] }
 0xc3a   :  { %4796 = vmatpush3.msra.mxu1 %v3687_v59  ;;  %v5728_v59 = vld [vmem:[%s7514_s2 + $0x10] sm:$0xff] }
 0xc3b   :  { %4797 = vmatprep.subr.mxu1 %v3702_v32  ;;  %v5730_v32 = vld [vmem:[%s7514_s2 + $0x8] sm:$0xff] }
 0xc3c   :  { %4798 = vmatpush3.msra.mxu1 %v3686_v62 }
 0xc3d   :  { %4799 = vmatprep.subr.mxu1 %v3701_v44 }
 0xc3e   :  { %4800 = vmatpush3.msra.mxu1 %v3685_v29 }
 0xc3f   :  { %4801 = vmatprep.subr.mxu1 %v3700_v39 }
 0xc40   :  { %4802 = vmatpush3.msra.mxu1 %v3684_v9 }
 0xc41   :  { %4803 = vmatprep.subr.mxu1 %v3699_v47 }
 0xc42   :  { %4804 = vmatpush3.msra.mxu1 %v3683_v10 }
 0xc43   :  { %4805 = vmatprep.subr.mxu1 %v3698_v16 }
 0xc44   :  { %4806 = vmatpush3.msra.mxu1 %v3682_v33  ;;  %v5733_v33 = vld [vmem:[%s7512_s0 + $0x28] sm:$0xff] }
 0xc45   :  { %4807 = vmatprep.subr.mxu1 %v3697_v55 }
 0xc46   :  { %4808 = vmatpush3.msra.mxu1 %v3681_v11 }
 0xc47   :  { %4809 = vmatprep.subr.mxu1 %v3696_v57 }
 0xc48   :  { %4810 = vmatpush3.msra.mxu1 %v3680_v13 }
 0xc49   :  { %4811 = vmatprep.subr.mxu1 %v3695_v25  ;;  %v5735_v25 = vld [vmem:[%s7512_s0 + $0x38] sm:$0xff] }
 0xc4a   :  { %4812 = vmatpush3.msra.mxu1 %v3679_v50 }
 0xc4b   :  { %4813 = vmatprep.subr.mxu1 %v3694_v0 }
 0xc4c   :  { %4814 = vmatpush3.msra.mxu1 %v3678_v22 }
 0xc4d   :  { %4815 = vmatprep.subr.mxu1 %v3693_v46 }
 0xc4e   :  { %4816 = vmatpush3.msra.mxu1 %v3677_v36 }
 0xc4f   :  { %4817 = vmatprep.subr.mxu1 %v3692_v1 }
 0xc50   :  { %4818 = vmatpush3.msra.mxu1 %v3676_v37 }
 0xc51   :  { %4819 = vmatprep.subr.mxu1 %v3691_v53 }
 0xc52   :  { %4820 = vmatpush3.msra.mxu1 %v3675_v17 }
 0xc53   :  { %4821 = vmatprep.subr.mxu1 %v3690_v45 }
 0xc54   :  { %4822 = vmatpush3.msra.mxu1 %v3674_v24 }
 0xc55   :  { %3771 = vmatmul.mubr.f32.vlgmr.msra.gmra.mxu1 %v5717_v26  ;;  %5272 = vmatprep.subr.mxu1 %v5718_v54 }
 0xc56   :  { %3775 = vmatprep.mubr.f32.mxu1 %v5719_v19  ;;  %5273 = vmatpush3.msra.mxu1 %v5718_v54 }
 0xc57   :  { %5274 = vmatprep.subr.mxu1 %v5720_v18 }
 0xc58   :  { %5275 = vmatpush3.msra.mxu1 %v5720_v18 }
 0xc59   :  { %3776 = vmatmul.mubr.f32.gmra.mxu1 %v5721_v35  ;;  %5276 = vmatprep.subr.mxu1 %v5722_v41  ;;  %v67_v35 = vld [vmem:[%s7515_s3 + $0x78] sm:$0xff] }
 0xc5a   :  { %3780 = vmatprep.mubr.f32.mxu1 %v5723_v14  ;;  %5277 = vmatpush3.msra.mxu1 %v5722_v41  ;;  %v66_v41 = vld [vmem:[%s7515_s3 + $0x70] sm:$0xff]  ;;  %v65_v14 = vld [vmem:[%s7515_s3 + $0x68] sm:$0xff] }
 0xc5b   :  { %5278 = vmatprep.subr.mxu1 %v5724_v52 }
 0xc5c   :  { %5279 = vmatpush3.msra.mxu1 %v5724_v52  ;;  %v64_v52 = vld [vmem:[%s7515_s3 + $0x60] sm:$0xff]  ;;  %s4247_s3 = sshll.u32 %s5786_s18, 4  ;;  %s4248_s3 = int_to_ptr.vmem [resolvable:$true] %s4247_s3 }
 0xc5d   :  { %3781 = vmatmul.mubr.f32.gmra.mxu1 %v5725_v56  ;;  %5280 = vmatprep.subr.mxu1 %v5726_v40  ;;  %v83_v56 = vld [vmem:[%s7514_s2 + $0x78] sm:$0xff]  ;;  %p5762_p6 = scmp.lt.s32.totalorder %s4248_s3, %s4248_s3 }
 0xc5e   :  { %3785 = vmatprep.mubr.f32.mxu1 %v5727_v3  ;;  %5281 = vmatpush3.msra.mxu1 %v5726_v40 }
 0xc5f   :  { %5282 = vmatprep.subr.mxu1 %v5728_v59 }
 0xc60   :  { %5283 = vmatpush3.msra.mxu1 %v5728_v59 }
 0xc61   :  { %3786 = vmatmul.mubr.f32.gmra.mxu1 %v5729_v21  ;;  %5284 = vmatprep.subr.mxu1 %v5730_v32 }
 0xc62   :  { %5285 = vmatpush3.msra.mxu1 %v5730_v32 }
 0xc63   :  { %5286 = vmatprep.subr.mxu1 %v5731_v63 }
 0xc64   :  { %5287 = vmatpush3.msra.mxu1 %v5731_v63 }
 0xc65   :  { %5294 = vmatprep.subr.mxu1 %v67_v35 }
 0xd15   :  { %v4823_v62 = vpop.f32.mrf.mxu1 }
 0xd17   :  { %v4824_v58 = vpop.f32.mrf.mxu1 }
 0xd18   :  { %v4825_v44 = vadd.f32 %v4824_v58, %v4823_v62 }
 0xd19   :  { %v4826_v15 = vpop.f32.mrf.mxu1 }
 0xd1a   :  { %5288 = vmatprep.mubr.msk.f32.mxu1 %vm272_vm2, %v4825_v44 }
 0xd1b   :  { %v4827_v29 = vpop.f32.mrf.mxu1 }
 0xd1c   :  { %v4828_v20 = vadd.f32 %v4827_v29, %v4826_v15 }
 0xd1d   :  { %v4829_v39 = vpop.f32.mrf.mxu1 }
 0xd1e   :  { %5289 = vmatmul.mubr.msk.f32.vlgmr.msra.gmra.mxu1 %vm272_vm2, %v4828_v20 }
 0xd1f   :  { %v4830_v12 = vpop.f32.mrf.mxu1  ;;  %5295 = vmatpush3.msra.mxu1 %v67_v35 }
 0xd20   :  { %v4831_v9 = vadd.f32 %v4830_v12, %v4829_v39  ;;  %5296 = vmatprep.subr.mxu1 %v66_v41 }
 0xd21   :  { %v4832_v4 = vpop.f32.mrf.mxu1  ;;  %5297 = vmatpush3.msra.mxu1 %v66_v41 }
 0xd22   :  { %5291 = vmatprep.mubr.msk.f32.mxu1 %vm272_vm2, %v4831_v9  ;;  %5298 = vmatprep.subr.mxu1 %v65_v14  ;;  %v4482_v9 = vld [vmem:[%s7516_s4 + $0x7] ss:$0 sm:$0xff] }
 0xd23   :  { %v4833_v47 = vpop.f32.mrf.mxu1  ;;  %5299 = vmatpush3.msra.mxu1 %v65_v14 }
 0xd24   :  { %v4834_v7 = vadd.f32 %v4833_v47, %v4832_v4  ;;  %5300 = vmatprep.subr.mxu1 %v64_v52 }
 0xd25   :  { %5301 = vmatpush3.msra.mxu1 %v64_v52 }
 0xd26   :  { %5292 = vmatmul.mubr.msk.f32.gmra.mxu1 %vm272_vm2, %v4834_v7  ;;  %5308 = vmatprep.subr.mxu1 %v83_v56 }
 0xdde   :  { %v5290_v10 = vpop.f32.mrf.mxu1 }
 0xddf   :  { %v3875_v16 = vadd.f32 %v5732_v27, %v5290_v10  ;;  %v4483_v10 = vld [vmem:[%s7516_s4 + $0x8] ss:$0 sm:$0xff] }
 0xde0   :  { %v3869_v61 = vpop.f32.mrf.mxu1 }
 0xde1   :  { %v3889_v31 = vadd.f32 %v5733_v33, %v3875_v16  ;;  %v3870_v55 = vadd.f32 %v5732_v27, %v3869_v61 }
 0xde3   :  { %v3888_v11 = vadd.f32 %v5734_v6, %v3870_v55  ;;  %v3895_v2 = vsel %vm382_vm1, %v3889_v31, 0.0  ;;  %v82_v55 = vld [vmem:[%s7514_s2 + $0x70] sm:$0xff] }
 0xde4   :  { %3896 = vadd.xlane.f32.xlu1 %v3895_v2  ;;  %v81_v2 = vld [vmem:[%s7514_s2 + $0x68] sm:$0xff] }
 0xde5   :  { %v3892_v57 = vsel %vm382_vm1, %v3888_v11, 0.0 }
 0xde6   :  { %v5293_v8 = vpop.f32.mrf.mxu1  ;;  %3893 = vadd.xlane.f32.xlu0 %v3892_v57 }
 0xde7   :  { %v3885_v13 = vadd.f32 %v5732_v27, %v5293_v8 }
 0xde8   :  { %v3879_v49 = vpop.f32.mrf.mxu1 }
 0xde9   :  { %v3891_v5 = vadd.f32 %v5735_v25, %v3885_v13  ;;  %v3880_v50 = vadd.f32 %v5732_v27, %v3879_v49  ;;  %v80_v13 = vld [vmem:[%s7514_s2 + $0x60] sm:$0xff] }
 0xdeb   :  { %v3890_v0 = vadd.f32 %v5736_v28, %v3880_v50  ;;  %v3901_v51 = vsel %vm382_vm1, %v3891_v5, 0.0  ;;  %v78_v50 = vld [vmem:[%s7514_s2 + $0x50] sm:$0xff]  ;;  %v77_v28 = vld [vmem:[%s7514_s2 + $0x48] sm:$0xff] }
 0xdec   :  { %3902 = vadd.xlane.f32.xlu1 %v3901_v51  ;;  %v4484_v51 = vld [vmem:[%s7516_s4 + $0x3] ss:$0 sm:$0xff] }
 0xded   :  { %v3898_v22 = vsel %vm382_vm1, %v3890_v0, 0.0 }
 0xdee   :  { %3899 = vadd.xlane.f32.xlu0 %v3898_v22 }
 0xe6d   :  { %v3897_v38 = vpop.xlane.xlu1 %3896 }
 0xe6e   :  { %v3905_v46 = vmul.f32 0.03125, %v3897_v38 }
 0xe6f   :  { %v3894_v42 = vpop.xlane.xlu0 %3893 }
 0xe70   :  { %v3909_v36 = vsub.f32 %v3889_v31, %v3905_v46  ;;  %v3904_v48 = vmul.f32 0.03125, %v3894_v42 }
 0xe72   :  { %v3908_v1 = vsub.f32 %v3888_v11, %v3904_v48  ;;  %v3913_v60 = vmul.f32 %v3909_v36, %v3909_v36 }
 0xe74   :  { %v3919_v37 = vsel %vm382_vm1, %v3913_v60, 0.0  ;;  %v3912_v43 = vmul.f32 %v3908_v1, %v3908_v1 }
 0xe75   :  { %3920 = vadd.xlane.f32.xlu1 %v3919_v37  ;;  %v3903_v53 = vpop.xlane.xlu1 %3902 }
 0xe76   :  { %v3907_v30 = vmul.f32 0.03125, %v3903_v53  ;;  %v3916_v17 = vsel %vm382_vm1, %v3912_v43, 0.0 }
 0xe77   :  { %3917 = vadd.xlane.f32.xlu0 %v3916_v17  ;;  %v3900_v34 = vpop.xlane.xlu0 %3899  ;;  %v4489_v17 = vld [vmem:[%s7516_s4 + $0x4] ss:$0 sm:$0xff] }
 0xe78   :  { %v3911_v45 = vsub.f32 %v3891_v5, %v3907_v30  ;;  %v3906_v23 = vmul.f32 0.03125, %v3900_v34  ;;  %v79_v5 = vld [vmem:[%s7514_s2 + $0x58] sm:$0xff] }
 0xe7a   :  { %v3910_v24 = vsub.f32 %v3890_v0, %v3906_v23  ;;  %v3915_v26 = vmul.f32 %v3911_v45, %v3911_v45  ;;  %v76_v0 = vld [vmem:[%s7514_s2 + $0x40] sm:$0xff] }
 0xe7c   :  { %v3925_v54 = vsel %vm382_vm1, %v3915_v26, 0.0  ;;  %v3914_v19 = vmul.f32 %v3910_v24, %v3910_v24 }
 0xe7d   :  { %3926 = vadd.xlane.f32.xlu1 %v3925_v54 }
 0xe7e   :  { %v3922_v18 = vsel %vm382_vm1, %v3914_v19, 0.0 }
 0xe7f   :  { %3923 = vadd.xlane.f32.xlu0 %v3922_v18 }
 0xefe   :  { %v3921_v40 = vpop.xlane.xlu1 %3920 }
 0xeff   :  { %v3929_v3 = vmul.f32 0.03125, %v3921_v40 }
 0xf00   :  { %v3918_v59 = vpop.xlane.xlu0 %3917 }
 0xf01   :  { %v3933_v21 = vadd.f32 1e-05, %v3929_v3  ;;  %v3928_v32 = vmul.f32 0.03125, %v3918_v59 }
 0xf03   :  { %5600 = vrsqrt.f32 %v3933_v21  ;;  %v3932_v63 = vadd.f32 1e-05, %v3928_v32 }
 0xf05   :  { %5602 = vrsqrt.f32 %v3932_v63 }
 0xf06   :  { %v3927_v62 = vpop.xlane.xlu1 %3926 }
 0xf07   :  { %v3931_v58 = vmul.f32 0.03125, %v3927_v62 }
 0xf08   :  { %v3924_v44 = vpop.xlane.xlu0 %3923 }
 0xf09   :  { %v3935_v15 = vadd.f32 1e-05, %v3931_v58  ;;  %v3930_v29 = vmul.f32 0.03125, %v3924_v44 }
 0xf0b   :  { %5604 = vrsqrt.f32 %v3935_v15  ;;  %v3934_v20 = vadd.f32 1e-05, %v3930_v29 }
 0xf0d   :  { %5606 = vrsqrt.f32 %v3934_v20 }
 0xf10   :  { %v5601_v39 = vpop.eup %5600 }
 0xf11   :  { %v3941_v12 = vmul.f32 %v5601_v39, %v3909_v36 }
 0xf12   :  { %v5603_v4 = vpop.eup %5602 }
 0xf13   :  { %v3940_v47 = vmul.f32 %v5603_v4, %v3908_v1  ;;  %v3949_v7 = vmul.f32 %v4482_v9, %v3941_v12 }
 0xf15   :  { %v3948_v27 = vmul.f32 %v4482_v9, %v3940_v47  ;;  %v3957_v33 = vadd.f32 %v4483_v10, %v3949_v7 }
 0xf17   :  { %v3956_v16 = vadd.f32 %v4483_v10, %v3948_v27 }
 0xf18   :  { %v5605_v61 = vpop.eup %5604 }
 0xf19   :  { %v3943_v31 = vmul.f32 %v5605_v61, %v3911_v45  ;;  %5302 = vmatprep.mubr.msk.f32.mxu1 %vm382_vm1, %v3956_v16 }
 0xf1a   :  { %v5607_v6 = vpop.eup %5606  ;;  %5303 = vmatmul.mubr.msk.f32.vlgmr.msra.gmra.mxu1 %vm382_vm1, %v3957_v33 }
 0xf1b   :  { %v3942_v11 = vmul.f32 %v5607_v6, %v3910_v24  ;;  %5309 = vmatpush3.msra.mxu1 %v83_v56  ;;  %v3951_v57 = vmul.f32 %v4482_v9, %v3943_v31 }
 0xf1c   :  { %5310 = vmatprep.subr.mxu1 %v82_v55 }
 0xf1d   :  { %v3950_v8 = vmul.f32 %v4482_v9, %v3942_v11  ;;  %5311 = vmatpush3.msra.mxu1 %v82_v55  ;;  %v3959_v25 = vadd.f32 %v4483_v10, %v3951_v57 }
 0xf1e   :  { %5312 = vmatprep.subr.mxu1 %v81_v2 }
 0xf1f   :  { %v3958_v49 = vadd.f32 %v4483_v10, %v3950_v8  ;;  %5313 = vmatpush3.msra.mxu1 %v81_v2 }
 0xf20   :  { %5314 = vmatprep.subr.mxu1 %v80_v13 }
 0xf21   :  { %5305 = vmatprep.mubr.msk.f32.mxu1 %vm382_vm1, %v3958_v49  ;;  %5315 = vmatpush3.msra.mxu1 %v80_v13 }
 0xf22   :  { %5306 = vmatmul.mubr.msk.f32.gmra.mxu1 %vm382_vm1, %v3959_v25  ;;  %5316 = vmatprep.subr.mxu1 %v79_v5 }
 0xf23   :  { %5317 = vmatpush3.msra.mxu1 %v79_v5 }
 0xf24   :  { %5318 = vmatprep.subr.mxu1 %v78_v50 }
 0xf25   :  { %5319 = vmatpush3.msra.mxu1 %v78_v50 }
 0xf26   :  { %5320 = vmatprep.subr.mxu1 %v77_v28 }
 0xf27   :  { %5321 = vmatpush3.msra.mxu1 %v77_v28 }
 0xf28   :  { %5322 = vmatprep.subr.mxu1 %v76_v0 }
 0xf29   :  { %5323 = vmatpush3.msra.mxu1 %v76_v0  ;;  %v4494_v0 = vld [vmem:[%s7516_s4 + $0x9] ss:$0 sm:$0xff] }
 0xfda   :  { %v5304_v22 = vpop.f32.mrf.mxu1 }
 0xfdb   :  { %v4048_v38 = vadd.f32 %v5304_v22, %v4484_v51 }
 0xfdc   :  { %v4042_v46 = vpop.f32.mrf.mxu1 }
 0xfdd   :  { %v4043_v42 = vadd.f32 %v4484_v51, %v4042_v46  ;;  %v4062_v48 = vmax.f32 %v4048_v38, 0.0  ;;  %v4495_v38 = vld [vmem:[%s7516_s4 + $0xa] ss:$0 sm:$0xff]  ;;  %s5757_s4 = scalar_lea.vmem %s4248_s3, 512 }
 0xfde   :  { %p5758_p5 = scmp.ne.s32.totalorder %s4248_s3, %s5757_s4  ;;  %p5763_p7 = scmp.lt.s32.totalorder %s5757_s4, %s5757_s4 }
 0xfdf   :  { %v4061_v36 = vmax.f32 %v4043_v42, 0.0 }
 0xfe0   :  { %p5764_p8 = por %p5763_p7, %p5762_p6 }
 0xfe1   :  { %5324 = vmatprep.mubr.msk.f32.mxu1 %vm272_vm2, %v4061_v36 }
 0xfe2   :  { %v5307_v1 = vpop.f32.mrf.mxu1  ;;  %5325 = vmatmul.mubr.msk.f32.vlgmr.msra.gmra.mxu1 %vm272_vm2, %v4062_v48  ;;  %p5765_p9 = pnand %p5764_p8, %p5758_p5 }
 0xfe3   :  { %v4058_v60 = vadd.f32 %v5307_v1, %v4484_v51 }
 0xfe4   :  { %v4052_v37 = vpop.f32.mrf.mxu1 }
 0xfe5   :  { %v4053_v43 = vadd.f32 %v4484_v51, %v4052_v37  ;;  %v4064_v30 = vmax.f32 %v4058_v60, 0.0 }
 0xfe7   :  { %v4063_v53 = vmax.f32 %v4053_v43, 0.0 }
 0xfe9   :  { %5327 = vmatprep.mubr.msk.f32.mxu1 %vm272_vm2, %v4063_v53 }
 0xfea   :  { %5328 = vmatmul.mubr.msk.f32.gmra.mxu1 %vm272_vm2, %v4064_v30 }
0x10a2   :  { %v5326_v34 = vpop.f32.mrf.mxu1 }
0x10a3   :  { %v4153_v45 = vadd.f32 %v5326_v34, %v4489_v17 }
0x10a4   :  { %v4147_v23 = vpop.f32.mrf.mxu1 }
0x10a5   :  { %v4167_v24 = vadd.f32 %v4153_v45, %v3957_v33  ;;  %v4148_v26 = vadd.f32 %v4489_v17, %v4147_v23 }
0x10a7   :  { %v4166_v54 = vadd.f32 %v4148_v26, %v3956_v16  ;;  %v4173_v19 = vsel %vm382_vm1, %v4167_v24, 0.0 }
0x10a8   :  { %4174 = vadd.xlane.f32.xlu1 %v4173_v19 }
0x10a9   :  { %v4170_v18 = vsel %vm382_vm1, %v4166_v54, 0.0 }
0x10aa   :  { %4171 = vadd.xlane.f32.xlu0 %v4170_v18  ;;  %v5329_v35 = vpop.f32.mrf.mxu1 }
0x10ab   :  { %v4163_v41 = vadd.f32 %v5329_v35, %v4489_v17 }
0x10ac   :  { %v4157_v14 = vpop.f32.mrf.mxu1 }
0x10ad   :  { %v4169_v52 = vadd.f32 %v4163_v41, %v3959_v25  ;;  %v4158_v56 = vadd.f32 %v4489_v17, %v4157_v14 }
0x10af   :  { %v4168_v40 = vadd.f32 %v4158_v56, %v3958_v49  ;;  %v4179_v3 = vsel %vm382_vm1, %v4169_v52, 0.0 }
0x10b0   :  { %4180 = vadd.xlane.f32.xlu1 %v4179_v3 }
0x10b1   :  { %v4176_v59 = vsel %vm382_vm1, %v4168_v40, 0.0 }
0x10b2   :  { %4177 = vadd.xlane.f32.xlu0 %v4176_v59 }
0x1131   :  { %v4175_v21 = vpop.xlane.xlu1 %4174 }
0x1132   :  { %v4183_v32 = vmul.f32 0.03125, %v4175_v21 }
0x1133   :  { %v4172_v63 = vpop.xlane.xlu0 %4171 }
0x1134   :  { %v4187_v62 = vsub.f32 %v4167_v24, %v4183_v32  ;;  %v4182_v58 = vmul.f32 0.03125, %v4172_v63 }
0x1136   :  { %v4186_v44 = vsub.f32 %v4166_v54, %v4182_v58  ;;  %v4191_v15 = vmul.f32 %v4187_v62, %v4187_v62 }
0x1138   :  { %v4197_v29 = vsel %vm382_vm1, %v4191_v15, 0.0  ;;  %v4190_v20 = vmul.f32 %v4186_v44, %v4186_v44 }
0x1139   :  { %4198 = vadd.xlane.f32.xlu1 %v4197_v29  ;;  %v4181_v39 = vpop.xlane.xlu1 %4180 }
0x113a   :  { %v4185_v12 = vmul.f32 0.03125, %v4181_v39  ;;  %v4194_v9 = vsel %vm382_vm1, %v4190_v20, 0.0 }
0x113b   :  { %4195 = vadd.xlane.f32.xlu0 %v4194_v9  ;;  %v4178_v4 = vpop.xlane.xlu0 %4177 }
0x113c   :  { %v4189_v47 = vsub.f32 %v4169_v52, %v4185_v12  ;;  %v4184_v7 = vmul.f32 0.03125, %v4178_v4 }
0x113e   :  { %v4188_v10 = vsub.f32 %v4168_v40, %v4184_v7  ;;  %v4193_v27 = vmul.f32 %v4189_v47, %v4189_v47 }
0x1140   :  { %v4203_v16 = vsel %vm382_vm1, %v4193_v27, 0.0  ;;  %v4192_v61 = vmul.f32 %v4188_v10, %v4188_v10 }
0x1141   :  { %4204 = vadd.xlane.f32.xlu1 %v4203_v16 }
0x1142   :  { %v4200_v33 = vsel %vm382_vm1, %v4192_v61, 0.0 }
0x1143   :  { %4201 = vadd.xlane.f32.xlu0 %v4200_v33 }
0x11c2   :  { %v4199_v31 = vpop.xlane.xlu1 %4198 }
0x11c3   :  { %v4207_v55 = vmul.f32 0.03125, %v4199_v31 }
0x11c4   :  { %v4196_v6 = vpop.xlane.xlu0 %4195 }
0x11c5   :  { %v4211_v11 = vadd.f32 1e-05, %v4207_v55  ;;  %v4206_v2 = vmul.f32 0.03125, %v4196_v6 }
0x11c7   :  { %5608 = vrsqrt.f32 %v4211_v11  ;;  %v4210_v57 = vadd.f32 1e-05, %v4206_v2 }
0x11c9   :  { %5610 = vrsqrt.f32 %v4210_v57 }
0x11ca   :  { %v4205_v8 = vpop.xlane.xlu1 %4204 }
0x11cb   :  { %v4209_v13 = vmul.f32 0.03125, %v4205_v8 }
0x11cc   :  { %v4202_v49 = vpop.xlane.xlu0 %4201 }
0x11cd   :  { %v4213_v25 = vadd.f32 1e-05, %v4209_v13  ;;  %v4208_v5 = vmul.f32 0.03125, %v4202_v49 }
0x11cf   :  { %5612 = vrsqrt.f32 %v4213_v25  ;;  %v4212_v50 = vadd.f32 1e-05, %v4208_v5 }
0x11d1   :  { %5614 = vrsqrt.f32 %v4212_v50 }
0x11d4   :  { %v5609_v28 = vpop.eup %5608 }
0x11d5   :  { %v4219_v51 = vmul.f32 %v5609_v28, %v4187_v62 }
0x11d6   :  { %v5611_v22 = vpop.eup %5610 }
0x11d7   :  { %v4218_v46 = vmul.f32 %v5611_v22, %v4186_v44  ;;  %v4227_v42 = vmul.f32 %v4494_v0, %v4219_v51 }
0x11d9   :  { %v4226_v36 = vmul.f32 %v4494_v0, %v4218_v46  ;;  %v4235_v48 = vadd.f32 %v4495_v38, %v4227_v42 }
0x11db   :  { %v4234_v1 = vadd.f32 %v4495_v38, %v4226_v36  ;;  %4239 = vst.msk [vmem:[#allocation5 + $0x8] sm:$0xff] %vm382_vm1, %v4235_v48 }
0x11dc   :  { %v5613_v60 = vpop.eup %5612 }
0x11dd   :  { %v4221_v37 = vmul.f32 %v5613_v60, %v4189_v47  ;;  %4238 = vst.msk [vmem:[#allocation5] sm:$0xff] %vm382_vm1, %v4234_v1 }
0x11de   :  { %v5615_v43 = vpop.eup %5614 }
0x11df   :  { %v4220_v53 = vmul.f32 %v5615_v43, %v4188_v10  ;;  %v4229_v30 = vmul.f32 %v4494_v0, %v4221_v37 }
0x11e1   :  { %v4228_v17 = vmul.f32 %v4494_v0, %v4220_v53  ;;  %v4237_v34 = vadd.f32 %v4495_v38, %v4229_v30 }
0x11e3   :  { %v4236_v45 = vadd.f32 %v4495_v38, %v4228_v17  ;;  %4241 = vst.msk [vmem:[#allocation5 + $0x18] sm:$0xff] %vm382_vm1, %v4237_v34 }
0x11e5   :  { %4240 = vst.msk [vmem:[#allocation5 + $0x10] sm:$0xff] %vm382_vm1, %v4236_v45 }
0x11e6   :  { %5768 = shalt.err (!%p5765_p9)
}
0x11e7   :  { %4253 = dma.vmem_to_hbm [thread:$0]  %s4248_s3, 512, %s7520_s8, [#allocation4], %s5782_s30, %s5782_s30, %s5783_s9  }
0x11e8   :  { %5779 = dma.done.wait [#allocation4], 512  }
0x11e9   :  { %5780 = vsyncadd [#allocation4], 4294966784 }
0x11ea   :  { %4257 = vsyncpa [#allocation3], 1 }
0x11eb   :  { %4258 = vsyncpa [#allocation4], 1 }

</bundles_post_ra>
